<compile_context>
chip_gen: v7x
topology: tpu7x:2x2x1
jax: 0.10.0
libtpu: 0.0.40
codegen_flags: <defaults>
</compile_context>

<pallas_src>
import jax
import jax.numpy as jnp
import numpy as np
from jax.experimental import pallas as pl
from jax.experimental.pallas import tpu as pltpu

D_HIDDEN = 1024   # roberta-large hidden / classifier in-features
F_RESNET = 1000   # resnet101 output dim (input of self.feats)
LN_EPS = 1e-12    # LayerNorm eps used by the module


def _round_up(x, m):
    return ((x + m - 1) // m) * m


def _layer_norm(x, gamma, beta):
    mu = jnp.mean(x, axis=-1, keepdims=True)
    var = jnp.mean(jnp.square(x - mu), axis=-1, keepdims=True)
    return (x - mu) * jax.lax.rsqrt(var + LN_EPS) * gamma + beta


# ---------------------------------------------------------------------------
# Kernel A: per-sample ROI fusion -> out_visual[n] = sum_r ((feats2(feats(resnet)) + boxes)/2)
# ---------------------------------------------------------------------------
def _roi_fuse_kernel(feats_ref, coords_ref, wf_ref, bf_ref, gf_ref, betaf_ref,
                     wb_ref, bb_ref, gb_ref, betab_ref, out_ref):
    x = feats_ref[0].astype(jnp.float32)            # (R, Fp)  bf16 in HBM, f32 in-vreg
    c = coords_ref[0]                               # (R, Cp)  f32
    # self.feats (Linear 1000->1024) + self.feats2 (LayerNorm)
    f = jnp.dot(x, wf_ref[...], preferred_element_type=jnp.float32) + bf_ref[...]
    f = _layer_norm(f, gf_ref[...], betaf_ref[...])
    # self.boxes (Linear 4->1024 + LayerNorm)
    b = jnp.dot(c, wb_ref[...], preferred_element_type=jnp.float32) + bb_ref[...]
    b = _layer_norm(b, gb_ref[...], betab_ref[...])
    roi = (f + b) * 0.5                             # (R, 1024)
    out_ref[...] = jnp.sum(roi, axis=0, keepdims=True).reshape(out_ref.shape)


def roi_visual_features(resnet_box_feats, box_coords,
                        w_feats, b_feats, g_feats2, beta_feats2,
                        w_boxes, b_boxes, g_boxes, beta_boxes):
    """resnet_box_feats: (N, R, 1000) bf16; box_coords: (N, R, 4) f32 -> (N, 1024) f32."""
    N, R, F = resnet_box_feats.shape
    C = box_coords.shape[-1]
    D = w_feats.shape[1]

    # Wrapper-side layout plumbing: zero-pad the contraction dims to 128-multiples so
    # the in-kernel MXU dots see lane-aligned K (results are unchanged by zero padding).
    Fp, Cp = _round_up(F, 128), _round_up(C, 128)
    if Fp != F:
        resnet_box_feats = jnp.pad(resnet_box_feats, ((0, 0), (0, 0), (0, Fp - F)))
        w_feats = jnp.pad(w_feats, ((0, Fp - F), (0, 0)))
    if Cp != C:
        box_coords = jnp.pad(box_coords, ((0, 0), (0, 0), (0, Cp - C)))
        w_boxes = jnp.pad(w_boxes, ((0, Cp - C), (0, 0)))

    out = pl.pallas_call(
        _roi_fuse_kernel,
        out_shape=jax.ShapeDtypeStruct((N, 1, D), jnp.float32),
        grid=(N,),
        in_specs=[
            pl.BlockSpec((1, R, Fp), lambda n: (n, 0, 0)),
            pl.BlockSpec((1, R, Cp), lambda n: (n, 0, 0)),
            pl.BlockSpec((Fp, D), lambda n: (0, 0)),
            pl.BlockSpec((1, D), lambda n: (0, 0)),
            pl.BlockSpec((1, D), lambda n: (0, 0)),
            pl.BlockSpec((1, D), lambda n: (0, 0)),
            pl.BlockSpec((Cp, D), lambda n: (0, 0)),
            pl.BlockSpec((1, D), lambda n: (0, 0)),
            pl.BlockSpec((1, D), lambda n: (0, 0)),
            pl.BlockSpec((1, D), lambda n: (0, 0)),
        ],
        out_specs=pl.BlockSpec((1, 1, D), lambda n: (n, 0, 0)),
        compiler_params=pltpu.CompilerParams(
            # Samples are independent -> shardable across v7x's 2 TensorCores.
            dimension_semantics=("parallel",)),
    )(resnet_box_feats, box_coords,
      w_feats, b_feats, g_feats2, beta_feats2,
      w_boxes, b_boxes, g_boxes, beta_boxes)
    return out.reshape(N, D)


# ---------------------------------------------------------------------------
# Kernel B: fused (roberta * visual) -> dropout(eval) -> Linear(1024,1) -> (B,C) [-> CE]
# ---------------------------------------------------------------------------
def _head_ce_kernel(rob_ref, vis_ref, w_ref, b_ref, onehot_ref, logits_ref, loss_ref):
    # rob/vis: (B, C, 1024) bf16; w: (1, 1, 1024) f32; b: SMEM (1,) f32; onehot: (B, C) f32
    pooled = rob_ref[...].astype(jnp.float32) * vis_ref[...].astype(jnp.float32)
    # TODO(synk): nn.Dropout(0.1) is identity at inference; training-mode dropout would
    # need pltpu.prng_seed + pltpu.stateful_bernoulli masking here.
    logits = jnp.sum(pooled * w_ref[...], axis=-1) + b_ref[0]      # (B, C) lane-dense
    logits_ref[...] = logits
    # mean cross-entropy over the batch
    m = jnp.max(logits, axis=-1, keepdims=True)
    lse = m + jnp.log(jnp.sum(jnp.exp(logits - m), axis=-1, keepdims=True))
    nll = lse - jnp.sum(onehot_ref[...] * logits, axis=-1, keepdims=True)   # (B, 1)
    loss_ref[...] = (jnp.sum(nll) * (1.0 / logits.shape[0])).reshape(1, 1)


def _head_kernel(rob_ref, vis_ref, w_ref, b_ref, logits_ref):
    pooled = rob_ref[...].astype(jnp.float32) * vis_ref[...].astype(jnp.float32)
    logits_ref[...] = jnp.sum(pooled * w_ref[...], axis=-1) + b_ref[0]


def classification_head(out_roberta, out_visual, w_classifier, b_classifier,
                        num_choices, labels_onehot=None):
    """out_roberta / out_visual: (N, 1024) bf16 -> ((B, C) logits, loss or None)."""
    N, D = out_roberta.shape
    B = N // num_choices
    rob3 = out_roberta.reshape(B, num_choices, D)            # free relabel of (N, D)
    vis3 = out_visual.reshape(B, num_choices, D)
    w_row = w_classifier.reshape(1, 1, D).astype(jnp.float32)  # lane-dense weight row
    bias = b_classifier.reshape(1).astype(jnp.float32)         # scalar -> SMEM

    vmem = pl.BlockSpec(memory_space=pltpu.MemorySpace.VMEM)
    smem = pl.BlockSpec(memory_space=pltpu.MemorySpace.SMEM)

    # The whole problem is a few tens of KiB: single invocation, no grid, no accumulator.
    if labels_onehot is None:
        logits = pl.pallas_call(
            _head_kernel,
            out_shape=jax.ShapeDtypeStruct((B, num_choices), jnp.float32),
            in_specs=[vmem, vmem, vmem, smem],
            out_specs=vmem,
        )(rob3, vis3, w_row, bias)
        return logits, None

    logits, loss = pl.pallas_call(
        _head_ce_kernel,
        out_shape=(jax.ShapeDtypeStruct((B, num_choices), jnp.float32),
                   jax.ShapeDtypeStruct((1, 1), jnp.float32)),
        in_specs=[vmem, vmem, vmem, smem, vmem],
        out_specs=(vmem, vmem),
    )(rob3, vis3, w_row, bias, labels_onehot)
    return logits, loss[0, 0]


# ---------------------------------------------------------------------------
# Wrapper mirroring ResnetRobertaBU.forward (post-backbone part)
# ---------------------------------------------------------------------------
def resnet_roberta_bu_forward(out_roberta, resnet_box_feats, box_coords, params,
                              num_choices, labels=None):
    out_visual = roi_visual_features(
        resnet_box_feats, box_coords,
        params["w_feats"], params["b_feats"], params["g_feats2"], params["beta_feats2"],
        params["w_boxes"], params["b_boxes"], params["g_boxes"], params["beta_boxes"])
    # final_out = out_roberta * out_visual is fused into the head kernel; keep both
    # factors bf16 in HBM (halves the only nontrivial DMA), math stays f32 in-vreg.
    out_visual = out_visual.astype(jnp.bfloat16)
    onehot = (None if labels is None
              else jax.nn.one_hot(labels, num_choices, dtype=jnp.float32))
    reshaped_logits, loss = classification_head(
        out_roberta, out_visual, params["w_classifier"], params["b_classifier"],
        num_choices, onehot)
    outputs = (reshaped_logits,)
    if labels is not None:
        outputs = (loss,) + outputs
    return outputs


if __name__ == "__main__":
    B = 2             # batch of questions
    NUM_CHOICES = 4   # multiple-choice options
    N = B * NUM_CHOICES
    R = 8             # ROIs (boxes) per choice; the module uses up to 32

    key = jax.random.PRNGKey(0)
    ks = jax.random.split(key, 12)

    # Backbone stand-ins (pretrained RoBERTa pooled output / resnet101 logits per ROI),
    # kept bf16 in HBM per the perf feedback.
    out_roberta = jax.random.normal(ks[0], (N, D_HIDDEN), jnp.float32).astype(jnp.bfloat16)
    resnet_box_feats = jax.random.normal(ks[1], (N, R, F_RESNET), jnp.float32).astype(jnp.bfloat16)
    box_coords = jax.random.uniform(ks[2], (N, R, 4), dtype=jnp.float32)

    params = {
        # self.feats = Linear(1000, 1024); weights stored pre-transposed as (in, out)
        "w_feats": jax.random.normal(ks[3], (F_RESNET, D_HIDDEN), jnp.float32) * 0.02,
        "b_feats": jax.random.normal(ks[4], (1, D_HIDDEN), jnp.float32) * 0.02,
        # self.feats2 = LayerNorm(1024, eps=1e-12)
        "g_feats2": 1.0 + 0.1 * jax.random.normal(ks[5], (1, D_HIDDEN), jnp.float32),
        "beta_feats2": 0.1 * jax.random.normal(ks[6], (1, D_HIDDEN), jnp.float32),
        # self.boxes = Linear(4, 1024) + LayerNorm(1024, eps=1e-12)
        "w_boxes": jax.random.normal(ks[7], (4, D_HIDDEN), jnp.float32) * 0.1,
        "b_boxes": jax.random.normal(ks[8], (1, D_HIDDEN), jnp.float32) * 0.02,
        "g_boxes": 1.0 + 0.1 * jax.random.normal(ks[9], (1, D_HIDDEN), jnp.float32),
        "beta_boxes": 0.1 * jax.random.normal(ks[10], (1, D_HIDDEN), jnp.float32),
        # self.classifier = Linear(1024, 1): weight (1, 1024), bias (1,)
        "w_classifier": jax.random.normal(ks[11], (1, D_HIDDEN), jnp.float32) * 0.02,
        "b_classifier": jnp.array([0.07], dtype=jnp.float32),
    }
    labels = jnp.array([1, 3], dtype=jnp.int32)

    loss, reshaped_logits = resnet_roberta_bu_forward(
        out_roberta, resnet_box_feats, box_coords, params, NUM_CHOICES, labels=labels)
    (logits_nolabel,) = resnet_roberta_bu_forward(
        out_roberta, resnet_box_feats, box_coords, params, NUM_CHOICES, labels=None)
    jax.block_until_ready((loss, reshaped_logits, logits_nolabel))

    # ---------------- pure-JAX references ----------------
    def ln_ref(x, g, b):
        mu = jnp.mean(x, axis=-1, keepdims=True)
        var = jnp.mean(jnp.square(x - mu), axis=-1, keepdims=True)
        return (x - mu) * jax.lax.rsqrt(var + LN_EPS) * g + b

    xf = resnet_box_feats.astype(jnp.float32)                               # (N, R, 1000)
    feats_ref = ln_ref(jnp.einsum("nrf,fd->nrd", xf, params["w_feats"]) + params["b_feats"],
                       params["g_feats2"], params["beta_feats2"])
    boxes_ref = ln_ref(jnp.einsum("nrc,cd->nrd", box_coords, params["w_boxes"]) + params["b_boxes"],
                       params["g_boxes"], params["beta_boxes"])
    out_visual_ref = jnp.sum((feats_ref + boxes_ref) * 0.5, axis=1)         # (N, 1024)

    out_visual_kernel = roi_visual_features(
        resnet_box_feats, box_coords,
        params["w_feats"], params["b_feats"], params["g_feats2"], params["beta_feats2"],
        params["w_boxes"], params["b_boxes"], params["g_boxes"], params["beta_boxes"])
    # Loose-ish tolerance: only divergence source is f32-matmul pass decomposition.
    assert np.allclose(np.asarray(out_visual_kernel), np.asarray(out_visual_ref),
                       atol=2e-2, rtol=2e-2)

    # Head reference uses the exact bf16 operands the fused head kernel sees.
    vis_bf16 = out_visual_kernel.astype(jnp.bfloat16)
    pooled_ref = out_roberta.astype(jnp.float32) * vis_bf16.astype(jnp.float32)
    logits_ref = (jnp.sum(pooled_ref * params["w_classifier"].astype(jnp.float32), axis=-1)
                  + params["b_classifier"][0]).reshape(B, NUM_CHOICES)
    log_probs = jax.nn.log_softmax(logits_ref, axis=-1)
    loss_ref = -jnp.mean(log_probs[jnp.arange(B), labels])

    assert np.allclose(np.asarray(reshaped_logits), np.asarray(logits_ref),
                       atol=1e-4, rtol=1e-4)
    assert np.allclose(np.asarray(logits_nolabel), np.asarray(logits_ref),
                       atol=1e-4, rtol=1e-4)
    assert np.allclose(float(loss), float(loss_ref), atol=1e-4, rtol=1e-4)

    print("KERNEL_OK")
</pallas_src>

<mosaic_0001>
module attributes {stable_mosaic.version = 11 : i64} {
  func.func @_roi_fuse_kernel(%arg0: i32, %arg1: memref<1x8x1024xbf16, #tpu.memory_space<vmem>>, %arg2: memref<1x8x128xf32, #tpu.memory_space<vmem>>, %arg3: memref<1024x1024xf32, #tpu.memory_space<vmem>>, %arg4: memref<1x1024xf32, #tpu.memory_space<vmem>>, %arg5: memref<1x1024xf32, #tpu.memory_space<vmem>>, %arg6: memref<1x1024xf32, #tpu.memory_space<vmem>>, %arg7: memref<128x1024xf32, #tpu.memory_space<vmem>>, %arg8: memref<1x1024xf32, #tpu.memory_space<vmem>>, %arg9: memref<1x1024xf32, #tpu.memory_space<vmem>>, %arg10: memref<1x1024xf32, #tpu.memory_space<vmem>>, %arg11: memref<1x1x1024xf32, #tpu.memory_space<vmem>>) attributes {dimension_semantics = [#tpu.dimension_semantics<parallel>], iteration_bounds = array<i64: 8>, scalar_prefetch = 0 : i64, scratch_operands = 0 : i64, tpu.core_type = #tpu.core_type<tc>, window_params = [{transform_indices = @transform_0, window_bounds = array<i64: 1, 8, 1024>}, {transform_indices = @transform_1, window_bounds = array<i64: 1, 8, 128>}, {pipeline_mode = #tpu.pipeline_mode<synchronous>, transform_indices = @transform_2, window_bounds = array<i64: 1024, 1024>}, {pipeline_mode = #tpu.pipeline_mode<synchronous>, transform_indices = @transform_3, window_bounds = array<i64: 1, 1024>}, {pipeline_mode = #tpu.pipeline_mode<synchronous>, transform_indices = @transform_4, window_bounds = array<i64: 1, 1024>}, {pipeline_mode = #tpu.pipeline_mode<synchronous>, transform_indices = @transform_5, window_bounds = array<i64: 1, 1024>}, {pipeline_mode = #tpu.pipeline_mode<synchronous>, transform_indices = @transform_6, window_bounds = array<i64: 128, 1024>}, {pipeline_mode = #tpu.pipeline_mode<synchronous>, transform_indices = @transform_7, window_bounds = array<i64: 1, 1024>}, {pipeline_mode = #tpu.pipeline_mode<synchronous>, transform_indices = @transform_8, window_bounds = array<i64: 1, 1024>}, {pipeline_mode = #tpu.pipeline_mode<synchronous>, transform_indices = @transform_9, window_bounds = array<i64: 1, 1024>}, {transform_indices = @transform_10, window_bounds = array<i64: 1, 1, 1024>}]} {
    %c0 = arith.constant 0 : index
    %c0_0 = arith.constant 0 : index
    %c0_1 = arith.constant 0 : index
    %0 = vector.load %arg1[%c0, %c0_0, %c0_1] : memref<1x8x1024xbf16, #tpu.memory_space<vmem>>, vector<1x8x1024xbf16>
    %1 = vector.shape_cast %0 : vector<1x8x1024xbf16> to vector<8x1024xbf16>
    %2 = arith.extf %1 : vector<8x1024xbf16> to vector<8x1024xf32>
    %c0_2 = arith.constant 0 : index
    %c0_3 = arith.constant 0 : index
    %c0_4 = arith.constant 0 : index
    %3 = vector.load %arg2[%c0_2, %c0_3, %c0_4] : memref<1x8x128xf32, #tpu.memory_space<vmem>>, vector<1x8x128xf32>
    %4 = vector.shape_cast %3 : vector<1x8x128xf32> to vector<8x128xf32>
    %c0_5 = arith.constant 0 : index
    %c0_6 = arith.constant 0 : index
    %5 = vector.load %arg3[%c0_5, %c0_6] : memref<1024x1024xf32, #tpu.memory_space<vmem>>, vector<1024x1024xf32>
    %cst = arith.constant dense<0.000000e+00> : vector<8x1024xf32>
    %6 = tpu.matmul %2, %5, %cst {dimension_numbers = #tpu.dot_dimension_numbers<[1], [0], [0], [1], [0, 0, 1, 1], [], []>} : vector<8x1024xf32>, vector<1024x1024xf32>, vector<8x1024xf32> -> vector<8x1024xf32>
    %c0_7 = arith.constant 0 : index
    %c0_8 = arith.constant 0 : index
    %7 = vector.load %arg4[%c0_7, %c0_8] : memref<1x1024xf32, #tpu.memory_space<vmem>>, vector<1x1024xf32>
    %8 = vector.broadcast %7 : vector<1x1024xf32> to vector<8x1024xf32>
    %9 = arith.addf %6, %8 : vector<8x1024xf32>
    %c0_9 = arith.constant 0 : index
    %c0_10 = arith.constant 0 : index
    %10 = vector.load %arg5[%c0_9, %c0_10] : memref<1x1024xf32, #tpu.memory_space<vmem>>, vector<1x1024xf32>
    %c0_11 = arith.constant 0 : index
    %c0_12 = arith.constant 0 : index
    %11 = vector.load %arg6[%c0_11, %c0_12] : memref<1x1024xf32, #tpu.memory_space<vmem>>, vector<1x1024xf32>
    %cst_13 = arith.constant dense<0.000000e+00> : vector<8xf32>
    %12 = vector.multi_reduction <add>, %9, %cst_13 [1] : vector<8x1024xf32> to vector<8xf32>
    %13 = vector.shape_cast %12 : vector<8xf32> to vector<8x1xf32>
    %cst_14 = arith.constant 1.024000e+03 : f32
    %14 = vector.broadcast %cst_14 : f32 to vector<8x1xf32>
    %15 = arith.divf %13, %14 : vector<8x1xf32>
    %16 = vector.broadcast %15 : vector<8x1xf32> to vector<8x1024xf32>
    %17 = arith.subf %9, %16 : vector<8x1024xf32>
    %18 = arith.mulf %17, %17 : vector<8x1024xf32>
    %cst_15 = arith.constant dense<0.000000e+00> : vector<8xf32>
    %19 = vector.multi_reduction <add>, %18, %cst_15 [1] : vector<8x1024xf32> to vector<8xf32>
    %20 = vector.shape_cast %19 : vector<8xf32> to vector<8x1xf32>
    %cst_16 = arith.constant 1.024000e+03 : f32
    %21 = vector.broadcast %cst_16 : f32 to vector<8x1xf32>
    %22 = arith.divf %20, %21 : vector<8x1xf32>
    %23 = vector.broadcast %15 : vector<8x1xf32> to vector<8x1024xf32>
    %24 = arith.subf %9, %23 : vector<8x1024xf32>
    %cst_17 = arith.constant 9.99999996E-13 : f32
    %25 = vector.broadcast %cst_17 : f32 to vector<8x1xf32>
    %26 = arith.addf %22, %25 : vector<8x1xf32>
    %27 = math.rsqrt %26 : vector<8x1xf32>
    %28 = vector.broadcast %27 : vector<8x1xf32> to vector<8x1024xf32>
    %29 = arith.mulf %24, %28 : vector<8x1024xf32>
    %30 = vector.broadcast %10 : vector<1x1024xf32> to vector<8x1024xf32>
    %31 = arith.mulf %29, %30 : vector<8x1024xf32>
    %32 = vector.broadcast %11 : vector<1x1024xf32> to vector<8x1024xf32>
    %33 = arith.addf %31, %32 : vector<8x1024xf32>
    %c0_18 = arith.constant 0 : index
    %c0_19 = arith.constant 0 : index
    %34 = vector.load %arg7[%c0_18, %c0_19] : memref<128x1024xf32, #tpu.memory_space<vmem>>, vector<128x1024xf32>
    %cst_20 = arith.constant dense<0.000000e+00> : vector<8x1024xf32>
    %35 = tpu.matmul %4, %34, %cst_20 {dimension_numbers = #tpu.dot_dimension_numbers<[1], [0], [0], [1], [0, 0, 1, 1], [], []>} : vector<8x128xf32>, vector<128x1024xf32>, vector<8x1024xf32> -> vector<8x1024xf32>
    %c0_21 = arith.constant 0 : index
    %c0_22 = arith.constant 0 : index
    %36 = vector.load %arg8[%c0_21, %c0_22] : memref<1x1024xf32, #tpu.memory_space<vmem>>, vector<1x1024xf32>
    %37 = vector.broadcast %36 : vector<1x1024xf32> to vector<8x1024xf32>
    %38 = arith.addf %35, %37 : vector<8x1024xf32>
    %c0_23 = arith.constant 0 : index
    %c0_24 = arith.constant 0 : index
    %39 = vector.load %arg9[%c0_23, %c0_24] : memref<1x1024xf32, #tpu.memory_space<vmem>>, vector<1x1024xf32>
    %c0_25 = arith.constant 0 : index
    %c0_26 = arith.constant 0 : index
    %40 = vector.load %arg10[%c0_25, %c0_26] : memref<1x1024xf32, #tpu.memory_space<vmem>>, vector<1x1024xf32>
    %cst_27 = arith.constant dense<0.000000e+00> : vector<8xf32>
    %41 = vector.multi_reduction <add>, %38, %cst_27 [1] : vector<8x1024xf32> to vector<8xf32>
    %42 = vector.shape_cast %41 : vector<8xf32> to vector<8x1xf32>
    %cst_28 = arith.constant 1.024000e+03 : f32
    %43 = vector.broadcast %cst_28 : f32 to vector<8x1xf32>
    %44 = arith.divf %42, %43 : vector<8x1xf32>
    %45 = vector.broadcast %44 : vector<8x1xf32> to vector<8x1024xf32>
    %46 = arith.subf %38, %45 : vector<8x1024xf32>
    %47 = arith.mulf %46, %46 : vector<8x1024xf32>
    %cst_29 = arith.constant dense<0.000000e+00> : vector<8xf32>
    %48 = vector.multi_reduction <add>, %47, %cst_29 [1] : vector<8x1024xf32> to vector<8xf32>
    %49 = vector.shape_cast %48 : vector<8xf32> to vector<8x1xf32>
    %cst_30 = arith.constant 1.024000e+03 : f32
    %50 = vector.broadcast %cst_30 : f32 to vector<8x1xf32>
    %51 = arith.divf %49, %50 : vector<8x1xf32>
    %52 = vector.broadcast %44 : vector<8x1xf32> to vector<8x1024xf32>
    %53 = arith.subf %38, %52 : vector<8x1024xf32>
    %cst_31 = arith.constant 9.99999996E-13 : f32
    %54 = vector.broadcast %cst_31 : f32 to vector<8x1xf32>
    %55 = arith.addf %51, %54 : vector<8x1xf32>
    %56 = math.rsqrt %55 : vector<8x1xf32>
    %57 = vector.broadcast %56 : vector<8x1xf32> to vector<8x1024xf32>
    %58 = arith.mulf %53, %57 : vector<8x1024xf32>
    %59 = vector.broadcast %39 : vector<1x1024xf32> to vector<8x1024xf32>
    %60 = arith.mulf %58, %59 : vector<8x1024xf32>
    %61 = vector.broadcast %40 : vector<1x1024xf32> to vector<8x1024xf32>
    %62 = arith.addf %60, %61 : vector<8x1024xf32>
    %63 = arith.addf %33, %62 : vector<8x1024xf32>
    %cst_32 = arith.constant 5.000000e-01 : f32
    %64 = vector.broadcast %cst_32 : f32 to vector<8x1024xf32>
    %65 = arith.mulf %63, %64 : vector<8x1024xf32>
    %cst_33 = arith.constant dense<0.000000e+00> : vector<1024xf32>
    %66 = vector.multi_reduction <add>, %65, %cst_33 [0] : vector<8x1024xf32> to vector<1024xf32>
    %67 = vector.shape_cast %66 : vector<1024xf32> to vector<1x1024xf32>
    %68 = vector.shape_cast %67 : vector<1x1024xf32> to vector<1x1x1024xf32>
    %c0_34 = arith.constant 0 : index
    %c0_35 = arith.constant 0 : index
    %c0_36 = arith.constant 0 : index
    %69 = vector.load %arg11[%c0_34, %c0_35, %c0_36] : memref<1x1x1024xf32, #tpu.memory_space<vmem>>, vector<1x1x1024xf32>
    tpu.vector_store %arg11[%c0_34, %c0_35, %c0_36], %68 {strides = array<i32>} : memref<1x1x1024xf32, #tpu.memory_space<vmem>>, vector<1x1x1024xf32>,
    return
  }
  func.func @transform_0(%arg0: i32) -> (i32, i32, i32) {
    %c0_i32 = arith.constant 0 : i32
    %c0_i32_0 = arith.constant 0 : i32
    %c0_i32_1 = arith.constant 0 : i32
    return %arg0, %c0_i32, %c0_i32_0 : i32, i32, i32
  }
  func.func @transform_1(%arg0: i32) -> (i32, i32, i32) {
    %c0_i32 = arith.constant 0 : i32
    %c0_i32_0 = arith.constant 0 : i32
    %c0_i32_1 = arith.constant 0 : i32
    return %arg0, %c0_i32, %c0_i32_0 : i32, i32, i32
  }
  func.func @transform_2(%arg0: i32) -> (i32, i32) {
    %c0_i32 = arith.constant 0 : i32
    %c0_i32_0 = arith.constant 0 : i32
    %c0_i32_1 = arith.constant 0 : i32
    return %c0_i32, %c0_i32_0 : i32, i32
  }
  func.func @transform_3(%arg0: i32) -> (i32, i32) {
    %c0_i32 = arith.constant 0 : i32
    %c0_i32_0 = arith.constant 0 : i32
    %c0_i32_1 = arith.constant 0 : i32
    return %c0_i32, %c0_i32_0 : i32, i32
  }
  func.func @transform_4(%arg0: i32) -> (i32, i32) {
    %c0_i32 = arith.constant 0 : i32
    %c0_i32_0 = arith.constant 0 : i32
    %c0_i32_1 = arith.constant 0 : i32
    return %c0_i32, %c0_i32_0 : i32, i32
  }
  func.func @transform_5(%arg0: i32) -> (i32, i32) {
    %c0_i32 = arith.constant 0 : i32
    %c0_i32_0 = arith.constant 0 : i32
    %c0_i32_1 = arith.constant 0 : i32
    return %c0_i32, %c0_i32_0 : i32, i32
  }
  func.func @transform_6(%arg0: i32) -> (i32, i32) {
    %c0_i32 = arith.constant 0 : i32
    %c0_i32_0 = arith.constant 0 : i32
    %c0_i32_1 = arith.constant 0 : i32
    return %c0_i32, %c0_i32_0 : i32, i32
  }
  func.func @transform_7(%arg0: i32) -> (i32, i32) {
    %c0_i32 = arith.constant 0 : i32
    %c0_i32_0 = arith.constant 0 : i32
    %c0_i32_1 = arith.constant 0 : i32
    return %c0_i32, %c0_i32_0 : i32, i32
  }
  func.func @transform_8(%arg0: i32) -> (i32, i32) {
    %c0_i32 = arith.constant 0 : i32
    %c0_i32_0 = arith.constant 0 : i32
    %c0_i32_1 = arith.constant 0 : i32
    return %c0_i32, %c0_i32_0 : i32, i32
  }
  func.func @transform_9(%arg0: i32) -> (i32, i32) {
    %c0_i32 = arith.constant 0 : i32
    %c0_i32_0 = arith.constant 0 : i32
    %c0_i32_1 = arith.constant 0 : i32
    return %c0_i32, %c0_i32_0 : i32, i32
  }
  func.func @transform_10(%arg0: i32) -> (i32, i32, i32) {
    %c0_i32 = arith.constant 0 : i32
    %c0_i32_0 = arith.constant 0 : i32
    %c0_i32_1 = arith.constant 0 : i32
    return %arg0, %c0_i32, %c0_i32_0 : i32, i32, i32
  }
}

</mosaic_0001>

<bundles_post_ra>
// kernel: tpu_custom_call.1
= control target key start
LH: loop header
LB: loop body
LE: loop exit
PB: predicated region body
PF: predicated region fallthrough
CT: control target
= control target key end

     0   :  { %s6290_s0 = inlined_call_operand.hbm [shape: bf16[8,8,1024], index: 0, kind: input, shape index: {}]   ;;  %s6291_s1 = inlined_call_operand.hbm [shape: f32[8,8,128], index: 1, kind: input, shape index: {}]   ;;  %s6292_s2 = inlined_call_operand.hbm [shape: f32[1024,1024], index: 2, kind: input, shape index: {}]   ;;  %s6293_s3 = inlined_call_operand.hbm [shape: f32[1,1024], index: 3, kind: input, shape index: {}]   ;;  %s6294_s4 = inlined_call_operand.hbm [shape: f32[1,1024], index: 4, kind: input, shape index: {}]   ;;  %s6295_s5 = inlined_call_operand.hbm [shape: f32[1,1024], index: 5, kind: input, shape index: {}]   ;;  %s6296_s6 = inlined_call_operand.hbm [shape: f32[128,1024], index: 6, kind: input, shape index: {}]   ;;  %s6297_s7 = inlined_call_operand.hbm [shape: f32[1,1024], index: 7, kind: input, shape index: {}]   ;;  %s6298_s8 = inlined_call_operand.hbm [shape: f32[1,1024], index: 8, kind: input, shape index: {}]   ;;  %s6299_s9 = inlined_call_operand.hbm [shape: f32[1,1024], index: 9, kind: input, shape index: {}]   ;;  %s6300_s10 = inlined_call_operand.hbm [shape: f32[8,1,1024], index: 10, kind: output, shape index: {}]  }
   0x1   :  { %6310 = sst [smem:[#allocation31_spill]] %s6290_s0 }
   0x2   :  { %6311 = sst [smem:[#allocation32_spill]] %s6292_s2 }
   0x3   :  { %6312 = sst [smem:[#allocation33_spill]] %s6293_s3 }
   0x4   :  { %6313 = sst [smem:[#allocation34_spill]] %s6294_s4 }
   0x5   :  { %6314 = sst [smem:[#allocation35_spill]] %s6300_s10 }
   0x6   :  { %15 = vsyncpa [#allocation3], 0 }
   0x7   :  { %17 = vsyncpa [#allocation3 + $0x1], 0 }
   0x8   :  { %18 = vsyncpa [#allocation6], 0 }
   0x9   :  { %20 = vsyncpa [#allocation6 + $0x1], 0 }
   0xa   :  { %21 = vsyncpa [#allocation9], 0 }
   0xb   :  { %22 = vsyncpa [#allocation12], 0 }
   0xc   :  { %23 = vsyncpa [#allocation15], 0 }
   0xd   :  { %24 = vsyncpa [#allocation18], 0 }
   0xe   :  { %25 = vsyncpa [#allocation4], 0 }
   0xf   :  { %27 = vsyncpa [#allocation4 + $0x1], 0  ;;  %s5591_s13 = smov 0   ;;  %s5593_s14 = smov 0  }
  0x10   :  { %s5595_s15 = smov 0   ;;  %s5597_s16 = smov 0  }
  0x11 LB: > { %s5521_s17 = smov [#allocation7]   ;;  %s5612_s19 = sadd.s32 4294967295, %s5519_s16   ;;  %s5519_s16 = sphi %s5597_s16, %s6354_s16   ;;  %s5515_s15 = sphi %s5595_s15, %s6353_s15   ;;  %s5511_s14 = sphi %s5593_s14, %s6352_s14   ;;  %s5507_s13 = sphi %s5591_s13, %s6351_s13  }
  0x12   : > { %s296_s18 = sshll.u32 %s5521_s17, 4  ;;  %p3787_p0 = scmp.ge.s32.totalorder %s5519_s16, 1  ;;  %s5617_s18 = int_to_ptr.vmem [resolvable:$true] %s296_s18 }
  0x13   : > { %p6304_p1 = scmp.eq.s32.totalorder %s5612_s19, 0  ;;  %p284_p2 = scmp.lt.s32.totalorder %s5519_s16, 9 }
  0x14   : > { %s5522_s21 = smov [#allocation8]   ;;  %s5523_s24 = smov [#allocation11]  }
  0x15   : > { %p5619_p3 = pnand %p3787_p0, %p284_p2  ;;  %s310_s22 = sshll.u32 %s5522_s21, 4  ;;  %s5631_s22 = int_to_ptr.vmem [resolvable:$true] %s310_s22 }
  0x16   : > { %s332_s25 = sshll.u32 %s5523_s24, 4  ;;  %s6318_s2 = sld [smem:[#allocation32_spill]]  ;;  %s5633_s25 = int_to_ptr.vmem [resolvable:$true] %s332_s25 }
  0x17   : > { %s6315_s20 = scalar_select %p5619_p3, 1, 0 }
  0x18   : > { %p5043_p4 = pneg %p5619_p3 }
  0x19   : > { %6316 = sst [smem:[#allocation28_spill]] %s6315_s20 }
  0x1a   : > { %p5627_p5 = pnand %p5043_p4, %p6304_p1 }
  0x1c   : > { %s5145_s28 = scalar_lea.hbm %s6318_s2, 131072  ;;  %p5643_p7 = pneg %p5627_p5 }
  0x1d   : > { %p5146_p6 = scmp.ne.s32.totalorder %s6318_s2, %s5145_s28  ;;  %p5152_p10 = scmp.lt.u32.totalorder %s5145_s28, %s6318_s2 }
  0x1f   : > { %p5148_p8 = pnand %p5643_p7, %p5146_p6 }
  0x21   : > { %p5149_p9 = pneg %p5148_p8 }
  0x23   : > { %p5154_p11 = pnand %p5152_p10, %p5149_p9 }
  0x25   : > { %5157 = shalt.err (!%p5154_p11)
}
  0x26   : > { %s5158_s21 = scalar_lea.vmem %s5617_s18, 131072  ;;  %p5166_p2 = scmp.lt.s32.totalorder %s5617_s18, %s5617_s18 }
  0x27   : > { %p5159_p12 = scmp.ne.s32.totalorder %s5617_s18, %s5158_s21  ;;  %p5167_p4 = scmp.lt.s32.totalorder %s5158_s21, %s5158_s21 }
  0x29   : > { %p5161_p13 = pnand %p5159_p12, %p5643_p7  ;;  %p5168_p6 = por %p5167_p4, %p5166_p2 }
  0x2b   : > { %p5162_p0 = pneg %p5161_p13 }
  0x2d   : > { %p5169_p8 = pnand %p5168_p6, %p5162_p0 }
  0x2f   : > { %5172 = shalt.err (!%p5169_p8)
}
  0x30   : > { %s6303_s24 = smov 1024   ;;  %s5525_s26 = smov 64  }
  0x31   : > { %5046 = dma.hbm_to_vmem [thread:$0]  (!%p5627_p5), %s6318_s2, 131072, %s5617_s18, [#allocation6], %s6303_s24, %s6303_s24, %s5525_s26  }
  0x32   : > { %s6320_s3 = sld [smem:[#allocation33_spill]] }
  0x38   : > { %s5173_s12 = scalar_lea.hbm %s6320_s3, 128 }
  0x39   : > { %p5174_p9 = scmp.ne.s32.totalorder %s6320_s3, %s5173_s12  ;;  %p5180_p12 = scmp.lt.u32.totalorder %s5173_s12, %s6320_s3 }
  0x3b   : > { %p5176_p10 = pnand %p5174_p9, %p5643_p7 }
  0x3d   : > { %p5177_p11 = pneg %p5176_p10 }
  0x3f   : > { %p5182_p13 = pnand %p5180_p12, %p5177_p11 }
  0x41   : > { %5185 = shalt.err (!%p5182_p13)
}
  0x42   : > { %s5186_s18 = scalar_lea.vmem %s5631_s22, 128  ;;  %p5194_p6 = scmp.lt.s32.totalorder %s5631_s22, %s5631_s22 }
  0x43   : > { %p5187_p0 = scmp.ne.s32.totalorder %s5631_s22, %s5186_s18  ;;  %p5195_p8 = scmp.lt.s32.totalorder %s5186_s18, %s5186_s18 }
  0x45   : > { %p5189_p2 = pnand %p5187_p0, %p5643_p7  ;;  %p5196_p9 = por %p5195_p8, %p5194_p6 }
  0x47   : > { %p5190_p4 = pneg %p5189_p2 }
  0x49   : > { %p5197_p10 = pnand %p5196_p9, %p5190_p4 }
  0x4b   : > { %5200 = shalt.err (!%p5197_p10)
}
  0x4c   : > { %5049 = dma.hbm_to_vmem [thread:$0]  (!%p5627_p5), %s6320_s3, 128, %s5631_s22, [#allocation9]  }
  0x4d   : > { %s5201_s29 = scalar_lea.hbm %s6295_s5, 128 }
  0x4e   : > { %p5202_p11 = scmp.ne.s32.totalorder %s6295_s5, %s5201_s29  ;;  %p5208_p0 = scmp.lt.u32.totalorder %s5201_s29, %s6295_s5 }
  0x50   : > { %p5204_p12 = pnand %p5202_p11, %p5643_p7 }
  0x52   : > { %p5205_p13 = pneg %p5204_p12 }
  0x54   : > { %p5210_p2 = pnand %p5208_p0, %p5205_p13 }
  0x56   : > { %5213 = shalt.err (!%p5210_p2)
}
  0x57   : > { %s5214_s22 = scalar_lea.vmem %s5633_s25, 128  ;;  %p5222_p9 = scmp.lt.s32.totalorder %s5633_s25, %s5633_s25 }
  0x58   : > { %p5215_p4 = scmp.ne.s32.totalorder %s5633_s25, %s5214_s22  ;;  %p5223_p10 = scmp.lt.s32.totalorder %s5214_s22, %s5214_s22 }
  0x5a   : > { %p5217_p6 = pnand %p5215_p4, %p5643_p7  ;;  %p5224_p11 = por %p5223_p10, %p5222_p9 }
  0x5c   : > { %p5218_p8 = pneg %p5217_p6 }
  0x5e   : > { %p5225_p12 = pnand %p5224_p11, %p5218_p8 }
  0x60   : > { %5228 = shalt.err (!%p5225_p12)
}
  0x61   : > { %5055 = dma.hbm_to_vmem [thread:$0]  (!%p5627_p5), %s6295_s5, 128, %s5633_s25, [#allocation12]  }
  0x62   : > { %s5526_s20 = smov [#allocation14]   ;;  %s5527_s28 = smov [#allocation10]  }
  0x63   : > { %s356_s27 = sshll.u32 %s5526_s20, 4  ;;  %s321_s29 = sshll.u32 %s5527_s28, 4  ;;  %s357_s27 = int_to_ptr.vmem [resolvable:$true] %s356_s27  ;;  %s322_s29 = int_to_ptr.vmem [resolvable:$true] %s321_s29 }
  0x64   : > { %s5229_s17 = scalar_lea.hbm %s6297_s7, 128 }
  0x65   : > { %p5230_p13 = scmp.ne.s32.totalorder %s6297_s7, %s5229_s17  ;;  %p5236_p4 = scmp.lt.u32.totalorder %s5229_s17, %s6297_s7 }
  0x67   : > { %p5232_p0 = pnand %p5230_p13, %p5643_p7 }
  0x69   : > { %p5233_p2 = pneg %p5232_p0 }
  0x6b   : > { %p5238_p6 = pnand %p5236_p4, %p5233_p2 }
  0x6d   : > { %5241 = shalt.err (!%p5238_p6)
}
  0x6e   : > { %s5242_s25 = scalar_lea.vmem %s357_s27, 128  ;;  %p5250_p11 = scmp.lt.s32.totalorder %s357_s27, %s357_s27 }
  0x6f   : > { %p5243_p8 = scmp.ne.s32.totalorder %s357_s27, %s5242_s25  ;;  %p5251_p12 = scmp.lt.s32.totalorder %s5242_s25, %s5242_s25 }
  0x71   : > { %p5245_p9 = pnand %p5243_p8, %p5643_p7  ;;  %p5252_p1 = por %p5251_p12, %p5250_p11 }
  0x73   : > { %p5246_p10 = pneg %p5245_p9 }
  0x75   : > { %p5253_p3 = pnand %p5252_p1, %p5246_p10 }
  0x77   : > { %5256 = shalt.err (!%p5253_p3)
}
  0x78   : > { %5061 = dma.hbm_to_vmem [thread:$0]  (!%p5627_p5), %s6297_s7, 128, %s357_s27, [#allocation15]  }
  0x79   : > { %s6321_s4 = sld [smem:[#allocation34_spill]] }
  0x7f   : > { %s5257_s30 = scalar_lea.hbm %s6321_s4, 128 }
  0x80   : > { %p5258_p13 = scmp.ne.s32.totalorder %s6321_s4, %s5257_s30  ;;  %p5264_p3 = scmp.lt.u32.totalorder %s5257_s30, %s6321_s4 }
  0x82   : > { %p5260_p0 = pnand %p5258_p13, %p5643_p7 }
  0x84   : > { %p5261_p1 = pneg %p5260_p0 }
  0x86   : > { %p5266_p2 = pnand %p5264_p3, %p5261_p1 }
  0x88   : > { %5269 = shalt.err (!%p5266_p2)
}
  0x89   : > { %s5270_s18 = scalar_lea.vmem %s322_s29, 128  ;;  %p5278_p9 = scmp.lt.s32.totalorder %s322_s29, %s322_s29 }
  0x8a   : > { %p5271_p4 = scmp.ne.s32.totalorder %s322_s29, %s5270_s18  ;;  %p5279_p10 = scmp.lt.s32.totalorder %s5270_s18, %s5270_s18 }
  0x8c   : > { %p5273_p6 = pnand %p5271_p4, %p5643_p7  ;;  %p5280_p11 = por %p5279_p10, %p5278_p9 }
  0x8e   : > { %p5274_p8 = pneg %p5273_p6 }
  0x90   : > { %p5281_p12 = pnand %p5280_p11, %p5274_p8 }
  0x92   : > { %5284 = shalt.err (!%p5281_p12)
}
  0x93   : > { %5052 = dma.hbm_to_vmem [thread:$0]  (!%p5627_p5), %s6321_s4, 128, %s322_s29, [#allocation9]  }
  0x94   : > { %s5528_s10 = smov [#allocation13]   ;;  %s5529_s24 = smov [#allocation16]  }
  0x95   : > { %s342_s20 = sshll.u32 %s5528_s10, 4  ;;  %s367_s28 = sshll.u32 %s5529_s24, 4  ;;  %s343_s20 = int_to_ptr.vmem [resolvable:$true] %s342_s20  ;;  %s368_s28 = int_to_ptr.vmem [resolvable:$true] %s367_s28 }
  0x96   : > { %s5285_s17 = scalar_lea.hbm %s6296_s6, 16384 }
  0x97   : > { %p5286_p13 = scmp.ne.s32.totalorder %s6296_s6, %s5285_s17  ;;  %p5292_p3 = scmp.lt.u32.totalorder %s5285_s17, %s6296_s6 }
  0x99   : > { %p5288_p0 = pnand %p5286_p13, %p5643_p7 }
  0x9b   : > { %p5289_p1 = pneg %p5288_p0 }
  0x9d   : > { %p5294_p2 = pnand %p5292_p3, %p5289_p1 }
  0x9f   : > { %5297 = shalt.err (!%p5294_p2)
}
  0xa0   : > { %s5298_s29 = scalar_lea.vmem %s343_s20, 16384  ;;  %p5306_p9 = scmp.lt.s32.totalorder %s343_s20, %s343_s20 }
  0xa1   : > { %p5299_p4 = scmp.ne.s32.totalorder %s343_s20, %s5298_s29  ;;  %p5307_p10 = scmp.lt.s32.totalorder %s5298_s29, %s5298_s29 }
  0xa3   : > { %p5301_p6 = pnand %p5299_p4, %p5643_p7  ;;  %p5308_p11 = por %p5307_p10, %p5306_p9 }
  0xa5   : > { %p5302_p8 = pneg %p5301_p6 }
  0xa7   : > { %p5309_p12 = pnand %p5308_p11, %p5302_p8 }
  0xa9   : > { %5312 = shalt.err (!%p5309_p12)
}
  0xaa   : > { %s6322_s25 = smov 1024   ;;  %s5313_s17 = scalar_lea.hbm %s6298_s8, 128 }
  0xab   : > { %5058 = dma.hbm_to_vmem [thread:$0]  (!%p5627_p5), %s6296_s6, 16384, %s343_s20, [#allocation12], %s6322_s25, %s6322_s25, %s5525_s26  }
  0xac   : > { %p5314_p13 = scmp.ne.s32.totalorder %s6298_s8, %s5313_s17  ;;  %p5320_p3 = scmp.lt.u32.totalorder %s5313_s17, %s6298_s8 }
  0xae   : > { %p5316_p0 = pnand %p5314_p13, %p5643_p7 }
  0xb0   : > { %p5317_p1 = pneg %p5316_p0 }
  0xb2   : > { %p5322_p2 = pnand %p5320_p3, %p5317_p1 }
  0xb4   : > { %5325 = shalt.err (!%p5322_p2)
}
  0xb5   : > { %s5326_s29 = scalar_lea.vmem %s368_s28, 128  ;;  %p5334_p9 = scmp.lt.s32.totalorder %s368_s28, %s368_s28 }
  0xb6   : > { %p5327_p4 = scmp.ne.s32.totalorder %s368_s28, %s5326_s29  ;;  %p5335_p10 = scmp.lt.s32.totalorder %s5326_s29, %s5326_s29 }
  0xb8   : > { %p5329_p6 = pnand %p5327_p4, %p5643_p7  ;;  %p5336_p11 = por %p5335_p10, %p5334_p9 }
  0xba   : > { %p5330_p8 = pneg %p5329_p6 }
  0xbc   : > { %p5337_p12 = pnand %p5336_p11, %p5330_p8 }
  0xbe   : > { %5340 = shalt.err (!%p5337_p12)
}
  0xbf   : > { %5064 = dma.hbm_to_vmem [thread:$0]  (!%p5627_p5), %s6298_s8, 128, %s368_s28, [#allocation15]  }
  0xc0   : > { %s5530_s25 = smov [#allocation17]   ;;  %s5341_s12 = scalar_lea.hbm %s6299_s9, 128 }
  0xc1   : > { %s378_s10 = sshll.u32 %s5530_s25, 4  ;;  %p5342_p13 = scmp.ne.s32.totalorder %s6299_s9, %s5341_s12  ;;  %s379_s10 = int_to_ptr.vmem [resolvable:$true] %s378_s10 }
  0xc2   : > { %p5348_p3 = scmp.lt.u32.totalorder %s5341_s12, %s6299_s9 }
  0xc3   : > { %p5344_p0 = pnand %p5342_p13, %p5643_p7 }
  0xc5   : > { %p5345_p1 = pneg %p5344_p0 }
  0xc7   : > { %p5350_p2 = pnand %p5348_p3, %p5345_p1 }
  0xc9   : > { %5353 = shalt.err (!%p5350_p2)
}
  0xca   : > { %s5354_s28 = scalar_lea.vmem %s379_s10, 128  ;;  %p5362_p9 = scmp.lt.s32.totalorder %s379_s10, %s379_s10 }
  0xcb   : > { %p5355_p4 = scmp.ne.s32.totalorder %s379_s10, %s5354_s28  ;;  %p5363_p10 = scmp.lt.s32.totalorder %s5354_s28, %s5354_s28 }
  0xcd   : > { %p5357_p6 = pnand %p5355_p4, %p5643_p7  ;;  %p5364_p11 = por %p5363_p10, %p5362_p9 }
  0xcf   : > { %p5358_p8 = pneg %p5357_p6 }
  0xd1   : > { %p5365_p12 = pnand %p5364_p11, %p5358_p8 }
  0xd3   : > { %5368 = shalt.err (!%p5365_p12)
}
  0xd4   : > { %5067 = dma.hbm_to_vmem [thread:$0]  (!%p5627_p5), %s6299_s9, 128, %s379_s10, [#allocation18]  }
  0xd5   : > { %s3786_s11 = sadd.s32 4294967294, %s5519_s16   ;;  %s5808_s23 = sadd.s32 1, %s5519_s16  }
  0xd6   : > { %s37_s26 = ssub.s32 %s5519_s16, %s5808_s23  ;;  %s40_s20 = sadd.s32 1, %s5515_s15 }
  0xd7   : > { %p38_p7 = scmp.eq.s32.totalorder %s37_s26, 0  ;;  %p47_p13 = scmp.ne.s32.totalorder %s5515_s15, %s5511_s14 }
  0xd8   : > { %p48_p0 = scmp.eq.s32.totalorder %s5519_s16, 0  ;;  %p53_p1 = scmp.ne.s32.totalorder %s5511_s14, %s5507_s13 }
  0xd9   : > { %s5819_s25 = scalar_select %p38_p7, %s5515_s15, %s40_s20  }
  0xda   : > { %p5821_p3 = por %p48_p0, %p47_p13  ;;  %p6324_p2 = scmp.eq.s32.totalorder %s5612_s19, 0 }
  0xdb   : > { %p271_p4 = scmp.eq.s32.totalorder %s5612_s19, 7  ;;  %p277_p6 = scmp.eq.s32.totalorder %s3786_s11, 7 }
  0xdc   : > { %p5827_p5 = por %p6324_p2, %p53_p1  ;;  %p5087_p8 = scmp.lt.s32.totalorder %s5519_s16, 8 }
  0xdd   : > { %s5834_s30 = sand.u32 1, %s5515_s15   ;;  %p5836_p9 = por %p271_p4, %p47_p13 }
  0xde   : > { %s6325_s10 = scalar_select %p5827_p5, 1, 0 }
  0xdf   : > { %s6326_s12 = scalar_select %p5836_p9, 1, 0 }
  0xe0   : > { %p5840_p10 = por %p277_p6, %p53_p1  ;;  %s3797_s21 = sshll.u32 %s5834_s30, 5 }
  0xe1   : > { %s3819_s22 = sshll.u32 %s5519_s16, 9  ;;  %s6328_s0 = sld [smem:[#allocation31_spill]] }
  0xe2   : > { %s6327_s17 = scalar_select %p5840_p10, 1, 0 }
  0xe3   : > { %s393_s29 = scalar_lea.vmem [#allocation2], %s3797_s21  ;;  %p5855_p11 = pnand %p5087_p8, %p5821_p3 }
  0xe4   : > { %s401_s11 = sshll.u32 %s393_s29, 4  ;;  %s3800_s2 = sshll.u32 %s5834_s30, 3  ;;  %s5851_s11 = int_to_ptr.vmem [resolvable:$true] %s401_s11 }
  0xe5   : > { %s390_s18 = scalar_lea.sflag [#allocation3], %s5834_s30  ;;  %p5371_p7 = pneg %p5855_p11 }
  0xe7   : > { %s5849_s27 = scalar_lea.hbm %s6328_s0, %s3819_s22  ;;  %s5374_s24 = scalar_lea.hbm %s6328_s0, 4096 }
  0xe8   : > { %s5369_s22 = scalar_lea.hbm %s5849_s27, 512  ;;  %p5375_p1 = scmp.lt.u32.totalorder %s5849_s27, %s6328_s0 }
  0xe9   : > { %p5370_p12 = scmp.ne.s32.totalorder %s5849_s27, %s5369_s22  ;;  %p5376_p3 = scmp.lt.u32.totalorder %s5374_s24, %s5369_s22 }
  0xea   : > { %p5378_p4 = scmp.lt.u32.totalorder %s5369_s22, %s5849_s27 }
  0xeb   : > { %p5372_p13 = pnand %p5371_p7, %p5370_p12  ;;  %p5377_p2 = por %p5376_p3, %p5375_p1 }
  0xed   : > { %p5373_p0 = pneg %p5372_p13  ;;  %p5379_p6 = por %p5378_p4, %p5377_p2 }
  0xef   : > { %p5380_p8 = pnand %p5379_p6, %p5373_p0 }
  0xf1   : > { %5383 = shalt.err (!%p5380_p8)
}
  0xf2   : > { %s5384_s20 = scalar_lea.vmem %s5851_s11, 512  ;;  %s5531_s21 = smov [#allocation2]  }
  0xf3   : > { %p5385_p12 = scmp.ne.s32.totalorder %s5851_s11, %s5384_s20  ;;  %s5389_s28 = sshll.u32 %s5531_s21, 4  ;;  %s5390_s28 = int_to_ptr.vmem [resolvable:$false] %s5389_s28 }
  0xf4   : > { %s5391_s3 = scalar_lea.vmem %s5390_s28, 1024  ;;  %p5392_p9 = scmp.lt.s32.totalorder %s5851_s11, %s5390_s28 }
  0xf5   : > { %p5387_p13 = pnand %p5385_p12, %p5371_p7  ;;  %p5393_p1 = scmp.lt.s32.totalorder %s5391_s3, %s5384_s20 }
  0xf7   : > { %p5388_p10 = pneg %p5387_p13  ;;  %p5394_p3 = por %p5393_p1, %p5392_p9 }
  0xf9   : > { %p5395_p2 = pnand %p5394_p3, %p5388_p10 }
  0xfb   : > { %5398 = shalt.err (!%p5395_p2)
}
  0xfc   : > { %5071 = dma.hbm_to_vmem [thread:$0]  (!%p5855_p11), %s5849_s27, 512, %s5851_s11, %s390_s18  }
  0xfd   : > { %s3801_s22 = sshll.u32 %s5519_s16, 7  ;;  %s412_s20 = scalar_lea.vmem [#allocation5], %s3800_s2 }
  0xfe   : > { %s5891_s21 = scalar_lea.hbm %s6291_s1, %s3801_s22  ;;  %s419_s28 = sshll.u32 %s412_s20, 4  ;;  %s420_s28 = int_to_ptr.vmem [resolvable:$true] %s419_s28 }
  0xff   : > { %s6330_s3 = sand.u32 1, %s5519_s16   ;;  %s5399_s4 = scalar_lea.hbm %s5891_s21, 128 }
 0x100   : > { %s409_s0 = scalar_lea.sflag [#allocation6], %s6330_s3  ;;  %p5400_p9 = scmp.ne.s32.totalorder %s5891_s21, %s5399_s4 }
 0x101   : > { %s5404_s18 = scalar_lea.hbm %s6291_s1, 1024  ;;  %p5405_p4 = scmp.lt.u32.totalorder %s5891_s21, %s6291_s1 }
 0x102   : > { %p5402_p10 = pnand %p5400_p9, %p5371_p7  ;;  %p5406_p6 = scmp.lt.u32.totalorder %s5404_s18, %s5399_s4 }
 0x103   : > { %p5408_p12 = scmp.lt.u32.totalorder %s5399_s4, %s5891_s21 }
 0x104   : > { %p5403_p0 = pneg %p5402_p10  ;;  %p5407_p8 = por %p5406_p6, %p5405_p4 }
 0x106   : > { %p5409_p13 = por %p5408_p12, %p5407_p8 }
 0x108   : > { %p5410_p1 = pnand %p5409_p13, %p5403_p0 }
 0x10a   : > { %5413 = shalt.err (!%p5410_p1)
}
 0x10b   : > { %s5414_s2 = scalar_lea.vmem %s420_s28, 128  ;;  %s5532_s24 = smov [#allocation5]  }
 0x10c   : > { %p5415_p3 = scmp.ne.s32.totalorder %s420_s28, %s5414_s2  ;;  %s5419_s29 = sshll.u32 %s5532_s24, 4  ;;  %s5420_s29 = int_to_ptr.vmem [resolvable:$false] %s5419_s29 }
 0x10d   : > { %s5421_s20 = scalar_lea.vmem %s5420_s29, 256  ;;  %p5422_p10 = scmp.lt.s32.totalorder %s420_s28, %s5420_s29 }
 0x10e   : > { %p5417_p2 = pnand %p5415_p3, %p5371_p7  ;;  %p5423_p5 = scmp.lt.s32.totalorder %s5421_s20, %s5414_s2 }
 0x110   : > { %p5418_p9 = pneg %p5417_p2  ;;  %p5424_p4 = por %p5423_p5, %p5422_p10 }
 0x112   : > { %p5425_p6 = pnand %p5424_p4, %p5418_p9 }
 0x114   : > { %5428 = shalt.err (!%p5425_p6)
}
 0x115   : > { %5074 = dma.hbm_to_vmem [thread:$0]  (!%p5855_p11), %s5891_s21, 128, %s420_s28, %s409_s0  }
 0x116   : > { %s6331_s4 = sld [smem:[#allocation28_spill]] }
 0x11c   : > { %p6332_p0 = scmp.ne.s32.totalorder %s6331_s4, 0 }
 0x11e   : > { %428 = sbr.rel (%p6332_p0) target bundleno = 1484 (0x5cc), region = 60 }
 0x125   : > { %s5919_s3 = sand.u32 1, %s5511_s14   ;;  %p6333_p5 = scmp.ne.s32.totalorder %s6325_s10, 0 }
 0x126   : > { %s3803_s27 = sshll.u32 %s5919_s3, 5  ;;  %s431_s11 = scalar_lea.sflag [#allocation3], %s5919_s3 }
 0x127   : > { %s5923_s18 = scalar_lea.vmem [#allocation2], %s3803_s27 }
 0x128   : > { %5474 = dma.done.wait (%p6333_p5), %s431_s11, 512  }
 0x129   : > { %5476 = vsyncadd (%p6333_p5), %s431_s11, 4294966784  ;;  %s439_s0 = sand.u32 1, %s5612_s19   ;;  %s3804_s26 = sshll.u32 %s5919_s3, 3 }
 0x12a   : > { %s440_s21 = scalar_lea.sflag [#allocation6], %s439_s0  ;;  %s5933_s28 = scalar_lea.vmem [#allocation5], %s3804_s26 }
 0x12b   : > { %5478 = dma.done.wait (%p6333_p5), %s440_s21, 128  }
 0x12c   : > { %5480 = vsyncadd (%p6333_p5), %s440_s21, 4294967168  ;;  %p6334_p11 = scmp.eq.s32.totalorder %s5612_s19, 0 }
 0x12e   : > { %5482 = dma.done.wait (%p6334_p11), [#allocation6], 131072   ;;  %p6335_p7 = pmov %p6334_p11 }
 0x130   : > { %5484 = vsyncadd (%p6335_p7), [#allocation6], 4294836224  ;;  %p6336_p8 = pmov %p6335_p7 }
 0x131   : > { %p6337_p12 = pmov %p6335_p7 }
 0x132   : > { %5486 = dma.done.wait (%p6336_p8), [#allocation9], 256  }
 0x133   : > { %5488 = vsyncadd (%p6337_p12), [#allocation9], 4294967040  ;;  %p6338_p13 = pmov %p6335_p7 }
 0x134   : > { %p6339_p1 = pmov %p6335_p7 }
 0x135   : > { %5490 = dma.done.wait (%p6338_p13), [#allocation12], 16512  }
 0x136   : > { %5492 = vsyncadd (%p6339_p1), [#allocation12], 4294950784  ;;  %p6340_p3 = pmov %p6339_p1 }
 0x137   : > { %p6341_p2 = pmov %p6339_p1 }
 0x138   : > { %5494 = dma.done.wait (%p6340_p3), [#allocation15], 256  }
 0x139   : > { %5496 = vsyncadd (%p6341_p2), [#allocation15], 4294967040  ;;  %p6342_p9 = pmov %p6339_p1 }
 0x13a   : > { %p6343_p10 = pmov %p6339_p1 }
 0x13b   : > { %5498 = dma.done.wait (%p6342_p9), [#allocation18], 128  }
 0x13c   : > { %5500 = vsyncadd (%p6343_p10), [#allocation18], 4294967168  ;;  %v531_v0 = vld [vmem:[#allocation7 + $0x8] sm:$0xff]  ;;  %v533_v2 = vld [vmem:[#allocation7 + $0x18] sm:$0xff]  ;;  %s3820_s10 = sshll.u32 %s5612_s19, 7  ;;  %s516_s30 = scalar_lea.vmem [#allocation19], %s3804_s26 }
 0x13d   : > { %v539_v1 = vld [vmem:[#allocation7 + $0x48] sm:$0xff]  ;;  %v541_v4 = vld [vmem:[#allocation7 + $0x58] sm:$0xff]  ;;  %v530_v5 = vld [vmem:[#allocation7] sm:$0xff]  ;;  %s3617_s22 = sshll.u32 %s516_s30, 4  ;;  %s6348_s29 = sld [smem:[#allocation35_spill]]  ;;  %s6249_s22 = int_to_ptr.vmem [resolvable:$true] %s3617_s22 }
 0x13e   : > { %v3821_v3 = vpack.c.bf16 %v539_v1, %v531_v0  ;;  %v538_v6 = vld [vmem:[#allocation7 + $0x40] sm:$0xff]  ;;  %v4077_v7 = vpack.c.bf16 %v541_v4, %v533_v2  ;;  %v532_v9 = vld [vmem:[#allocation7 + $0x10] sm:$0xff]  ;;  %v547_v11 = vld [vmem:[#allocation7 + $0x88] sm:$0xff]  ;;  %s3603_s4 = scalar_lea.sflag [#allocation4], %s5919_s3  ;;  %s5429_s27 = scalar_lea.vmem %s6249_s22, 128 }
 0x13f   : > { %v3823_v8 = vpack.c.bf16 %v538_v6, %v530_v5  ;;  %v540_v10 = vld [vmem:[#allocation7 + $0x50] sm:$0xff]  ;;  %v555_v13 = vld [vmem:[#allocation7 + $0xc8] sm:$0xff]  ;;  %v549_v14 = vld [vmem:[#allocation7 + $0x98] sm:$0xff]  ;;  %p5430_p4 = scmp.ne.s32.totalorder %s6249_s22, %s5429_s27  ;;  %p6349_p6 = scmp.ne.s32.totalorder %s6326_s12, 0 }
 0x140   : > { %3822 = vmatprep.subr.bf16.mxu0 %v3821_v3  ;;  %v4079_v12 = vpack.c.bf16 %v540_v10, %v532_v9  ;;  %v557_v15 = vld [vmem:[#allocation7 + $0xd8] sm:$0xff]  ;;  %4078 = vmatprep.subr.bf16.mxu1 %v4077_v7  ;;  %v3825_v16 = vpack.c.bf16 %v555_v13, %v547_v11  ;;  %v546_v18 = vld [vmem:[#allocation7 + $0x80] sm:$0xff]  ;;  %v548_v20 = vld [vmem:[#allocation7 + $0x90] sm:$0xff]  ;;  %s5535_s19 = smov [#allocation19]  }
 0x141   : > { %3824 = vmatpush1.bf16.msra.mxu0 %v3823_v8  ;;  %v4081_v17 = vpack.c.bf16 %v557_v15, %v549_v14  ;;  %v554_v19 = vld [vmem:[#allocation7 + $0xc0] sm:$0xff]  ;;  %v556_v22 = vld [vmem:[#allocation7 + $0xd0] sm:$0xff]  ;;  %v563_v23 = vld [vmem:[#allocation7 + $0x108] sm:$0xff]  ;;  %p5431_p0 = pnand %p5430_p4, %p6349_p6  ;;  %s5433_s11 = sshll.u32 %s5535_s19, 4  ;;  %s5434_s11 = int_to_ptr.vmem [resolvable:$false] %s5433_s11 }
 0x142   : > { %4080 = vmatpush1.bf16.msra.mxu1 %v4079_v12  ;;  %v3827_v21 = vpack.c.bf16 %v554_v19, %v546_v18  ;;  %v571_v24 = vld [vmem:[#allocation7 + $0x148] sm:$0xff]  ;;  %3826 = vmatprep.subr.bf16.mxu0 %v3825_v16  ;;  %v4083_v25 = vpack.c.bf16 %v556_v22, %v548_v20  ;;  %v565_v27 = vld [vmem:[#allocation7 + $0x118] sm:$0xff]  ;;  %v562_v29 = vld [vmem:[#allocation7 + $0x100] sm:$0xff]  ;;  %p5436_p11 = scmp.lt.s32.totalorder %s6249_s22, %s5434_s11 }
 0x143   : > { %4082 = vmatprep.subr.bf16.mxu1 %v4081_v17  ;;  %v3829_v26 = vpack.c.bf16 %v571_v24, %v563_v23  ;;  %v573_v28 = vld [vmem:[#allocation7 + $0x158] sm:$0xff]  ;;  %v570_v31 = vld [vmem:[#allocation7 + $0x140] sm:$0xff]  ;;  %v564_v32 = vld [vmem:[#allocation7 + $0x110] sm:$0xff]  ;;  %s6247_s20 = scalar_lea.hbm %s6348_s29, %s3820_s10  ;;  %p5432_p5 = pneg %p5431_p0 }
 0x144   : > { %v4085_v30 = vpack.c.bf16 %v573_v28, %v565_v27  ;;  %v572_v33 = vld [vmem:[#allocation7 + $0x150] sm:$0xff]  ;;  %v3831_v34 = vpack.c.bf16 %v570_v31, %v562_v29  ;;  %v579_v35 = vld [vmem:[#allocation7 + $0x188] sm:$0xff]  ;;  %v581_v37 = vld [vmem:[#allocation7 + $0x198] sm:$0xff] }
 0x145   : > { %3828 = vmatpush1.bf16.msra.mxu0 %v3827_v21  ;;  %v587_v36 = vld [vmem:[#allocation7 + $0x1c8] sm:$0xff]  ;;  %v4087_v38 = vpack.c.bf16 %v572_v33, %v564_v32  ;;  %v589_v40 = vld [vmem:[#allocation7 + $0x1d8] sm:$0xff]  ;;  %v578_v41 = vld [vmem:[#allocation7 + $0x180] sm:$0xff] }
 0x146   : > { %4084 = vmatpush1.bf16.msra.mxu1 %v4083_v25  ;;  %3830 = vmatprep.subr.bf16.mxu0 %v3829_v26  ;;  %v3833_v39 = vpack.c.bf16 %v587_v36, %v579_v35  ;;  %v586_v42 = vld [vmem:[#allocation7 + $0x1c0] sm:$0xff]  ;;  %v4089_v43 = vpack.c.bf16 %v589_v40, %v581_v37  ;;  %v580_v44 = vld [vmem:[#allocation7 + $0x190] sm:$0xff]  ;;  %v595_v46 = vld [vmem:[#allocation7 + $0x208] sm:$0xff] }
 0x147   : > { %4086 = vmatprep.subr.bf16.mxu1 %v4085_v30  ;;  %v588_v45 = vld [vmem:[#allocation7 + $0x1d0] sm:$0xff]  ;;  %v603_v47 = vld [vmem:[#allocation7 + $0x248] sm:$0xff]  ;;  %v597_v48 = vld [vmem:[#allocation7 + $0x218] sm:$0xff]  ;;  %v3835_v50 = vpack.c.bf16 %v586_v42, %v578_v41 }
 0x148   : > { %v605_v49 = vld [vmem:[#allocation7 + $0x258] sm:$0xff]  ;;  %v4091_v51 = vpack.c.bf16 %v588_v45, %v580_v44  ;;  %v3837_v52 = vpack.c.bf16 %v603_v47, %v595_v46  ;;  %v594_v53 = vld [vmem:[#allocation7 + $0x200] sm:$0xff]  ;;  %v596_v55 = vld [vmem:[#allocation7 + $0x210] sm:$0xff] }
 0x149   : > { %3832 = vmatpush1.bf16.msra.mxu0 %v3831_v34  ;;  %v602_v54 = vld [vmem:[#allocation7 + $0x240] sm:$0xff]  ;;  %v4093_v56 = vpack.c.bf16 %v605_v49, %v597_v48  ;;  %v604_v57 = vld [vmem:[#allocation7 + $0x250] sm:$0xff]  ;;  %v611_v58 = vld [vmem:[#allocation7 + $0x288] sm:$0xff] }
 0x14a   : > { %4088 = vmatpush1.bf16.msra.mxu1 %v4087_v38  ;;  %3834 = vmatprep.subr.bf16.mxu0 %v3833_v39  ;;  %v619_v59 = vld [vmem:[#allocation7 + $0x2c8] sm:$0xff]  ;;  %v613_v60 = vld [vmem:[#allocation7 + $0x298] sm:$0xff]  ;;  %v3839_v62 = vpack.c.bf16 %v602_v54, %v594_v53  ;;  %v4095_v63 = vpack.c.bf16 %v604_v57, %v596_v55  ;;  %v610_v1 = vld [vmem:[#allocation7 + $0x280] sm:$0xff] }
 0x14b   : > { %4090 = vmatprep.subr.bf16.mxu1 %v4089_v43  ;;  %v621_v61 = vld [vmem:[#allocation7 + $0x2d8] sm:$0xff]  ;;  %v3841_v0 = vpack.c.bf16 %v619_v59, %v611_v58  ;;  %v618_v2 = vld [vmem:[#allocation7 + $0x2c0] sm:$0xff]  ;;  %v612_v3 = vld [vmem:[#allocation7 + $0x290] sm:$0xff] }
 0x14c   : > { %v4097_v4 = vpack.c.bf16 %v621_v61, %v613_v60  ;;  %v620_v5 = vld [vmem:[#allocation7 + $0x2d0] sm:$0xff]  ;;  %v627_v6 = vld [vmem:[#allocation7 + $0x308] sm:$0xff]  ;;  %v629_v8 = vld [vmem:[#allocation7 + $0x318] sm:$0xff]  ;;  %v3843_v10 = vpack.c.bf16 %v618_v2, %v610_v1 }
 0x14d   : > { %3836 = vmatpush1.bf16.msra.mxu0 %v3835_v50  ;;  %v635_v7 = vld [vmem:[#allocation7 + $0x348] sm:$0xff]  ;;  %v637_v9 = vld [vmem:[#allocation7 + $0x358] sm:$0xff]  ;;  %v4099_v11 = vpack.c.bf16 %v620_v5, %v612_v3  ;;  %v626_v13 = vld [vmem:[#allocation7 + $0x300] sm:$0xff] }
 0x14e   : > { %4092 = vmatpush1.bf16.msra.mxu1 %v4091_v51  ;;  %3838 = vmatprep.subr.bf16.mxu0 %v3837_v52  ;;  %v3845_v12 = vpack.c.bf16 %v635_v7, %v627_v6  ;;  %v634_v14 = vld [vmem:[#allocation7 + $0x340] sm:$0xff]  ;;  %v628_v15 = vld [vmem:[#allocation7 + $0x310] sm:$0xff]  ;;  %v4101_v16 = vpack.c.bf16 %v637_v9, %v629_v8  ;;  %v643_v18 = vld [vmem:[#allocation7 + $0x388] sm:$0xff] }
 0x14f   : > { %4094 = vmatprep.subr.bf16.mxu1 %v4093_v56  ;;  %v636_v17 = vld [vmem:[#allocation7 + $0x350] sm:$0xff]  ;;  %v651_v19 = vld [vmem:[#allocation7 + $0x3c8] sm:$0xff]  ;;  %v645_v20 = vld [vmem:[#allocation7 + $0x398] sm:$0xff]  ;;  %v3847_v22 = vpack.c.bf16 %v634_v14, %v626_v13 }
 0x150   : > { %v653_v21 = vld [vmem:[#allocation7 + $0x3d8] sm:$0xff]  ;;  %v4103_v23 = vpack.c.bf16 %v636_v17, %v628_v15  ;;  %v3849_v24 = vpack.c.bf16 %v651_v19, %v643_v18  ;;  %v642_v25 = vld [vmem:[#allocation7 + $0x380] sm:$0xff]  ;;  %v644_v27 = vld [vmem:[#allocation7 + $0x390] sm:$0xff] }
 0x151   : > { %3840 = vmatpush1.bf16.msra.mxu0 %v3839_v62  ;;  %v650_v26 = vld [vmem:[#allocation7 + $0x3c0] sm:$0xff]  ;;  %v4105_v28 = vpack.c.bf16 %v653_v21, %v645_v20  ;;  %v652_v29 = vld [vmem:[#allocation7 + $0x3d0] sm:$0xff]  ;;  %v659_v30 = vld [vmem:[#allocation7 + $0x408] sm:$0xff] }
 0x152   : > { %4096 = vmatpush1.bf16.msra.mxu1 %v4095_v63  ;;  %3842 = vmatprep.subr.bf16.mxu0 %v3841_v0  ;;  %v667_v31 = vld [vmem:[#allocation7 + $0x448] sm:$0xff]  ;;  %v661_v32 = vld [vmem:[#allocation7 + $0x418] sm:$0xff]  ;;  %v3851_v34 = vpack.c.bf16 %v650_v26, %v642_v25  ;;  %v4107_v35 = vpack.c.bf16 %v652_v29, %v644_v27  ;;  %v658_v37 = vld [vmem:[#allocation7 + $0x400] sm:$0xff] }
 0x153   : > { %4098 = vmatprep.subr.bf16.mxu1 %v4097_v4  ;;  %v669_v33 = vld [vmem:[#allocation7 + $0x458] sm:$0xff]  ;;  %v3853_v36 = vpack.c.bf16 %v667_v31, %v659_v30  ;;  %v666_v38 = vld [vmem:[#allocation7 + $0x440] sm:$0xff]  ;;  %v660_v39 = vld [vmem:[#allocation7 + $0x410] sm:$0xff] }
 0x154   : > { %v4109_v40 = vpack.c.bf16 %v669_v33, %v661_v32  ;;  %v668_v41 = vld [vmem:[#allocation7 + $0x450] sm:$0xff]  ;;  %v675_v42 = vld [vmem:[#allocation7 + $0x488] sm:$0xff]  ;;  %v677_v44 = vld [vmem:[#allocation7 + $0x498] sm:$0xff]  ;;  %v3855_v46 = vpack.c.bf16 %v666_v38, %v658_v37 }
 0x155   : > { %3844 = vmatpush1.bf16.msra.mxu0 %v3843_v10  ;;  %v683_v43 = vld [vmem:[#allocation7 + $0x4c8] sm:$0xff]  ;;  %v685_v45 = vld [vmem:[#allocation7 + $0x4d8] sm:$0xff]  ;;  %v4111_v47 = vpack.c.bf16 %v668_v41, %v660_v39  ;;  %v674_v49 = vld [vmem:[#allocation7 + $0x480] sm:$0xff] }
 0x156   : > { %4100 = vmatpush1.bf16.msra.mxu1 %v4099_v11  ;;  %3846 = vmatprep.subr.bf16.mxu0 %v3845_v12  ;;  %v3857_v48 = vpack.c.bf16 %v683_v43, %v675_v42  ;;  %v682_v50 = vld [vmem:[#allocation7 + $0x4c0] sm:$0xff]  ;;  %v676_v51 = vld [vmem:[#allocation7 + $0x490] sm:$0xff]  ;;  %v4113_v52 = vpack.c.bf16 %v685_v45, %v677_v44  ;;  %v691_v54 = vld [vmem:[#allocation7 + $0x508] sm:$0xff] }
 0x157   : > { %4102 = vmatprep.subr.bf16.mxu1 %v4101_v16  ;;  %v684_v53 = vld [vmem:[#allocation7 + $0x4d0] sm:$0xff]  ;;  %v699_v55 = vld [vmem:[#allocation7 + $0x548] sm:$0xff]  ;;  %v693_v56 = vld [vmem:[#allocation7 + $0x518] sm:$0xff]  ;;  %v3859_v58 = vpack.c.bf16 %v682_v50, %v674_v49 }
 0x158   : > { %v701_v57 = vld [vmem:[#allocation7 + $0x558] sm:$0xff]  ;;  %v4115_v59 = vpack.c.bf16 %v684_v53, %v676_v51  ;;  %v3861_v60 = vpack.c.bf16 %v699_v55, %v691_v54  ;;  %v690_v61 = vld [vmem:[#allocation7 + $0x500] sm:$0xff]  ;;  %v692_v63 = vld [vmem:[#allocation7 + $0x510] sm:$0xff] }
 0x159   : > { %3848 = vmatpush1.bf16.msra.mxu0 %v3847_v22  ;;  %v698_v62 = vld [vmem:[#allocation7 + $0x540] sm:$0xff]  ;;  %v4117_v0 = vpack.c.bf16 %v701_v57, %v693_v56  ;;  %v700_v1 = vld [vmem:[#allocation7 + $0x550] sm:$0xff]  ;;  %v707_v2 = vld [vmem:[#allocation7 + $0x588] sm:$0xff] }
 0x15a   : > { %4104 = vmatpush1.bf16.msra.mxu1 %v4103_v23  ;;  %3850 = vmatprep.subr.bf16.mxu0 %v3849_v24  ;;  %v715_v3 = vld [vmem:[#allocation7 + $0x5c8] sm:$0xff]  ;;  %v709_v4 = vld [vmem:[#allocation7 + $0x598] sm:$0xff]  ;;  %v3863_v6 = vpack.c.bf16 %v698_v62, %v690_v61  ;;  %v706_v7 = vld [vmem:[#allocation7 + $0x580] sm:$0xff]  ;;  %v4119_v8 = vpack.c.bf16 %v700_v1, %v692_v63 }
 0x15b   : > { %4106 = vmatprep.subr.bf16.mxu1 %v4105_v28  ;;  %v717_v5 = vld [vmem:[#allocation7 + $0x5d8] sm:$0xff]  ;;  %v3865_v9 = vpack.c.bf16 %v715_v3, %v707_v2  ;;  %v714_v10 = vld [vmem:[#allocation7 + $0x5c0] sm:$0xff]  ;;  %v708_v11 = vld [vmem:[#allocation7 + $0x590] sm:$0xff] }
 0x15c   : > { %v716_v12 = vld [vmem:[#allocation7 + $0x5d0] sm:$0xff]  ;;  %v4121_v13 = vpack.c.bf16 %v717_v5, %v709_v4  ;;  %v723_v14 = vld [vmem:[#allocation7 + $0x608] sm:$0xff]  ;;  %v725_v17 = vld [vmem:[#allocation7 + $0x618] sm:$0xff]  ;;  %v3867_v20 = vpack.c.bf16 %v714_v10, %v706_v7 }
 0x15d   : > { %3852 = vmatpush1.bf16.msra.mxu0 %v3851_v34  ;;  %v731_v15 = vld [vmem:[#allocation7 + $0x648] sm:$0xff]  ;;  %v5960_v16 = vld [vmem:[%s5923_s18] sm:$0xff]  ;;  %v733_v18 = vld [vmem:[#allocation7 + $0x658] sm:$0xff]  ;;  %v4123_v21 = vpack.c.bf16 %v716_v12, %v708_v11 }
 0x15e   : > { %4108 = vmatpush1.bf16.msra.mxu1 %v4107_v35  ;;  %3854 = vmatprep.subr.bf16.mxu0 %v3853_v36  ;;  %v5963_v19 = vunpack.c.h.bf16 %v5960_v16  ;;  %v3869_v22 = vpack.c.bf16 %v731_v15, %v723_v14  ;;  %v722_v23 = vld [vmem:[#allocation7 + $0x600] sm:$0xff]  ;;  %v724_v25 = vld [vmem:[#allocation7 + $0x610] sm:$0xff]  ;;  %v4125_v26 = vpack.c.bf16 %v733_v18, %v725_v17  ;;  %v739_v28 = vld [vmem:[#allocation7 + $0x688] sm:$0xff]  ;;  %v5968_v14 = vunpack.c.l.bf16 %v5960_v16 }
 0x15f   : > { %4110 = vmatprep.subr.bf16.mxu1 %v4109_v40  ;;  %v730_v24 = vld [vmem:[#allocation7 + $0x640] sm:$0xff]  ;;  %v732_v27 = vld [vmem:[#allocation7 + $0x650] sm:$0xff]  ;;  %v747_v29 = vld [vmem:[#allocation7 + $0x6c8] sm:$0xff] }
 0x160   : > { %1660 = vmatprep.mubr.f32.mxu0 %v5963_v19  ;;  %v741_v30 = vld [vmem:[#allocation7 + $0x698] sm:$0xff]  ;;  %1944 = vmatprep.mubr.f32.mxu1 %v5963_v19  ;;  %v3871_v32 = vpack.c.bf16 %v730_v24, %v722_v23  ;;  %v4127_v33 = vpack.c.bf16 %v732_v27, %v724_v25  ;;  %v3873_v34 = vpack.c.bf16 %v747_v29, %v739_v28  ;;  %v738_v35 = vld [vmem:[#allocation7 + $0x680] sm:$0xff]  ;;  %v740_v37 = vld [vmem:[#allocation7 + $0x690] sm:$0xff] }
 0x161   : > { %3856 = vmatpush1.bf16.msra.mxu0 %v3855_v46  ;;  %v749_v31 = vld [vmem:[#allocation7 + $0x6d8] sm:$0xff]  ;;  %v746_v36 = vld [vmem:[#allocation7 + $0x6c0] sm:$0xff]  ;;  %v748_v39 = vld [vmem:[#allocation7 + $0x6d0] sm:$0xff] }
 0x162   : > { %4112 = vmatpush1.bf16.msra.mxu1 %v4111_v47  ;;  %3858 = vmatprep.subr.bf16.mxu0 %v3857_v48  ;;  %v4129_v38 = vpack.c.bf16 %v749_v31, %v741_v30  ;;  %v755_v40 = vld [vmem:[#allocation7 + $0x708] sm:$0xff]  ;;  %v757_v42 = vld [vmem:[#allocation7 + $0x718] sm:$0xff]  ;;  %v3875_v44 = vpack.c.bf16 %v746_v36, %v738_v35  ;;  %v4131_v45 = vpack.c.bf16 %v748_v39, %v740_v37  ;;  %v754_v47 = vld [vmem:[#allocation7 + $0x700] sm:$0xff] }
 0x163   : > { %4114 = vmatprep.subr.bf16.mxu1 %v4113_v52  ;;  %v763_v41 = vld [vmem:[#allocation7 + $0x748] sm:$0xff]  ;;  %v765_v43 = vld [vmem:[#allocation7 + $0x758] sm:$0xff]  ;;  %v762_v48 = vld [vmem:[#allocation7 + $0x740] sm:$0xff] }
 0x164   : > { %v3877_v46 = vpack.c.bf16 %v763_v41, %v755_v40  ;;  %v756_v49 = vld [vmem:[#allocation7 + $0x710] sm:$0xff]  ;;  %v4133_v50 = vpack.c.bf16 %v765_v43, %v757_v42  ;;  %v771_v52 = vld [vmem:[#allocation7 + $0x788] sm:$0xff]  ;;  %v773_v54 = vld [vmem:[#allocation7 + $0x798] sm:$0xff]  ;;  %v3879_v56 = vpack.c.bf16 %v762_v48, %v754_v47 }
 0x165   : > { %3860 = vmatpush1.bf16.msra.mxu0 %v3859_v58  ;;  %v764_v51 = vld [vmem:[#allocation7 + $0x750] sm:$0xff]  ;;  %v779_v53 = vld [vmem:[#allocation7 + $0x7c8] sm:$0xff]  ;;  %v781_v55 = vld [vmem:[#allocation7 + $0x7d8] sm:$0xff] }
 0x166   : > { %4116 = vmatpush1.bf16.msra.mxu1 %v4115_v59  ;;  %3862 = vmatprep.subr.bf16.mxu0 %v3861_v60  ;;  %v4135_v57 = vpack.c.bf16 %v764_v51, %v756_v49  ;;  %v3881_v58 = vpack.c.bf16 %v779_v53, %v771_v52  ;;  %v770_v59 = vld [vmem:[#allocation7 + $0x780] sm:$0xff]  ;;  %v772_v61 = vld [vmem:[#allocation7 + $0x790] sm:$0xff]  ;;  %v4137_v62 = vpack.c.bf16 %v781_v55, %v773_v54  ;;  %v795_v1 = vld [vmem:[#allocation7 + $0x848] sm:$0xff] }
 0x167   : > { %4118 = vmatprep.subr.bf16.mxu1 %v4117_v0  ;;  %v778_v60 = vld [vmem:[#allocation7 + $0x7c0] sm:$0xff]  ;;  %v780_v63 = vld [vmem:[#allocation7 + $0x7d0] sm:$0xff]  ;;  %v787_v0 = vld [vmem:[#allocation7 + $0x808] sm:$0xff] }
 0x168   : > { %v789_v2 = vld [vmem:[#allocation7 + $0x818] sm:$0xff]  ;;  %v3883_v4 = vpack.c.bf16 %v778_v60, %v770_v59  ;;  %v4139_v5 = vpack.c.bf16 %v780_v63, %v772_v61  ;;  %v786_v7 = vld [vmem:[#allocation7 + $0x800] sm:$0xff]  ;;  %v796_v11 = vld [vmem:[#allocation7 + $0x850] sm:$0xff] }
 0x169   : > { %3864 = vmatpush1.bf16.msra.mxu0 %v3863_v6  ;;  %v797_v3 = vld [vmem:[#allocation7 + $0x858] sm:$0xff]  ;;  %v3885_v6 = vpack.c.bf16 %v795_v1, %v787_v0  ;;  %v803_v12 = vld [vmem:[#allocation7 + $0x888] sm:$0xff]  ;;  %v810_v23 = vld [vmem:[#allocation7 + $0x8c0] sm:$0xff] }
 0x16a   : > { %4120 = vmatpush1.bf16.msra.mxu1 %v4119_v8  ;;  %3866 = vmatprep.subr.bf16.mxu0 %v3865_v9  ;;  %v794_v8 = vld [vmem:[#allocation7 + $0x840] sm:$0xff]  ;;  %v788_v9 = vld [vmem:[#allocation7 + $0x810] sm:$0xff]  ;;  %v4141_v10 = vpack.c.bf16 %v797_v3, %v789_v2  ;;  %v805_v15 = vld [vmem:[#allocation7 + $0x898] sm:$0xff] }
 0x16b   : > { %4122 = vmatprep.subr.bf16.mxu1 %v4121_v13  ;;  %v811_v13 = vld [vmem:[#allocation7 + $0x8c8] sm:$0xff]  ;;  %v813_v17 = vld [vmem:[#allocation7 + $0x8d8] sm:$0xff]  ;;  %v3887_v18 = vpack.c.bf16 %v794_v8, %v786_v7  ;;  %v804_v24 = vld [vmem:[#allocation7 + $0x890] sm:$0xff] }
 0x16c   : > { %v4145_v25 = vpack.c.bf16 %v813_v17, %v805_v15  ;;  %v819_v27 = vld [vmem:[#allocation7 + $0x908] sm:$0xff]  ;;  %v821_v16 = vld [vmem:[#allocation7 + $0x918] sm:$0xff]  ;;  %v820_v35 = vld [vmem:[#allocation7 + $0x910] sm:$0xff] }
 0x16d   : > { %3868 = vmatpush1.bf16.msra.mxu0 %v3867_v20  ;;  %v4143_v20 = vpack.c.bf16 %v796_v11, %v788_v9  ;;  %v827_v28 = vld [vmem:[#allocation7 + $0x948] sm:$0xff]  ;;  %v829_v29 = vld [vmem:[#allocation7 + $0x958] sm:$0xff]  ;;  %v828_v37 = vld [vmem:[#allocation7 + $0x950] sm:$0xff] }
 0x16e   : > { %4124 = vmatpush1.bf16.msra.mxu1 %v4123_v21  ;;  %3870 = vmatprep.subr.bf16.mxu0 %v3869_v22  ;;  %v3889_v21 = vpack.c.bf16 %v811_v13, %v803_v12  ;;  %v802_v22 = vld [vmem:[#allocation7 + $0x880] sm:$0xff]  ;;  %v4149_v36 = vpack.c.bf16 %v829_v29, %v821_v16  ;;  %v843_v39 = vld [vmem:[#allocation7 + $0x9c8] sm:$0xff]  ;;  %v837_v40 = vld [vmem:[#allocation7 + $0x998] sm:$0xff]  ;;  %v4151_v43 = vpack.c.bf16 %v828_v37, %v820_v35 }
 0x16f   : > { %4126 = vmatprep.subr.bf16.mxu1 %v4125_v26  ;;  %v812_v26 = vld [vmem:[#allocation7 + $0x8d0] sm:$0xff]  ;;  %v3891_v30 = vpack.c.bf16 %v810_v23, %v802_v22  ;;  %v845_v41 = vld [vmem:[#allocation7 + $0x9d8] sm:$0xff]  ;;  %v859_v51 = vld [vmem:[#allocation7 + $0xa48] sm:$0xff] }
 0x170   : > { %v4147_v31 = vpack.c.bf16 %v812_v26, %v804_v24  ;;  %v836_v47 = vld [vmem:[#allocation7 + $0x990] sm:$0xff]  ;;  %v4153_v48 = vpack.c.bf16 %v845_v41, %v837_v40  ;;  %v853_v52 = vld [vmem:[#allocation7 + $0xa18] sm:$0xff]  ;;  %v875_v63 = vld [vmem:[#allocation7 + $0xac8] sm:$0xff] }
 0x171   : > { %3872 = vmatpush1.bf16.msra.mxu0 %v3871_v32  ;;  %v3893_v32 = vpack.c.bf16 %v827_v28, %v819_v27  ;;  %v844_v49 = vld [vmem:[#allocation7 + $0x9d0] sm:$0xff]  ;;  %v861_v53 = vld [vmem:[#allocation7 + $0xa58] sm:$0xff]  ;;  %v891_v11 = vld [vmem:[#allocation7 + $0xb48] sm:$0xff] }
 0x172   : > { %4128 = vmatpush1.bf16.msra.mxu1 %v4127_v33  ;;  %3874 = vmatprep.subr.bf16.mxu0 %v3873_v34  ;;  %v818_v33 = vld [vmem:[#allocation7 + $0x900] sm:$0xff]  ;;  %v4155_v55 = vpack.c.bf16 %v844_v49, %v836_v47  ;;  %v852_v59 = vld [vmem:[#allocation7 + $0xa10] sm:$0xff]  ;;  %v4157_v60 = vpack.c.bf16 %v861_v53, %v853_v52  ;;  %v869_v0 = vld [vmem:[#allocation7 + $0xa98] sm:$0xff] }
 0x173   : > { %4130 = vmatprep.subr.bf16.mxu1 %v4129_v38  ;;  %v826_v34 = vld [vmem:[#allocation7 + $0x940] sm:$0xff]  ;;  %v835_v38 = vld [vmem:[#allocation7 + $0x988] sm:$0xff]  ;;  %v860_v61 = vld [vmem:[#allocation7 + $0xa50] sm:$0xff] }
 0x174   : > { %v3895_v42 = vpack.c.bf16 %v826_v34, %v818_v33  ;;  %v877_v1 = vld [vmem:[#allocation7 + $0xad8] sm:$0xff]  ;;  %v4159_v3 = vpack.c.bf16 %v860_v61, %v852_v59  ;;  %v868_v7 = vld [vmem:[#allocation7 + $0xa90] sm:$0xff]  ;;  %v882_v17 = vld [vmem:[#allocation7 + $0xb00] sm:$0xff] }
 0x175   : > { %3876 = vmatpush1.bf16.msra.mxu0 %v3875_v44  ;;  %v3897_v44 = vpack.c.bf16 %v843_v39, %v835_v38  ;;  %v4161_v8 = vpack.c.bf16 %v877_v1, %v869_v0  ;;  %v876_v9 = vld [vmem:[#allocation7 + $0xad0] sm:$0xff]  ;;  %v885_v12 = vld [vmem:[#allocation7 + $0xb18] sm:$0xff]  ;;  %v899_v26 = vld [vmem:[#allocation7 + $0xb88] sm:$0xff] }
 0x176   : > { %4132 = vmatpush1.bf16.msra.mxu1 %v4131_v45  ;;  %3878 = vmatprep.subr.bf16.mxu0 %v3877_v46  ;;  %v834_v45 = vld [vmem:[#allocation7 + $0x980] sm:$0xff]  ;;  %v893_v13 = vld [vmem:[#allocation7 + $0xb58] sm:$0xff]  ;;  %v884_v22 = vld [vmem:[#allocation7 + $0xb10] sm:$0xff] }
 0x177   : > { %4134 = vmatprep.subr.bf16.mxu1 %v4133_v50  ;;  %v842_v46 = vld [vmem:[#allocation7 + $0x9c0] sm:$0xff]  ;;  %v851_v50 = vld [vmem:[#allocation7 + $0xa08] sm:$0xff]  ;;  %v5973_v23 = vld [vmem:[%s5923_s18 + $0x8] sm:$0xff]  ;;  %v4165_v24 = vpack.c.bf16 %v893_v13, %v885_v12 }
 0x178   : > { %v3899_v54 = vpack.c.bf16 %v842_v46, %v834_v45  ;;  %v907_v27 = vld [vmem:[#allocation7 + $0xbc8] sm:$0xff]  ;;  %v5976_v28 = vunpack.c.h.bf16 %v5973_v23  ;;  %v901_v16 = vld [vmem:[#allocation7 + $0xb98] sm:$0xff]  ;;  %v898_v33 = vld [vmem:[#allocation7 + $0xb80] sm:$0xff] }
 0x179   : > { %3880 = vmatpush1.bf16.msra.mxu0 %v3879_v56  ;;  %v3901_v56 = vpack.c.bf16 %v859_v51, %v851_v50  ;;  %v909_v29 = vld [vmem:[#allocation7 + $0xbd8] sm:$0xff]  ;;  %v906_v34 = vld [vmem:[#allocation7 + $0xbc0] sm:$0xff]  ;;  %v900_v35 = vld [vmem:[#allocation7 + $0xb90] sm:$0xff] }
 0x17a   : > { %4136 = vmatpush1.bf16.msra.mxu1 %v4135_v57  ;;  %3882 = vmatprep.subr.bf16.mxu0 %v3881_v58  ;;  %v850_v57 = vld [vmem:[#allocation7 + $0xa00] sm:$0xff]  ;;  %v908_v37 = vld [vmem:[#allocation7 + $0xbd0] sm:$0xff]  ;;  %v915_v38 = vld [vmem:[#allocation7 + $0xc08] sm:$0xff] }
 0x17b   : > { %4138 = vmatprep.subr.bf16.mxu1 %v4137_v62  ;;  %v858_v58 = vld [vmem:[#allocation7 + $0xa40] sm:$0xff]  ;;  %v867_v62 = vld [vmem:[#allocation7 + $0xa88] sm:$0xff]  ;;  %v917_v40 = vld [vmem:[#allocation7 + $0xc18] sm:$0xff] }
 0x17c   : > { %v3903_v2 = vpack.c.bf16 %v858_v58, %v850_v57  ;;  %v923_v39 = vld [vmem:[#allocation7 + $0xc48] sm:$0xff]  ;;  %v925_v41 = vld [vmem:[#allocation7 + $0xc58] sm:$0xff]  ;;  %v914_v45 = vld [vmem:[#allocation7 + $0xc00] sm:$0xff] }
 0x17d   : > { %3884 = vmatpush1.bf16.msra.mxu0 %v3883_v4  ;;  %v3905_v4 = vpack.c.bf16 %v875_v63, %v867_v62  ;;  %v922_v46 = vld [vmem:[#allocation7 + $0xc40] sm:$0xff]  ;;  %v916_v47 = vld [vmem:[#allocation7 + $0xc10] sm:$0xff]  ;;  %v931_v50 = vld [vmem:[#allocation7 + $0xc88] sm:$0xff] }
 0x17e   : > { %4140 = vmatpush1.bf16.msra.mxu1 %v4139_v5  ;;  %3886 = vmatprep.subr.bf16.mxu0 %v3885_v6  ;;  %v866_v5 = vld [vmem:[#allocation7 + $0xa80] sm:$0xff]  ;;  %v924_v49 = vld [vmem:[#allocation7 + $0xc50] sm:$0xff]  ;;  %v939_v51 = vld [vmem:[#allocation7 + $0xcc8] sm:$0xff] }
 0x17f   : > { %4142 = vmatprep.subr.bf16.mxu1 %v4141_v10  ;;  %v874_v6 = vld [vmem:[#allocation7 + $0xac0] sm:$0xff]  ;;  %v883_v10 = vld [vmem:[#allocation7 + $0xb08] sm:$0xff]  ;;  %v933_v52 = vld [vmem:[#allocation7 + $0xc98] sm:$0xff] }
 0x180   : > { %1661 = vmatmul.mubr.f32.vlgmr.msra.gmra.mrb[0].mxu0 %v5968_v14  ;;  %v3907_v15 = vpack.c.bf16 %v874_v6, %v866_v5  ;;  %v941_v53 = vld [vmem:[#allocation7 + $0xcd8] sm:$0xff]  ;;  %v930_v57 = vld [vmem:[#allocation7 + $0xc80] sm:$0xff]  ;;  %v932_v59 = vld [vmem:[#allocation7 + $0xc90] sm:$0xff] }
 0x181   : > { %3888 = vmatpush1.bf16.msra.mxu0 %v3887_v18  ;;  %1945 = vmatmul.mubr.f32.vlgmr.msra.gmra.mrb[0].mxu1 %v5968_v14  ;;  %v4163_v18 = vpack.c.bf16 %v876_v9, %v868_v7  ;;  %v938_v58 = vld [vmem:[#allocation7 + $0xcc0] sm:$0xff]  ;;  %v940_v61 = vld [vmem:[#allocation7 + $0xcd0] sm:$0xff]  ;;  %v947_v62 = vld [vmem:[#allocation7 + $0xd08] sm:$0xff] }
 0x182   : > { %4144 = vmatpush1.bf16.msra.mxu1 %v4143_v20  ;;  %3890 = vmatprep.subr.bf16.mxu0 %v3889_v21  ;;  %v3909_v20 = vpack.c.bf16 %v891_v11, %v883_v10  ;;  %v890_v21 = vld [vmem:[#allocation7 + $0xb40] sm:$0xff]  ;;  %v955_v63 = vld [vmem:[#allocation7 + $0xd48] sm:$0xff]  ;;  %v949_v0 = vld [vmem:[#allocation7 + $0xd18] sm:$0xff] }
 0x183   : > { %4146 = vmatprep.subr.bf16.mxu1 %v4145_v25  ;;  %v892_v25 = vld [vmem:[#allocation7 + $0xb50] sm:$0xff]  ;;  %1731 = vmatprep.mubr.f32.mxu0 %v5976_v28  ;;  %v957_v1 = vld [vmem:[#allocation7 + $0xd58] sm:$0xff]  ;;  %v946_v5 = vld [vmem:[#allocation7 + $0xd00] sm:$0xff] }
 0x184   : > { %2015 = vmatprep.mubr.f32.mxu1 %v5976_v28  ;;  %v954_v6 = vld [vmem:[#allocation7 + $0xd40] sm:$0xff]  ;;  %v948_v7 = vld [vmem:[#allocation7 + $0xd10] sm:$0xff]  ;;  %v963_v10 = vld [vmem:[#allocation7 + $0xd88] sm:$0xff] }
 0x185   : > { %3892 = vmatpush1.bf16.msra.mxu0 %v3891_v30  ;;  %v3911_v30 = vpack.c.bf16 %v890_v21, %v882_v17  ;;  %v956_v9 = vld [vmem:[#allocation7 + $0xd50] sm:$0xff]  ;;  %v971_v11 = vld [vmem:[#allocation7 + $0xdc8] sm:$0xff]  ;;  %v965_v12 = vld [vmem:[#allocation7 + $0xd98] sm:$0xff] }
 0x186   : > { %4148 = vmatpush1.bf16.msra.mxu1 %v4147_v31  ;;  %3894 = vmatprep.subr.bf16.mxu0 %v3893_v32  ;;  %v4167_v31 = vpack.c.bf16 %v892_v25, %v884_v22  ;;  %v3913_v32 = vpack.c.bf16 %v907_v27, %v899_v26  ;;  %v973_v13 = vld [vmem:[#allocation7 + $0xdd8] sm:$0xff]  ;;  %v4183_v17 = vpack.c.bf16 %v956_v9, %v948_v7  ;;  %v970_v21 = vld [vmem:[#allocation7 + $0xdc0] sm:$0xff]  ;;  %v964_v22 = vld [vmem:[#allocation7 + $0xd90] sm:$0xff] }
 0x187   : > { %4150 = vmatprep.subr.bf16.mxu1 %v4149_v36  ;;  %v4169_v36 = vpack.c.bf16 %v909_v29, %v901_v16  ;;  %v972_v25 = vld [vmem:[#allocation7 + $0xdd0] sm:$0xff]  ;;  %v979_v26 = vld [vmem:[#allocation7 + $0xe08] sm:$0xff]  ;;  %v981_v16 = vld [vmem:[#allocation7 + $0xe18] sm:$0xff] }
 0x188   : > { %v987_v27 = vld [vmem:[#allocation7 + $0xe48] sm:$0xff]  ;;  %v989_v29 = vld [vmem:[#allocation7 + $0xe58] sm:$0xff]  ;;  %v1028_v7 = vld [vmem:[#allocation7 + $0xf90] sm:$0xff] }
 0x189   : > { %3896 = vmatpush1.bf16.msra.mxu0 %v3895_v42  ;;  %v3915_v42 = vpack.c.bf16 %v906_v34, %v898_v33  ;;  %v978_v33 = vld [vmem:[#allocation7 + $0xe00] sm:$0xff]  ;;  %v1036_v9 = vld [vmem:[#allocation7 + $0xfd0] sm:$0xff] }
 0x18a   : > { %4152 = vmatpush1.bf16.msra.mxu1 %v4151_v43  ;;  %3898 = vmatprep.subr.bf16.mxu0 %v3897_v44  ;;  %v4171_v43 = vpack.c.bf16 %v908_v37, %v900_v35  ;;  %v3917_v44 = vpack.c.bf16 %v923_v39, %v915_v38  ;;  %v986_v34 = vld [vmem:[#allocation7 + $0xe40] sm:$0xff]  ;;  %v980_v35 = vld [vmem:[#allocation7 + $0xe10] sm:$0xff]  ;;  %v995_v38 = vld [vmem:[#allocation7 + $0xe88] sm:$0xff] }
 0x18b   : > { %4154 = vmatprep.subr.bf16.mxu1 %v4153_v48  ;;  %v4173_v48 = vpack.c.bf16 %v925_v41, %v917_v40  ;;  %v988_v37 = vld [vmem:[#allocation7 + $0xe50] sm:$0xff]  ;;  %v1003_v39 = vld [vmem:[#allocation7 + $0xec8] sm:$0xff]  ;;  %v997_v40 = vld [vmem:[#allocation7 + $0xe98] sm:$0xff] }
 0x18c   : > { %v1005_v41 = vld [vmem:[#allocation7 + $0xed8] sm:$0xff] }
 0x18d   : > { %3900 = vmatpush1.bf16.msra.mxu0 %v3899_v54  ;;  %v3919_v54 = vpack.c.bf16 %v922_v46, %v914_v45  ;;  %v994_v45 = vld [vmem:[#allocation7 + $0xe80] sm:$0xff] }
 0x18e   : > { %4156 = vmatpush1.bf16.msra.mxu1 %v4155_v55  ;;  %3902 = vmatprep.subr.bf16.mxu0 %v3901_v56  ;;  %v4175_v55 = vpack.c.bf16 %v924_v49, %v916_v47  ;;  %v3921_v56 = vpack.c.bf16 %v939_v51, %v931_v50  ;;  %v1002_v46 = vld [vmem:[#allocation7 + $0xec0] sm:$0xff]  ;;  %v996_v47 = vld [vmem:[#allocation7 + $0xe90] sm:$0xff]  ;;  %v1011_v50 = vld [vmem:[#allocation7 + $0xf08] sm:$0xff] }
 0x18f   : > { %4158 = vmatprep.subr.bf16.mxu1 %v4157_v60  ;;  %v4177_v60 = vpack.c.bf16 %v941_v53, %v933_v52  ;;  %v1004_v49 = vld [vmem:[#allocation7 + $0xed0] sm:$0xff]  ;;  %v1019_v51 = vld [vmem:[#allocation7 + $0xf48] sm:$0xff]  ;;  %v1013_v52 = vld [vmem:[#allocation7 + $0xf18] sm:$0xff] }
 0x190   : > { %v1021_v53 = vld [vmem:[#allocation7 + $0xf58] sm:$0xff] }
 0x191   : > { %3904 = vmatpush1.bf16.msra.mxu0 %v3903_v2  ;;  %v3923_v2 = vpack.c.bf16 %v938_v58, %v930_v57  ;;  %v1010_v57 = vld [vmem:[#allocation7 + $0xf00] sm:$0xff] }
 0x192   : > { %4160 = vmatpush1.bf16.msra.mxu1 %v4159_v3  ;;  %3906 = vmatprep.subr.bf16.mxu0 %v3905_v4  ;;  %v4179_v3 = vpack.c.bf16 %v940_v61, %v932_v59  ;;  %v3925_v4 = vpack.c.bf16 %v955_v63, %v947_v62  ;;  %v1018_v58 = vld [vmem:[#allocation7 + $0xf40] sm:$0xff]  ;;  %v1012_v59 = vld [vmem:[#allocation7 + $0xf10] sm:$0xff]  ;;  %v1027_v62 = vld [vmem:[#allocation7 + $0xf88] sm:$0xff] }
 0x193   : > { %4162 = vmatprep.subr.bf16.mxu1 %v4161_v8  ;;  %v4181_v8 = vpack.c.bf16 %v957_v1, %v949_v0  ;;  %v1020_v61 = vld [vmem:[#allocation7 + $0xf50] sm:$0xff]  ;;  %v1035_v63 = vld [vmem:[#allocation7 + $0xfc8] sm:$0xff]  ;;  %v1029_v0 = vld [vmem:[#allocation7 + $0xf98] sm:$0xff] }
 0x194   : > { %v1037_v1 = vld [vmem:[#allocation7 + $0xfd8] sm:$0xff] }
 0x195   : > { %3908 = vmatpush1.bf16.msra.mxu0 %v3907_v15  ;;  %v3927_v15 = vpack.c.bf16 %v954_v6, %v946_v5  ;;  %v1026_v5 = vld [vmem:[#allocation7 + $0xf80] sm:$0xff] }
 0x196   : > { %4164 = vmatpush1.bf16.msra.mxu1 %v4163_v18  ;;  %3910 = vmatprep.subr.bf16.mxu0 %v3909_v20  ;;  %v3929_v18 = vpack.c.bf16 %v971_v11, %v963_v10  ;;  %v962_v20 = vld [vmem:[#allocation7 + $0xd80] sm:$0xff]  ;;  %v1043_v10 = vld [vmem:[#allocation7 + $0x1008] sm:$0xff] }
 0x197   : > { %4166 = vmatprep.subr.bf16.mxu1 %v4165_v24  ;;  %v4185_v24 = vpack.c.bf16 %v973_v13, %v965_v12  ;;  %v1034_v6 = vld [vmem:[#allocation7 + $0xfc0] sm:$0xff]  ;;  %v1051_v11 = vld [vmem:[#allocation7 + $0x1048] sm:$0xff]  ;;  %v1045_v12 = vld [vmem:[#allocation7 + $0x1018] sm:$0xff] }
 0x198   : > { %v1053_v13 = vld [vmem:[#allocation7 + $0x1058] sm:$0xff] }
 0x199   : > { %3912 = vmatpush1.bf16.msra.mxu0 %v3911_v30  ;;  %v3931_v30 = vpack.c.bf16 %v970_v21, %v962_v20  ;;  %v1042_v20 = vld [vmem:[#allocation7 + $0x1000] sm:$0xff] }
 0x19a   : > { %4168 = vmatpush1.bf16.msra.mxu1 %v4167_v31  ;;  %3914 = vmatprep.subr.bf16.mxu0 %v3913_v32  ;;  %v4187_v31 = vpack.c.bf16 %v972_v25, %v964_v22  ;;  %v3933_v32 = vpack.c.bf16 %v987_v27, %v979_v26  ;;  %v1050_v21 = vld [vmem:[#allocation7 + $0x1040] sm:$0xff]  ;;  %v1044_v22 = vld [vmem:[#allocation7 + $0x1010] sm:$0xff]  ;;  %v1059_v26 = vld [vmem:[#allocation7 + $0x1088] sm:$0xff] }
 0x19b   : > { %4170 = vmatprep.subr.bf16.mxu1 %v4169_v36  ;;  %v4189_v36 = vpack.c.bf16 %v989_v29, %v981_v16  ;;  %v1052_v25 = vld [vmem:[#allocation7 + $0x1050] sm:$0xff]  ;;  %v1067_v27 = vld [vmem:[#allocation7 + $0x10c8] sm:$0xff]  ;;  %v5981_v16 = vunpack.c.l.bf16 %v5973_v23  ;;  %v1061_v29 = vld [vmem:[#allocation7 + $0x1098] sm:$0xff] }
 0x19d   : > { %3916 = vmatpush1.bf16.msra.mxu0 %v3915_v42  ;;  %v3935_v42 = vpack.c.bf16 %v986_v34, %v978_v33  ;;  %v4207_v33 = vpack.c.bf16 %v1052_v25, %v1044_v22  ;;  %v3953_v34 = vpack.c.bf16 %v1067_v27, %v1059_v26  ;;  %v1122_v22 = vld [vmem:[#allocation7 + $0x1280] sm:$0xff]  ;;  %v1124_v25 = vld [vmem:[#allocation7 + $0x1290] sm:$0xff] }
 0x19e   : > { %4172 = vmatpush1.bf16.msra.mxu1 %v4171_v43  ;;  %3918 = vmatprep.subr.bf16.mxu0 %v3917_v44  ;;  %v4191_v43 = vpack.c.bf16 %v988_v37, %v980_v35  ;;  %v3937_v44 = vpack.c.bf16 %v1003_v39, %v995_v38  ;;  %v1058_v35 = vld [vmem:[#allocation7 + $0x1080] sm:$0xff]  ;;  %v1060_v37 = vld [vmem:[#allocation7 + $0x1090] sm:$0xff] }
 0x19f   : > { %4174 = vmatprep.subr.bf16.mxu1 %v4173_v48  ;;  %v4193_v48 = vpack.c.bf16 %v1005_v41, %v997_v40  ;;  %v1068_v39 = vld [vmem:[#allocation7 + $0x10d0] sm:$0xff]  ;;  %v1075_v40 = vld [vmem:[#allocation7 + $0x1108] sm:$0xff] }
 0x1a0   : > { %v1083_v41 = vld [vmem:[#allocation7 + $0x1148] sm:$0xff]  ;;  %v1132_v27 = vld [vmem:[#allocation7 + $0x12d0] sm:$0xff] }
 0x1a1   : > { %3920 = vmatpush1.bf16.msra.mxu0 %v3919_v54  ;;  %v3939_v54 = vpack.c.bf16 %v1002_v46, %v994_v45  ;;  %v4211_v45 = vpack.c.bf16 %v1068_v39, %v1060_v37  ;;  %v3957_v46 = vpack.c.bf16 %v1083_v41, %v1075_v40  ;;  %v1138_v37 = vld [vmem:[#allocation7 + $0x1300] sm:$0xff]  ;;  %v1140_v39 = vld [vmem:[#allocation7 + $0x1310] sm:$0xff] }
 0x1a2   : > { %4176 = vmatpush1.bf16.msra.mxu1 %v4175_v55  ;;  %3922 = vmatprep.subr.bf16.mxu0 %v3921_v56  ;;  %v4195_v55 = vpack.c.bf16 %v1004_v49, %v996_v47  ;;  %v3941_v56 = vpack.c.bf16 %v1019_v51, %v1011_v50  ;;  %v1074_v47 = vld [vmem:[#allocation7 + $0x1100] sm:$0xff]  ;;  %v1076_v49 = vld [vmem:[#allocation7 + $0x1110] sm:$0xff] }
 0x1a3   : > { %4178 = vmatprep.subr.bf16.mxu1 %v4177_v60  ;;  %v4197_v60 = vpack.c.bf16 %v1021_v53, %v1013_v52  ;;  %v1084_v51 = vld [vmem:[#allocation7 + $0x1150] sm:$0xff]  ;;  %v1091_v52 = vld [vmem:[#allocation7 + $0x1188] sm:$0xff] }
 0x1a4   : > { %v1099_v53 = vld [vmem:[#allocation7 + $0x11c8] sm:$0xff]  ;;  %v1148_v41 = vld [vmem:[#allocation7 + $0x1350] sm:$0xff] }
 0x1a5   : > { %3924 = vmatpush1.bf16.msra.mxu0 %v3923_v2  ;;  %v3943_v2 = vpack.c.bf16 %v1018_v58, %v1010_v57  ;;  %v4215_v57 = vpack.c.bf16 %v1084_v51, %v1076_v49  ;;  %v3961_v58 = vpack.c.bf16 %v1099_v53, %v1091_v52  ;;  %v1154_v49 = vld [vmem:[#allocation7 + $0x1380] sm:$0xff]  ;;  %v1156_v51 = vld [vmem:[#allocation7 + $0x1390] sm:$0xff] }
 0x1a6   : > { %4180 = vmatpush1.bf16.msra.mxu1 %v4179_v3  ;;  %3926 = vmatprep.subr.bf16.mxu0 %v3925_v4  ;;  %v4199_v3 = vpack.c.bf16 %v1020_v61, %v1012_v59  ;;  %v3945_v4 = vpack.c.bf16 %v1035_v63, %v1027_v62  ;;  %v1090_v59 = vld [vmem:[#allocation7 + $0x1180] sm:$0xff]  ;;  %v1092_v61 = vld [vmem:[#allocation7 + $0x1190] sm:$0xff] }
 0x1a7   : > { %4182 = vmatprep.subr.bf16.mxu1 %v4181_v8  ;;  %v4201_v8 = vpack.c.bf16 %v1037_v1, %v1029_v0  ;;  %v1100_v63 = vld [vmem:[#allocation7 + $0x11d0] sm:$0xff]  ;;  %v1107_v0 = vld [vmem:[#allocation7 + $0x1208] sm:$0xff] }
 0x1a8   : > { %v1115_v1 = vld [vmem:[#allocation7 + $0x1248] sm:$0xff]  ;;  %v1164_v53 = vld [vmem:[#allocation7 + $0x13d0] sm:$0xff] }
 0x1a9   : > { %3928 = vmatpush1.bf16.msra.mxu0 %v3927_v15  ;;  %v3947_v15 = vpack.c.bf16 %v1034_v6, %v1026_v5  ;;  %v4219_v5 = vpack.c.bf16 %v1100_v63, %v1092_v61  ;;  %v3965_v6 = vpack.c.bf16 %v1115_v1, %v1107_v0  ;;  %v1170_v61 = vld [vmem:[#allocation7 + $0x1400] sm:$0xff]  ;;  %v1172_v63 = vld [vmem:[#allocation7 + $0x1410] sm:$0xff] }
 0x1aa   : > { %4184 = vmatpush1.bf16.msra.mxu1 %v4183_v17  ;;  %3930 = vmatprep.subr.bf16.mxu0 %v3929_v18  ;;  %v4203_v17 = vpack.c.bf16 %v1036_v9, %v1028_v7  ;;  %v3949_v18 = vpack.c.bf16 %v1051_v11, %v1043_v10  ;;  %v1106_v7 = vld [vmem:[#allocation7 + $0x1200] sm:$0xff]  ;;  %v1108_v9 = vld [vmem:[#allocation7 + $0x1210] sm:$0xff] }
 0x1ab   : > { %4186 = vmatprep.subr.bf16.mxu1 %v4185_v24  ;;  %v4205_v24 = vpack.c.bf16 %v1053_v13, %v1045_v12  ;;  %v1116_v11 = vld [vmem:[#allocation7 + $0x1250] sm:$0xff]  ;;  %v1123_v12 = vld [vmem:[#allocation7 + $0x1288] sm:$0xff] }
 0x1ac   : > { %v1131_v13 = vld [vmem:[#allocation7 + $0x12c8] sm:$0xff]  ;;  %v1180_v1 = vld [vmem:[#allocation7 + $0x1450] sm:$0xff] }
 0x1ad   : > { %3932 = vmatpush1.bf16.msra.mxu0 %v3931_v30  ;;  %v1069_v30 = vld [vmem:[#allocation7 + $0x10d8] sm:$0xff] }
 0x1ae   : > { %4188 = vmatpush1.bf16.msra.mxu1 %v4187_v31  ;;  %3934 = vmatprep.subr.bf16.mxu0 %v3933_v32  ;;  %v3951_v31 = vpack.c.bf16 %v1050_v21, %v1042_v20  ;;  %v5984_v32 = vld [vmem:[%s5923_s18 + $0x10] sm:$0xff]  ;;  %v4209_v38 = vpack.c.bf16 %v1069_v30, %v1061_v29  ;;  %v4223_v20 = vpack.c.bf16 %v1116_v11, %v1108_v9  ;;  %v1139_v29 = vld [vmem:[#allocation7 + $0x1308] sm:$0xff]  ;;  %v1188_v11 = vld [vmem:[#allocation7 + $0x1490] sm:$0xff] }
 0x1af   : > { %4190 = vmatprep.subr.bf16.mxu1 %v4189_v36  ;;  %v1066_v36 = vld [vmem:[#allocation7 + $0x10c0] sm:$0xff]  ;;  %v5987_v23 = vunpack.c.h.bf16 %v5984_v32  ;;  %v3969_v21 = vpack.c.bf16 %v1131_v13, %v1123_v12  ;;  %v1147_v30 = vld [vmem:[#allocation7 + $0x1348] sm:$0xff]  ;;  %v1196_v13 = vld [vmem:[#allocation7 + $0x14d0] sm:$0xff] }
 0x1b0   : > { %v1186_v9 = vld [vmem:[#allocation7 + $0x1480] sm:$0xff] }
 0x1b1   : > { %3936 = vmatpush1.bf16.msra.mxu0 %v3935_v42  ;;  %v1077_v42 = vld [vmem:[#allocation7 + $0x1118] sm:$0xff] }
 0x1b2   : > { %4192 = vmatpush1.bf16.msra.mxu1 %v4191_v43  ;;  %3938 = vmatprep.subr.bf16.mxu0 %v3937_v44  ;;  %v1085_v43 = vld [vmem:[#allocation7 + $0x1158] sm:$0xff]  ;;  %v3955_v44 = vpack.c.bf16 %v1066_v36, %v1058_v35  ;;  %v4227_v35 = vpack.c.bf16 %v1132_v27, %v1124_v25  ;;  %v3973_v36 = vpack.c.bf16 %v1147_v30, %v1139_v29  ;;  %v1202_v25 = vld [vmem:[#allocation7 + $0x1500] sm:$0xff]  ;;  %v1204_v27 = vld [vmem:[#allocation7 + $0x1510] sm:$0xff] }
 0x1b3   : > { %4194 = vmatprep.subr.bf16.mxu1 %v4193_v48  ;;  %v1082_v48 = vld [vmem:[#allocation7 + $0x1140] sm:$0xff]  ;;  %v4213_v50 = vpack.c.bf16 %v1085_v43, %v1077_v42  ;;  %v1155_v42 = vld [vmem:[#allocation7 + $0x1388] sm:$0xff]  ;;  %v1212_v30 = vld [vmem:[#allocation7 + $0x1550] sm:$0xff] }
 0x1b4   : > { %v1163_v43 = vld [vmem:[#allocation7 + $0x13c8] sm:$0xff] }
 0x1b5   : > { %3940 = vmatpush1.bf16.msra.mxu0 %v3939_v54  ;;  %v1093_v54 = vld [vmem:[#allocation7 + $0x1198] sm:$0xff] }
 0x1b6   : > { %4196 = vmatpush1.bf16.msra.mxu1 %v4195_v55  ;;  %3942 = vmatprep.subr.bf16.mxu0 %v3941_v56  ;;  %v1101_v55 = vld [vmem:[#allocation7 + $0x11d8] sm:$0xff]  ;;  %v3959_v56 = vpack.c.bf16 %v1082_v48, %v1074_v47  ;;  %v4231_v47 = vpack.c.bf16 %v1148_v41, %v1140_v39  ;;  %v3977_v48 = vpack.c.bf16 %v1163_v43, %v1155_v42  ;;  %v1218_v39 = vld [vmem:[#allocation7 + $0x1580] sm:$0xff]  ;;  %v1220_v41 = vld [vmem:[#allocation7 + $0x1590] sm:$0xff] }
 0x1b7   : > { %4198 = vmatprep.subr.bf16.mxu1 %v4197_v60  ;;  %v1098_v60 = vld [vmem:[#allocation7 + $0x11c0] sm:$0xff]  ;;  %v4217_v62 = vpack.c.bf16 %v1101_v55, %v1093_v54  ;;  %v1171_v54 = vld [vmem:[#allocation7 + $0x1408] sm:$0xff]  ;;  %v1228_v43 = vld [vmem:[#allocation7 + $0x15d0] sm:$0xff] }
 0x1b8   : > { %v1179_v55 = vld [vmem:[#allocation7 + $0x1448] sm:$0xff] }
 0x1b9   : > { %3944 = vmatpush1.bf16.msra.mxu0 %v3943_v2  ;;  %v1109_v2 = vld [vmem:[#allocation7 + $0x1218] sm:$0xff] }
 0x1ba   : > { %4200 = vmatpush1.bf16.msra.mxu1 %v4199_v3  ;;  %3946 = vmatprep.subr.bf16.mxu0 %v3945_v4  ;;  %v1117_v3 = vld [vmem:[#allocation7 + $0x1258] sm:$0xff]  ;;  %v3963_v4 = vpack.c.bf16 %v1098_v60, %v1090_v59  ;;  %v4235_v59 = vpack.c.bf16 %v1164_v53, %v1156_v51  ;;  %v3981_v60 = vpack.c.bf16 %v1179_v55, %v1171_v54  ;;  %v1234_v51 = vld [vmem:[#allocation7 + $0x1600] sm:$0xff]  ;;  %v1236_v53 = vld [vmem:[#allocation7 + $0x1610] sm:$0xff] }
 0x1bb   : > { %4202 = vmatprep.subr.bf16.mxu1 %v4201_v8  ;;  %v1114_v8 = vld [vmem:[#allocation7 + $0x1240] sm:$0xff]  ;;  %v4221_v10 = vpack.c.bf16 %v1117_v3, %v1109_v2  ;;  %v1187_v2 = vld [vmem:[#allocation7 + $0x1488] sm:$0xff]  ;;  %v1244_v55 = vld [vmem:[#allocation7 + $0x1650] sm:$0xff] }
 0x1bc   : > { %v1195_v3 = vld [vmem:[#allocation7 + $0x14c8] sm:$0xff] }
 0x1bd   : > { %3948 = vmatpush1.bf16.msra.mxu0 %v3947_v15  ;;  %v1125_v15 = vld [vmem:[#allocation7 + $0x1298] sm:$0xff] }
 0x1be   : > { %4204 = vmatpush1.bf16.msra.mxu1 %v4203_v17  ;;  %3950 = vmatprep.subr.bf16.mxu0 %v3949_v18  ;;  %v1133_v17 = vld [vmem:[#allocation7 + $0x12d8] sm:$0xff]  ;;  %v3967_v18 = vpack.c.bf16 %v1114_v8, %v1106_v7  ;;  %v4239_v7 = vpack.c.bf16 %v1180_v1, %v1172_v63  ;;  %v3985_v8 = vpack.c.bf16 %v1195_v3, %v1187_v2  ;;  %v1250_v63 = vld [vmem:[#allocation7 + $0x1680] sm:$0xff]  ;;  %v1252_v1 = vld [vmem:[#allocation7 + $0x1690] sm:$0xff] }
 0x1bf   : > { %4206 = vmatprep.subr.bf16.mxu1 %v4205_v24  ;;  %v1130_v24 = vld [vmem:[#allocation7 + $0x12c0] sm:$0xff]  ;;  %v4225_v26 = vpack.c.bf16 %v1133_v17, %v1125_v15  ;;  %v1203_v15 = vld [vmem:[#allocation7 + $0x1508] sm:$0xff]  ;;  %v1260_v3 = vld [vmem:[#allocation7 + $0x16d0] sm:$0xff] }
 0x1c0   : > { %1732 = vmatmul.mubr.f32.vlgmr.msra.gmra.mrb[0].mxu0 %v5981_v16  ;;  %v1211_v17 = vld [vmem:[#allocation7 + $0x1548] sm:$0xff] }
 0x1c1   : > { %3952 = vmatpush1.bf16.msra.mxu0 %v3951_v31  ;;  %2016 = vmatmul.mubr.f32.vlgmr.msra.gmra.mrb[0].mxu1 %v5981_v16  ;;  %v1141_v31 = vld [vmem:[#allocation7 + $0x1318] sm:$0xff] }
 0x1c2   : > { %4208 = vmatpush1.bf16.msra.mxu1 %v4207_v33  ;;  %3954 = vmatprep.subr.bf16.mxu0 %v3953_v34  ;;  %v1149_v33 = vld [vmem:[#allocation7 + $0x1358] sm:$0xff]  ;;  %v3971_v34 = vpack.c.bf16 %v1130_v24, %v1122_v22  ;;  %v4243_v22 = vpack.c.bf16 %v1196_v13, %v1188_v11  ;;  %v3989_v24 = vpack.c.bf16 %v1211_v17, %v1203_v15  ;;  %v1266_v11 = vld [vmem:[#allocation7 + $0x1700] sm:$0xff]  ;;  %v1268_v13 = vld [vmem:[#allocation7 + $0x1710] sm:$0xff] }
 0x1c3   : > { %4210 = vmatprep.subr.bf16.mxu1 %v4209_v38  ;;  %1802 = vmatprep.mubr.f32.mxu0 %v5987_v23  ;;  %v1146_v38 = vld [vmem:[#allocation7 + $0x1340] sm:$0xff]  ;;  %v4229_v40 = vpack.c.bf16 %v1149_v33, %v1141_v31  ;;  %v1219_v31 = vld [vmem:[#allocation7 + $0x1588] sm:$0xff]  ;;  %v1276_v17 = vld [vmem:[#allocation7 + $0x1750] sm:$0xff] }
 0x1c4   : > { %2086 = vmatprep.mubr.f32.mxu1 %v5987_v23  ;;  %v1227_v33 = vld [vmem:[#allocation7 + $0x15c8] sm:$0xff] }
 0x1c5   : > { %3956 = vmatpush1.bf16.msra.mxu0 %v3955_v44  ;;  %v1157_v44 = vld [vmem:[#allocation7 + $0x1398] sm:$0xff] }
 0x1c6   : > { %4212 = vmatpush1.bf16.msra.mxu1 %v4211_v45  ;;  %3958 = vmatprep.subr.bf16.mxu0 %v3957_v46  ;;  %v1165_v45 = vld [vmem:[#allocation7 + $0x13d8] sm:$0xff]  ;;  %v3975_v46 = vpack.c.bf16 %v1146_v38, %v1138_v37  ;;  %v4247_v37 = vpack.c.bf16 %v1212_v30, %v1204_v27  ;;  %v3993_v38 = vpack.c.bf16 %v1227_v33, %v1219_v31  ;;  %v1282_v27 = vld [vmem:[#allocation7 + $0x1780] sm:$0xff]  ;;  %v1284_v30 = vld [vmem:[#allocation7 + $0x1790] sm:$0xff] }
 0x1c7   : > { %4214 = vmatprep.subr.bf16.mxu1 %v4213_v50  ;;  %v1162_v50 = vld [vmem:[#allocation7 + $0x13c0] sm:$0xff]  ;;  %v4233_v52 = vpack.c.bf16 %v1165_v45, %v1157_v44  ;;  %v1235_v44 = vld [vmem:[#allocation7 + $0x1608] sm:$0xff]  ;;  %v1292_v33 = vld [vmem:[#allocation7 + $0x17d0] sm:$0xff] }
 0x1c8   : > { %v1243_v45 = vld [vmem:[#allocation7 + $0x1648] sm:$0xff] }
 0x1c9   : > { %3960 = vmatpush1.bf16.msra.mxu0 %v3959_v56  ;;  %v1173_v56 = vld [vmem:[#allocation7 + $0x1418] sm:$0xff] }
 0x1ca   : > { %4216 = vmatpush1.bf16.msra.mxu1 %v4215_v57  ;;  %3962 = vmatprep.subr.bf16.mxu0 %v3961_v58  ;;  %v1181_v57 = vld [vmem:[#allocation7 + $0x1458] sm:$0xff]  ;;  %v3979_v58 = vpack.c.bf16 %v1162_v50, %v1154_v49  ;;  %v4251_v49 = vpack.c.bf16 %v1228_v43, %v1220_v41  ;;  %v3997_v50 = vpack.c.bf16 %v1243_v45, %v1235_v44  ;;  %v1298_v41 = vld [vmem:[#allocation7 + $0x1800] sm:$0xff]  ;;  %v1300_v43 = vld [vmem:[#allocation7 + $0x1810] sm:$0xff] }
 0x1cb   : > { %4218 = vmatprep.subr.bf16.mxu1 %v4217_v62  ;;  %v1178_v62 = vld [vmem:[#allocation7 + $0x1440] sm:$0xff]  ;;  %v4237_v0 = vpack.c.bf16 %v1181_v57, %v1173_v56  ;;  %v1251_v56 = vld [vmem:[#allocation7 + $0x1688] sm:$0xff]  ;;  %v1308_v45 = vld [vmem:[#allocation7 + $0x1850] sm:$0xff] }
 0x1cc   : > { %v1259_v57 = vld [vmem:[#allocation7 + $0x16c8] sm:$0xff] }
 0x1cd   : > { %3964 = vmatpush1.bf16.msra.mxu0 %v3963_v4  ;;  %v1189_v4 = vld [vmem:[#allocation7 + $0x1498] sm:$0xff] }
 0x1ce   : > { %4220 = vmatpush1.bf16.msra.mxu1 %v4219_v5  ;;  %3966 = vmatprep.subr.bf16.mxu0 %v3965_v6  ;;  %v1197_v5 = vld [vmem:[#allocation7 + $0x14d8] sm:$0xff]  ;;  %v3983_v6 = vpack.c.bf16 %v1178_v62, %v1170_v61  ;;  %v4255_v61 = vpack.c.bf16 %v1244_v55, %v1236_v53  ;;  %v4001_v62 = vpack.c.bf16 %v1259_v57, %v1251_v56  ;;  %v1314_v55 = vld [vmem:[#allocation7 + $0x1880] sm:$0xff]  ;;  %v1316_v57 = vld [vmem:[#allocation7 + $0x1890] sm:$0xff] }
 0x1cf   : > { %4222 = vmatprep.subr.bf16.mxu1 %v4221_v10  ;;  %v1194_v10 = vld [vmem:[#allocation7 + $0x14c0] sm:$0xff]  ;;  %v4241_v12 = vpack.c.bf16 %v1197_v5, %v1189_v4  ;;  %v1267_v4 = vld [vmem:[#allocation7 + $0x1708] sm:$0xff]  ;;  %v4271_v53 = vpack.c.bf16 %v1308_v45, %v1300_v43 }
 0x1d0   : > { %v1275_v5 = vld [vmem:[#allocation7 + $0x1748] sm:$0xff]  ;;  %v1322_v56 = vld [vmem:[#allocation7 + $0x18c0] sm:$0xff] }
 0x1d1   : > { %3968 = vmatpush1.bf16.msra.mxu0 %v3967_v18  ;;  %v1205_v18 = vld [vmem:[#allocation7 + $0x1518] sm:$0xff]  ;;  %v1378_v45 = vld [vmem:[#allocation7 + $0x1a80] sm:$0xff] }
 0x1d2   : > { %4224 = vmatpush1.bf16.msra.mxu1 %v4223_v20  ;;  %3970 = vmatprep.subr.bf16.mxu0 %v3969_v21  ;;  %v1213_v20 = vld [vmem:[#allocation7 + $0x1558] sm:$0xff]  ;;  %v3987_v21 = vpack.c.bf16 %v1194_v10, %v1186_v9  ;;  %v4259_v9 = vpack.c.bf16 %v1260_v3, %v1252_v1  ;;  %v4005_v10 = vpack.c.bf16 %v1275_v5, %v1267_v4  ;;  %v1330_v3 = vld [vmem:[#allocation7 + $0x1900] sm:$0xff]  ;;  %v1332_v5 = vld [vmem:[#allocation7 + $0x1910] sm:$0xff] }
 0x1d3   : > { %4226 = vmatprep.subr.bf16.mxu1 %v4225_v26  ;;  %v1210_v26 = vld [vmem:[#allocation7 + $0x1540] sm:$0xff]  ;;  %v4245_v29 = vpack.c.bf16 %v1213_v20, %v1205_v18  ;;  %v1283_v18 = vld [vmem:[#allocation7 + $0x1788] sm:$0xff] }
 0x1d4   : > { %v1291_v20 = vld [vmem:[#allocation7 + $0x17c8] sm:$0xff]  ;;  %v1338_v4 = vld [vmem:[#allocation7 + $0x1940] sm:$0xff] }
 0x1d5   : > { %3972 = vmatpush1.bf16.msra.mxu0 %v3971_v34  ;;  %v1221_v34 = vld [vmem:[#allocation7 + $0x1598] sm:$0xff] }
 0x1d6   : > { %4228 = vmatpush1.bf16.msra.mxu1 %v4227_v35  ;;  %3974 = vmatprep.subr.bf16.mxu0 %v3973_v36  ;;  %v1229_v35 = vld [vmem:[#allocation7 + $0x15d8] sm:$0xff]  ;;  %v3991_v36 = vpack.c.bf16 %v1210_v26, %v1202_v25  ;;  %v4263_v25 = vpack.c.bf16 %v1276_v17, %v1268_v13  ;;  %v4009_v26 = vpack.c.bf16 %v1291_v20, %v1283_v18  ;;  %v1346_v17 = vld [vmem:[#allocation7 + $0x1980] sm:$0xff]  ;;  %v1348_v20 = vld [vmem:[#allocation7 + $0x1990] sm:$0xff] }
 0x1d7   : > { %4230 = vmatprep.subr.bf16.mxu1 %v4229_v40  ;;  %v1226_v40 = vld [vmem:[#allocation7 + $0x15c0] sm:$0xff]  ;;  %v4249_v42 = vpack.c.bf16 %v1229_v35, %v1221_v34  ;;  %v1299_v34 = vld [vmem:[#allocation7 + $0x1808] sm:$0xff] }
 0x1d8   : > { %v1307_v35 = vld [vmem:[#allocation7 + $0x1848] sm:$0xff]  ;;  %v1354_v18 = vld [vmem:[#allocation7 + $0x19c0] sm:$0xff] }
 0x1d9   : > { %3976 = vmatpush1.bf16.msra.mxu0 %v3975_v46  ;;  %v1237_v46 = vld [vmem:[#allocation7 + $0x1618] sm:$0xff] }
 0x1da   : > { %4232 = vmatpush1.bf16.msra.mxu1 %v4231_v47  ;;  %3978 = vmatprep.subr.bf16.mxu0 %v3977_v48  ;;  %v1245_v47 = vld [vmem:[#allocation7 + $0x1658] sm:$0xff]  ;;  %v3995_v48 = vpack.c.bf16 %v1226_v40, %v1218_v39  ;;  %v4267_v39 = vpack.c.bf16 %v1292_v33, %v1284_v30  ;;  %v4013_v40 = vpack.c.bf16 %v1307_v35, %v1299_v34  ;;  %v1362_v33 = vld [vmem:[#allocation7 + $0x1a00] sm:$0xff]  ;;  %v1364_v35 = vld [vmem:[#allocation7 + $0x1a10] sm:$0xff] }
 0x1db   : > { %4234 = vmatprep.subr.bf16.mxu1 %v4233_v52  ;;  %v1242_v52 = vld [vmem:[#allocation7 + $0x1640] sm:$0xff]  ;;  %v4253_v54 = vpack.c.bf16 %v1245_v47, %v1237_v46  ;;  %v1315_v46 = vld [vmem:[#allocation7 + $0x1888] sm:$0xff] }
 0x1dc   : > { %v1323_v47 = vld [vmem:[#allocation7 + $0x18c8] sm:$0xff]  ;;  %v1370_v34 = vld [vmem:[#allocation7 + $0x1a40] sm:$0xff] }
 0x1dd   : > { %3980 = vmatpush1.bf16.msra.mxu0 %v3979_v58  ;;  %v1253_v58 = vld [vmem:[#allocation7 + $0x1698] sm:$0xff] }
 0x1de   : > { %4236 = vmatpush1.bf16.msra.mxu1 %v4235_v59  ;;  %3982 = vmatprep.subr.bf16.mxu0 %v3981_v60  ;;  %v1261_v59 = vld [vmem:[#allocation7 + $0x16d8] sm:$0xff]  ;;  %v3999_v60 = vpack.c.bf16 %v1242_v52, %v1234_v51  ;;  %v5997_v51 = vld [vmem:[%s5923_s18 + $0x18] sm:$0xff]  ;;  %s5435_s18 = scalar_lea.vmem %s5434_s11, 256 }
 0x1df   : > { %4238 = vmatprep.subr.bf16.mxu1 %v4237_v0  ;;  %v1258_v0 = vld [vmem:[#allocation7 + $0x16c0] sm:$0xff]  ;;  %v4257_v2 = vpack.c.bf16 %v1261_v59, %v1253_v58  ;;  %v1324_v59 = vld [vmem:[#allocation7 + $0x18d0] sm:$0xff]  ;;  %p5437_p7 = scmp.lt.s32.totalorder %s5435_s18, %s5429_s27 }
 0x1e0   : > { %v4275_v1 = vpack.c.bf16 %v1324_v59, %v1316_v57  ;;  %v1394_v59 = vld [vmem:[#allocation7 + $0x1b00] sm:$0xff] }
 0x1e1   : > { %3984 = vmatpush1.bf16.msra.mxu0 %v3983_v6  ;;  %v1269_v6 = vld [vmem:[#allocation7 + $0x1718] sm:$0xff]  ;;  %p5438_p8 = por %p5437_p7, %p5436_p11 }
 0x1e2   : > { %4240 = vmatpush1.bf16.msra.mxu1 %v4239_v7  ;;  %3986 = vmatprep.subr.bf16.mxu0 %v3985_v8  ;;  %v1277_v7 = vld [vmem:[#allocation7 + $0x1758] sm:$0xff]  ;;  %v4003_v8 = vpack.c.bf16 %v1258_v0, %v1250_v63  ;;  %v4019_v0 = vpack.c.bf16 %v1322_v56, %v1314_v55 }
 0x1e3   : > { %4242 = vmatprep.subr.bf16.mxu1 %v4241_v12  ;;  %v1274_v12 = vld [vmem:[#allocation7 + $0x1740] sm:$0xff]  ;;  %v4261_v15 = vpack.c.bf16 %v1277_v7, %v1269_v6  ;;  %v1341_v63 = vld [vmem:[#allocation7 + $0x1958] sm:$0xff]  ;;  %v1340_v7 = vld [vmem:[#allocation7 + $0x1950] sm:$0xff]  ;;  %p5439_p12 = pnand %p5438_p8, %p5432_p5 }
 0x1e4   : > { %v4279_v13 = vpack.c.bf16 %v1340_v7, %v1332_v5  ;;  %v1405_v55 = vld [vmem:[#allocation7 + $0x1b58] sm:$0xff]  ;;  %v1410_v7 = vld [vmem:[#allocation7 + $0x1b80] sm:$0xff] }
 0x1e5   : > { %3988 = vmatpush1.bf16.msra.mxu0 %v3987_v21  ;;  %v1285_v21 = vld [vmem:[#allocation7 + $0x1798] sm:$0xff] }
 0x1e6   : > { %4244 = vmatpush1.bf16.msra.mxu1 %v4243_v22  ;;  %3990 = vmatprep.subr.bf16.mxu0 %v3989_v24  ;;  %v1293_v22 = vld [vmem:[#allocation7 + $0x17d8] sm:$0xff]  ;;  %v4007_v24 = vpack.c.bf16 %v1274_v12, %v1266_v11  ;;  %v4023_v12 = vpack.c.bf16 %v1338_v4, %v1330_v3 }
 0x1e7   : > { %4246 = vmatprep.subr.bf16.mxu1 %v4245_v29  ;;  %v1290_v29 = vld [vmem:[#allocation7 + $0x17c0] sm:$0xff]  ;;  %v4265_v31 = vpack.c.bf16 %v1293_v22, %v1285_v21  ;;  %v1357_v11 = vld [vmem:[#allocation7 + $0x19d8] sm:$0xff]  ;;  %v1356_v22 = vld [vmem:[#allocation7 + $0x19d0] sm:$0xff] }
 0x1e8   : > { %v4283_v30 = vpack.c.bf16 %v1356_v22, %v1348_v20  ;;  %v1421_v3 = vld [vmem:[#allocation7 + $0x1bd8] sm:$0xff]  ;;  %v1426_v22 = vld [vmem:[#allocation7 + $0x1c00] sm:$0xff] }
 0x1e9   : > { %3992 = vmatpush1.bf16.msra.mxu0 %v3991_v36  ;;  %v1301_v36 = vld [vmem:[#allocation7 + $0x1818] sm:$0xff] }
 0x1ea   : > { %4248 = vmatpush1.bf16.msra.mxu1 %v4247_v37  ;;  %3994 = vmatprep.subr.bf16.mxu0 %v3993_v38  ;;  %v1309_v37 = vld [vmem:[#allocation7 + $0x1858] sm:$0xff]  ;;  %v4011_v38 = vpack.c.bf16 %v1290_v29, %v1282_v27  ;;  %v4027_v29 = vpack.c.bf16 %v1354_v18, %v1346_v17 }
 0x1eb   : > { %4250 = vmatprep.subr.bf16.mxu1 %v4249_v42  ;;  %v1306_v42 = vld [vmem:[#allocation7 + $0x1840] sm:$0xff]  ;;  %v4269_v44 = vpack.c.bf16 %v1309_v37, %v1301_v36  ;;  %v1373_v27 = vld [vmem:[#allocation7 + $0x1a58] sm:$0xff]  ;;  %v1372_v37 = vld [vmem:[#allocation7 + $0x1a50] sm:$0xff] }
 0x1ec   : > { %v4015_v52 = vpack.c.bf16 %v1306_v42, %v1298_v41  ;;  %v1389_v41 = vld [vmem:[#allocation7 + $0x1ad8] sm:$0xff]  ;;  %v4031_v42 = vpack.c.bf16 %v1370_v34, %v1362_v33  ;;  %v4287_v43 = vpack.c.bf16 %v1372_v37, %v1364_v35  ;;  %v1442_v37 = vld [vmem:[#allocation7 + $0x1c80] sm:$0xff] }
 0x1ed   : > { %3996 = vmatpush1.bf16.msra.mxu0 %v3995_v48  ;;  %v5994_v48 = vunpack.c.l.bf16 %v5984_v32  ;;  %v6000_v32 = vunpack.c.h.bf16 %v5997_v51  ;;  %v1437_v17 = vld [vmem:[#allocation7 + $0x1c58] sm:$0xff] }
 0x1ee   : > { %4252 = vmatpush1.bf16.msra.mxu1 %v4251_v49  ;;  %3998 = vmatprep.subr.bf16.mxu0 %v3997_v50  ;;  %v1317_v49 = vld [vmem:[#allocation7 + $0x1898] sm:$0xff] }
 0x1ef   : > { %4254 = vmatprep.subr.bf16.mxu1 %v4253_v54  ;;  %v1325_v50 = vld [vmem:[#allocation7 + $0x18d8] sm:$0xff]  ;;  %v4017_v54 = vpack.c.bf16 %v1323_v47, %v1315_v46  ;;  %v1386_v46 = vld [vmem:[#allocation7 + $0x1ac0] sm:$0xff]  ;;  %v1380_v47 = vld [vmem:[#allocation7 + $0x1a90] sm:$0xff] }
 0x1f0   : > { %v4273_v58 = vpack.c.bf16 %v1325_v50, %v1317_v49  ;;  %v1388_v50 = vld [vmem:[#allocation7 + $0x1ad0] sm:$0xff]  ;;  %v4035_v56 = vpack.c.bf16 %v1386_v46, %v1378_v45  ;;  %v1453_v33 = vld [vmem:[#allocation7 + $0x1cd8] sm:$0xff] }
 0x1f1   : > { %4000 = vmatpush1.bf16.msra.mxu0 %v3999_v60  ;;  %v1331_v60 = vld [vmem:[#allocation7 + $0x1908] sm:$0xff]  ;;  %v4291_v57 = vpack.c.bf16 %v1388_v50, %v1380_v47  ;;  %v1469_v45 = vld [vmem:[#allocation7 + $0x1d58] sm:$0xff]  ;;  %v1458_v50 = vld [vmem:[#allocation7 + $0x1d00] sm:$0xff] }
 0x1f2   : > { %4256 = vmatpush1.bf16.msra.mxu1 %v4255_v61  ;;  %4002 = vmatprep.subr.bf16.mxu0 %v4001_v62  ;;  %v1339_v61 = vld [vmem:[#allocation7 + $0x1948] sm:$0xff]  ;;  %v1333_v62 = vld [vmem:[#allocation7 + $0x1918] sm:$0xff] }
 0x1f3   : > { %4258 = vmatprep.subr.bf16.mxu1 %v4257_v2  ;;  %v4021_v2 = vpack.c.bf16 %v1339_v61, %v1331_v60  ;;  %v4277_v6 = vpack.c.bf16 %v1341_v63, %v1333_v62  ;;  %v1402_v60 = vld [vmem:[#allocation7 + $0x1b40] sm:$0xff]  ;;  %v1396_v61 = vld [vmem:[#allocation7 + $0x1b10] sm:$0xff] }
 0x1f4   : > { %v1404_v63 = vld [vmem:[#allocation7 + $0x1b50] sm:$0xff]  ;;  %v4039_v4 = vpack.c.bf16 %v1402_v60, %v1394_v59  ;;  %v1485_v59 = vld [vmem:[#allocation7 + $0x1dd8] sm:$0xff] }
 0x1f5   : > { %4004 = vmatpush1.bf16.msra.mxu0 %v4003_v8  ;;  %v1347_v8 = vld [vmem:[#allocation7 + $0x1988] sm:$0xff]  ;;  %v4295_v5 = vpack.c.bf16 %v1404_v63, %v1396_v61  ;;  %v1474_v63 = vld [vmem:[#allocation7 + $0x1d80] sm:$0xff] }
 0x1f6   : > { %4260 = vmatpush1.bf16.msra.mxu1 %v4259_v9  ;;  %4006 = vmatprep.subr.bf16.mxu0 %v4005_v10  ;;  %v1355_v9 = vld [vmem:[#allocation7 + $0x19c8] sm:$0xff]  ;;  %v1349_v10 = vld [vmem:[#allocation7 + $0x1998] sm:$0xff] }
 0x1f7   : > { %4262 = vmatprep.subr.bf16.mxu1 %v4261_v15  ;;  %v4025_v15 = vpack.c.bf16 %v1355_v9, %v1347_v8  ;;  %v4281_v21 = vpack.c.bf16 %v1357_v11, %v1349_v10  ;;  %v1418_v8 = vld [vmem:[#allocation7 + $0x1bc0] sm:$0xff]  ;;  %v1412_v9 = vld [vmem:[#allocation7 + $0x1b90] sm:$0xff] }
 0x1f8   : > { %v1420_v11 = vld [vmem:[#allocation7 + $0x1bd0] sm:$0xff]  ;;  %v4043_v18 = vpack.c.bf16 %v1418_v8, %v1410_v7  ;;  %v1501_v7 = vld [vmem:[#allocation7 + $0x1e58] sm:$0xff] }
 0x1f9   : > { %4008 = vmatpush1.bf16.msra.mxu0 %v4007_v24  ;;  %v1363_v24 = vld [vmem:[#allocation7 + $0x1a08] sm:$0xff]  ;;  %v4299_v20 = vpack.c.bf16 %v1420_v11, %v1412_v9  ;;  %v1490_v11 = vld [vmem:[#allocation7 + $0x1e00] sm:$0xff] }
 0x1fa   : > { %4264 = vmatpush1.bf16.msra.mxu1 %v4263_v25  ;;  %4010 = vmatprep.subr.bf16.mxu0 %v4009_v26  ;;  %v1371_v25 = vld [vmem:[#allocation7 + $0x1a48] sm:$0xff]  ;;  %v1365_v26 = vld [vmem:[#allocation7 + $0x1a18] sm:$0xff] }
 0x1fb   : > { %4266 = vmatprep.subr.bf16.mxu1 %v4265_v31  ;;  %v4029_v31 = vpack.c.bf16 %v1371_v25, %v1363_v24  ;;  %v4285_v36 = vpack.c.bf16 %v1373_v27, %v1365_v26  ;;  %v1434_v24 = vld [vmem:[#allocation7 + $0x1c40] sm:$0xff]  ;;  %v1428_v25 = vld [vmem:[#allocation7 + $0x1c10] sm:$0xff] }
 0x1fc   : > { %v1436_v27 = vld [vmem:[#allocation7 + $0x1c50] sm:$0xff]  ;;  %v4047_v34 = vpack.c.bf16 %v1434_v24, %v1426_v22  ;;  %v1517_v22 = vld [vmem:[#allocation7 + $0x1ed8] sm:$0xff] }
 0x1fd   : > { %4012 = vmatpush1.bf16.msra.mxu0 %v4011_v38  ;;  %v1379_v38 = vld [vmem:[#allocation7 + $0x1a88] sm:$0xff]  ;;  %v4303_v35 = vpack.c.bf16 %v1436_v27, %v1428_v25  ;;  %v1506_v27 = vld [vmem:[#allocation7 + $0x1e80] sm:$0xff] }
 0x1fe   : > { %4268 = vmatpush1.bf16.msra.mxu1 %v4267_v39  ;;  %4014 = vmatprep.subr.bf16.mxu0 %v4013_v40  ;;  %v1387_v39 = vld [vmem:[#allocation7 + $0x1ac8] sm:$0xff]  ;;  %v1381_v40 = vld [vmem:[#allocation7 + $0x1a98] sm:$0xff] }
 0x1ff   : > { %4270 = vmatprep.subr.bf16.mxu1 %v4269_v44  ;;  %v4033_v44 = vpack.c.bf16 %v1387_v39, %v1379_v38  ;;  %v4289_v49 = vpack.c.bf16 %v1389_v41, %v1381_v40  ;;  %v1450_v38 = vld [vmem:[#allocation7 + $0x1cc0] sm:$0xff]  ;;  %v1444_v39 = vld [vmem:[#allocation7 + $0x1c90] sm:$0xff] }
 0x200   : > { %1803 = vmatmul.mubr.f32.vlgmr.msra.gmra.mrb[0].mxu0 %v5994_v48  ;;  %v1452_v41 = vld [vmem:[#allocation7 + $0x1cd0] sm:$0xff]  ;;  %v4051_v46 = vpack.c.bf16 %v1450_v38, %v1442_v37  ;;  %v1533_v37 = vld [vmem:[#allocation7 + $0x1f58] sm:$0xff] }
 0x201   : > { %4016 = vmatpush1.bf16.msra.mxu0 %v4015_v52  ;;  %2087 = vmatmul.mubr.f32.vlgmr.msra.gmra.mrb[0].mxu1 %v5994_v48  ;;  %v1395_v52 = vld [vmem:[#allocation7 + $0x1b08] sm:$0xff]  ;;  %v4307_v47 = vpack.c.bf16 %v1452_v41, %v1444_v39  ;;  %v1522_v41 = vld [vmem:[#allocation7 + $0x1f00] sm:$0xff] }
 0x202   : > { %4272 = vmatpush1.bf16.msra.mxu1 %v4271_v53  ;;  %4018 = vmatprep.subr.bf16.mxu0 %v4017_v54  ;;  %v1403_v53 = vld [vmem:[#allocation7 + $0x1b48] sm:$0xff]  ;;  %v1397_v54 = vld [vmem:[#allocation7 + $0x1b18] sm:$0xff] }
 0x203   : > { %4274 = vmatprep.subr.bf16.mxu1 %v4273_v58  ;;  %1873 = vmatprep.mubr.f32.mxu0 %v6000_v32  ;;  %v4037_v58 = vpack.c.bf16 %v1403_v53, %v1395_v52  ;;  %v4293_v62 = vpack.c.bf16 %v1405_v55, %v1397_v54  ;;  %v1466_v52 = vld [vmem:[#allocation7 + $0x1d40] sm:$0xff]  ;;  %v1460_v53 = vld [vmem:[#allocation7 + $0x1d10] sm:$0xff] }
 0x204   : > { %2157 = vmatprep.mubr.f32.mxu1 %v6000_v32  ;;  %v1468_v55 = vld [vmem:[#allocation7 + $0x1d50] sm:$0xff]  ;;  %v4055_v60 = vpack.c.bf16 %v1466_v52, %v1458_v50  ;;  %v1549_v50 = vld [vmem:[#allocation7 + $0x1fd8] sm:$0xff] }
 0x205   : > { %4020 = vmatpush1.bf16.msra.mxu0 %v4019_v0  ;;  %v1411_v0 = vld [vmem:[#allocation7 + $0x1b88] sm:$0xff]  ;;  %v4311_v61 = vpack.c.bf16 %v1468_v55, %v1460_v53  ;;  %v1538_v55 = vld [vmem:[#allocation7 + $0x1f80] sm:$0xff] }
 0x206   : > { %4276 = vmatpush1.bf16.msra.mxu1 %v4275_v1  ;;  %4022 = vmatprep.subr.bf16.mxu0 %v4021_v2  ;;  %v1419_v1 = vld [vmem:[#allocation7 + $0x1bc8] sm:$0xff]  ;;  %v1413_v2 = vld [vmem:[#allocation7 + $0x1b98] sm:$0xff] }
 0x207   : > { %4278 = vmatprep.subr.bf16.mxu1 %v4277_v6  ;;  %v4041_v6 = vpack.c.bf16 %v1419_v1, %v1411_v0  ;;  %v4297_v10 = vpack.c.bf16 %v1421_v3, %v1413_v2  ;;  %v1482_v0 = vld [vmem:[#allocation7 + $0x1dc0] sm:$0xff]  ;;  %v1476_v1 = vld [vmem:[#allocation7 + $0x1d90] sm:$0xff] }
 0x208   : > { %v1484_v3 = vld [vmem:[#allocation7 + $0x1dd0] sm:$0xff]  ;;  %v4059_v8 = vpack.c.bf16 %v1482_v0, %v1474_v63  ;;  %v545_v63 = vld [vmem:[#allocation7 + $0x78] sm:$0xff] }
 0x209   : > { %4024 = vmatpush1.bf16.msra.mxu0 %v4023_v12  ;;  %v1427_v12 = vld [vmem:[#allocation7 + $0x1c08] sm:$0xff]  ;;  %v4315_v9 = vpack.c.bf16 %v1484_v3, %v1476_v1  ;;  %v534_v3 = vld [vmem:[#allocation7 + $0x20] sm:$0xff] }
 0x20a   : > { %4280 = vmatpush1.bf16.msra.mxu1 %v4279_v13  ;;  %4026 = vmatprep.subr.bf16.mxu0 %v4025_v15  ;;  %v1435_v13 = vld [vmem:[#allocation7 + $0x1c48] sm:$0xff]  ;;  %v1429_v15 = vld [vmem:[#allocation7 + $0x1c18] sm:$0xff] }
 0x20b   : > { %4282 = vmatprep.subr.bf16.mxu1 %v4281_v21  ;;  %v4045_v21 = vpack.c.bf16 %v1435_v13, %v1427_v12  ;;  %v4301_v26 = vpack.c.bf16 %v1437_v17, %v1429_v15  ;;  %v1498_v12 = vld [vmem:[#allocation7 + $0x1e40] sm:$0xff]  ;;  %v1492_v13 = vld [vmem:[#allocation7 + $0x1e10] sm:$0xff] }
 0x20c   : > { %v1500_v17 = vld [vmem:[#allocation7 + $0x1e50] sm:$0xff]  ;;  %v4063_v24 = vpack.c.bf16 %v1498_v12, %v1490_v11  ;;  %v553_v11 = vld [vmem:[#allocation7 + $0xb8] sm:$0xff] }
 0x20d   : > { %4028 = vmatpush1.bf16.msra.mxu0 %v4027_v29  ;;  %v1443_v29 = vld [vmem:[#allocation7 + $0x1c88] sm:$0xff]  ;;  %v4319_v25 = vpack.c.bf16 %v1500_v17, %v1492_v13  ;;  %v561_v12 = vld [vmem:[#allocation7 + $0xf8] sm:$0xff] }
 0x20e   : > { %4284 = vmatpush1.bf16.msra.mxu1 %v4283_v30  ;;  %4030 = vmatprep.subr.bf16.mxu0 %v4029_v31  ;;  %v1451_v30 = vld [vmem:[#allocation7 + $0x1cc8] sm:$0xff]  ;;  %v1445_v31 = vld [vmem:[#allocation7 + $0x1c98] sm:$0xff] }
 0x20f   : > { %4286 = vmatprep.subr.bf16.mxu1 %v4285_v36  ;;  %v4049_v36 = vpack.c.bf16 %v1451_v30, %v1443_v29  ;;  %v4305_v40 = vpack.c.bf16 %v1453_v33, %v1445_v31  ;;  %v1514_v29 = vld [vmem:[#allocation7 + $0x1ec0] sm:$0xff]  ;;  %v1508_v30 = vld [vmem:[#allocation7 + $0x1e90] sm:$0xff] }
 0x210   : > { %v1516_v33 = vld [vmem:[#allocation7 + $0x1ed0] sm:$0xff]  ;;  %v4067_v38 = vpack.c.bf16 %v1514_v29, %v1506_v27  ;;  %v577_v27 = vld [vmem:[#allocation7 + $0x178] sm:$0xff] }
 0x211   : > { %4032 = vmatpush1.bf16.msra.mxu0 %v4031_v42  ;;  %v1459_v42 = vld [vmem:[#allocation7 + $0x1d08] sm:$0xff]  ;;  %v4323_v39 = vpack.c.bf16 %v1516_v33, %v1508_v30  ;;  %v566_v33 = vld [vmem:[#allocation7 + $0x120] sm:$0xff] }
 0x212   : > { %4288 = vmatpush1.bf16.msra.mxu1 %v4287_v43  ;;  %4034 = vmatprep.subr.bf16.mxu0 %v4033_v44  ;;  %v1467_v43 = vld [vmem:[#allocation7 + $0x1d48] sm:$0xff]  ;;  %v1461_v44 = vld [vmem:[#allocation7 + $0x1d18] sm:$0xff] }
 0x213   : > { %4290 = vmatprep.subr.bf16.mxu1 %v4289_v49  ;;  %v4053_v49 = vpack.c.bf16 %v1467_v43, %v1459_v42  ;;  %v4309_v54 = vpack.c.bf16 %v1469_v45, %v1461_v44  ;;  %v1530_v42 = vld [vmem:[#allocation7 + $0x1f40] sm:$0xff]  ;;  %v1524_v43 = vld [vmem:[#allocation7 + $0x1f10] sm:$0xff] }
 0x214   : > { %v1532_v45 = vld [vmem:[#allocation7 + $0x1f50] sm:$0xff]  ;;  %v4071_v52 = vpack.c.bf16 %v1530_v42, %v1522_v41  ;;  %v593_v41 = vld [vmem:[#allocation7 + $0x1f8] sm:$0xff] }
 0x215   : > { %4036 = vmatpush1.bf16.msra.mxu0 %v4035_v56  ;;  %v1475_v56 = vld [vmem:[#allocation7 + $0x1d88] sm:$0xff]  ;;  %v4327_v53 = vpack.c.bf16 %v1532_v45, %v1524_v43  ;;  %v582_v45 = vld [vmem:[#allocation7 + $0x1a0] sm:$0xff] }
 0x216   : > { %4292 = vmatpush1.bf16.msra.mxu1 %v4291_v57  ;;  %4038 = vmatprep.subr.bf16.mxu0 %v4037_v58  ;;  %v1483_v57 = vld [vmem:[#allocation7 + $0x1dc8] sm:$0xff]  ;;  %v1477_v58 = vld [vmem:[#allocation7 + $0x1d98] sm:$0xff] }
 0x217   : > { %4294 = vmatprep.subr.bf16.mxu1 %v4293_v62  ;;  %v4057_v62 = vpack.c.bf16 %v1483_v57, %v1475_v56  ;;  %v4313_v2 = vpack.c.bf16 %v1485_v59, %v1477_v58  ;;  %v1546_v56 = vld [vmem:[#allocation7 + $0x1fc0] sm:$0xff]  ;;  %v1540_v57 = vld [vmem:[#allocation7 + $0x1f90] sm:$0xff] }
 0x218   : > { %v1548_v59 = vld [vmem:[#allocation7 + $0x1fd0] sm:$0xff]  ;;  %v4075_v0 = vpack.c.bf16 %v1546_v56, %v1538_v55  ;;  %v609_v55 = vld [vmem:[#allocation7 + $0x278] sm:$0xff] }
 0x219   : > { %4040 = vmatpush1.bf16.msra.mxu0 %v4039_v4  ;;  %v1491_v4 = vld [vmem:[#allocation7 + $0x1e08] sm:$0xff]  ;;  %v4331_v1 = vpack.c.bf16 %v1548_v59, %v1540_v57  ;;  %v606_v59 = vld [vmem:[#allocation7 + $0x260] sm:$0xff] }
 0x21a   : > { %4296 = vmatpush1.bf16.msra.mxu1 %v4295_v5  ;;  %4042 = vmatprep.subr.bf16.mxu0 %v4041_v6  ;;  %v1499_v5 = vld [vmem:[#allocation7 + $0x1e48] sm:$0xff]  ;;  %v1493_v6 = vld [vmem:[#allocation7 + $0x1e18] sm:$0xff] }
 0x21b   : > { %4298 = vmatprep.subr.bf16.mxu1 %v4297_v10  ;;  %v4061_v10 = vpack.c.bf16 %v1499_v5, %v1491_v4  ;;  %v4317_v15 = vpack.c.bf16 %v1501_v7, %v1493_v6  ;;  %v542_v4 = vld [vmem:[#allocation7 + $0x60] sm:$0xff]  ;;  %v536_v5 = vld [vmem:[#allocation7 + $0x30] sm:$0xff] }
 0x21c   : > { %v544_v7 = vld [vmem:[#allocation7 + $0x70] sm:$0xff]  ;;  %v4335_v13 = vpack.c.bf16 %v542_v4, %v534_v3 }
 0x21d   : > { %4044 = vmatpush1.bf16.msra.mxu0 %v4043_v18  ;;  %v1507_v18 = vld [vmem:[#allocation7 + $0x1e88] sm:$0xff] }
 0x21e   : > { %4300 = vmatpush1.bf16.msra.mxu1 %v4299_v20  ;;  %4046 = vmatprep.subr.bf16.mxu0 %v4045_v21  ;;  %v1515_v20 = vld [vmem:[#allocation7 + $0x1ec8] sm:$0xff]  ;;  %v1509_v21 = vld [vmem:[#allocation7 + $0x1e98] sm:$0xff] }
 0x21f   : > { %4302 = vmatprep.subr.bf16.mxu1 %v4301_v26  ;;  %v4065_v26 = vpack.c.bf16 %v1515_v20, %v1507_v18  ;;  %v4321_v31 = vpack.c.bf16 %v1517_v22, %v1509_v21  ;;  %v550_v18 = vld [vmem:[#allocation7 + $0xa0] sm:$0xff]  ;;  %v552_v21 = vld [vmem:[#allocation7 + $0xb0] sm:$0xff]  ;;  %v4593_v22 = vpack.c.bf16 %v561_v12, %v553_v11  ;;  %v631_v12 = vld [vmem:[#allocation7 + $0x328] sm:$0xff] }
 0x220   : > { %v558_v20 = vld [vmem:[#allocation7 + $0xe0] sm:$0xff]  ;;  %v624_v11 = vld [vmem:[#allocation7 + $0x2f0] sm:$0xff] }
 0x221   : > { %4048 = vmatpush1.bf16.msra.mxu0 %v4047_v34  ;;  %v1523_v34 = vld [vmem:[#allocation7 + $0x1f08] sm:$0xff]  ;;  %v4339_v29 = vpack.c.bf16 %v558_v20, %v550_v18 }
 0x222   : > { %4304 = vmatpush1.bf16.msra.mxu1 %v4303_v35  ;;  %4050 = vmatprep.subr.bf16.mxu0 %v4049_v36  ;;  %v1531_v35 = vld [vmem:[#allocation7 + $0x1f48] sm:$0xff]  ;;  %v1525_v36 = vld [vmem:[#allocation7 + $0x1f18] sm:$0xff] }
 0x223   : > { %4306 = vmatprep.subr.bf16.mxu1 %v4305_v40  ;;  %v4069_v40 = vpack.c.bf16 %v1531_v35, %v1523_v34  ;;  %v4325_v44 = vpack.c.bf16 %v1533_v37, %v1525_v36  ;;  %v574_v34 = vld [vmem:[#allocation7 + $0x160] sm:$0xff]  ;;  %v568_v35 = vld [vmem:[#allocation7 + $0x130] sm:$0xff] }
 0x224   : > { %v576_v37 = vld [vmem:[#allocation7 + $0x170] sm:$0xff]  ;;  %v4343_v42 = vpack.c.bf16 %v574_v34, %v566_v33 }
 0x225   : > { %4052 = vmatpush1.bf16.msra.mxu0 %v4051_v46  ;;  %v1539_v46 = vld [vmem:[#allocation7 + $0x1f88] sm:$0xff]  ;;  %v4599_v43 = vpack.c.bf16 %v576_v37, %v568_v35  ;;  %v654_v37 = vld [vmem:[#allocation7 + $0x3e0] sm:$0xff] }
 0x226   : > { %4308 = vmatpush1.bf16.msra.mxu1 %v4307_v47  ;;  %4054 = vmatprep.subr.bf16.mxu0 %v4053_v49  ;;  %v1547_v47 = vld [vmem:[#allocation7 + $0x1fc8] sm:$0xff]  ;;  %v1541_v49 = vld [vmem:[#allocation7 + $0x1f98] sm:$0xff] }
 0x227   : > { %4310 = vmatprep.subr.bf16.mxu1 %v4309_v54  ;;  %v4073_v54 = vpack.c.bf16 %v1547_v47, %v1539_v46  ;;  %v4329_v58 = vpack.c.bf16 %v1549_v50, %v1541_v49  ;;  %v590_v46 = vld [vmem:[#allocation7 + $0x1e0] sm:$0xff]  ;;  %v584_v47 = vld [vmem:[#allocation7 + $0x1b0] sm:$0xff] }
 0x228   : > { %v592_v50 = vld [vmem:[#allocation7 + $0x1f0] sm:$0xff]  ;;  %v4347_v56 = vpack.c.bf16 %v590_v46, %v582_v45 }
 0x229   : > { %4056 = vmatpush1.bf16.msra.mxu0 %v4055_v60  ;;  %v535_v60 = vld [vmem:[#allocation7 + $0x28] sm:$0xff] }
 0x22a   : > { %4312 = vmatpush1.bf16.msra.mxu1 %v4311_v61  ;;  %4058 = vmatprep.subr.bf16.mxu0 %v4057_v62  ;;  %v543_v61 = vld [vmem:[#allocation7 + $0x68] sm:$0xff]  ;;  %v537_v62 = vld [vmem:[#allocation7 + $0x38] sm:$0xff] }
 0x22b   : > { %4314 = vmatprep.subr.bf16.mxu1 %v4313_v2  ;;  %v4333_v2 = vpack.c.bf16 %v543_v61, %v535_v60  ;;  %v4589_v6 = vpack.c.bf16 %v545_v63, %v537_v62  ;;  %v600_v60 = vld [vmem:[#allocation7 + $0x230] sm:$0xff]  ;;  %v615_v63 = vld [vmem:[#allocation7 + $0x2a8] sm:$0xff] }
 0x22c   : > { %v608_v62 = vld [vmem:[#allocation7 + $0x270] sm:$0xff] }
 0x22d   : > { %4060 = vmatpush1.bf16.msra.mxu0 %v4059_v8  ;;  %v551_v8 = vld [vmem:[#allocation7 + $0xa8] sm:$0xff]  ;;  %v4607_v4 = vpack.c.bf16 %v608_v62, %v600_v60  ;;  %v686_v62 = vld [vmem:[#allocation7 + $0x4e0] sm:$0xff] }
 0x22e   : > { %4316 = vmatpush1.bf16.msra.mxu1 %v4315_v9  ;;  %4062 = vmatprep.subr.bf16.mxu0 %v4061_v10  ;;  %v559_v9 = vld [vmem:[#allocation7 + $0xe8] sm:$0xff]  ;;  %v6007_v10 = vunpack.c.l.bf16 %v5997_v51  ;;  %v569_v51 = vld [vmem:[#allocation7 + $0x138] sm:$0xff] }
 0x22f   : > { %4318 = vmatprep.subr.bf16.mxu1 %v4317_v15  ;;  %v4591_v15 = vpack.c.bf16 %v544_v7, %v536_v5  ;;  %v4337_v17 = vpack.c.bf16 %v559_v9, %v551_v8  ;;  %v4597_v36 = vpack.c.bf16 %v577_v27, %v569_v51  ;;  %v622_v7 = vld [vmem:[#allocation7 + $0x2e0] sm:$0xff]  ;;  %v616_v8 = vld [vmem:[#allocation7 + $0x2b0] sm:$0xff]  ;;  %v647_v27 = vld [vmem:[#allocation7 + $0x3a8] sm:$0xff] }
 0x230   : > { %v4611_v20 = vpack.c.bf16 %v624_v11, %v616_v8  ;;  %v640_v51 = vld [vmem:[#allocation7 + $0x370] sm:$0xff]  ;;  %v702_v11 = vld [vmem:[#allocation7 + $0x560] sm:$0xff] }
 0x231   : > { %4064 = vmatpush1.bf16.msra.mxu0 %v4063_v24  ;;  %v560_v24 = vld [vmem:[#allocation7 + $0xf0] sm:$0xff] }
 0x232   : > { %4320 = vmatpush1.bf16.msra.mxu1 %v4319_v25  ;;  %4066 = vmatprep.subr.bf16.mxu0 %v4065_v26  ;;  %v567_v25 = vld [vmem:[#allocation7 + $0x128] sm:$0xff]  ;;  %v4595_v30 = vpack.c.bf16 %v560_v24, %v552_v21  ;;  %v638_v24 = vld [vmem:[#allocation7 + $0x360] sm:$0xff] }
 0x233   : > { %4322 = vmatprep.subr.bf16.mxu1 %v4321_v31  ;;  %v575_v26 = vld [vmem:[#allocation7 + $0x168] sm:$0xff] }
 0x234   : > { %v4341_v31 = vpack.c.bf16 %v575_v26, %v567_v25  ;;  %v632_v25 = vld [vmem:[#allocation7 + $0x330] sm:$0xff] }
 0x235   : > { %4068 = vmatpush1.bf16.msra.mxu0 %v4067_v38  ;;  %v583_v38 = vld [vmem:[#allocation7 + $0x1a8] sm:$0xff]  ;;  %v4615_v34 = vpack.c.bf16 %v640_v51, %v632_v25  ;;  %v718_v51 = vld [vmem:[#allocation7 + $0x5e0] sm:$0xff] }
 0x236   : > { %4324 = vmatpush1.bf16.msra.mxu1 %v4323_v39  ;;  %4070 = vmatprep.subr.bf16.mxu0 %v4069_v40  ;;  %v591_v39 = vld [vmem:[#allocation7 + $0x1e8] sm:$0xff]  ;;  %v585_v40 = vld [vmem:[#allocation7 + $0x1b8] sm:$0xff] }
 0x237   : > { %4326 = vmatprep.subr.bf16.mxu1 %v4325_v44  ;;  %v4345_v44 = vpack.c.bf16 %v591_v39, %v583_v38  ;;  %v4601_v49 = vpack.c.bf16 %v593_v41, %v585_v40  ;;  %v648_v38 = vld [vmem:[#allocation7 + $0x3b0] sm:$0xff]  ;;  %v663_v41 = vld [vmem:[#allocation7 + $0x428] sm:$0xff] }
 0x238   : > { %v656_v40 = vld [vmem:[#allocation7 + $0x3f0] sm:$0xff] }
 0x239   : > { %4072 = vmatpush1.bf16.msra.mxu0 %v4071_v52  ;;  %v599_v52 = vld [vmem:[#allocation7 + $0x228] sm:$0xff]  ;;  %v4619_v46 = vpack.c.bf16 %v656_v40, %v648_v38  ;;  %v734_v40 = vld [vmem:[#allocation7 + $0x660] sm:$0xff] }
 0x23a   : > { %4328 = vmatpush1.bf16.msra.mxu1 %v4327_v53  ;;  %4074 = vmatprep.subr.bf16.mxu0 %v4073_v54  ;;  %v607_v53 = vld [vmem:[#allocation7 + $0x268] sm:$0xff]  ;;  %v601_v54 = vld [vmem:[#allocation7 + $0x238] sm:$0xff] }
 0x23b   : > { %4330 = vmatprep.subr.bf16.mxu1 %v4329_v58  ;;  %v4349_v57 = vpack.c.bf16 %v607_v53, %v599_v52  ;;  %v598_v58 = vld [vmem:[#allocation7 + $0x220] sm:$0xff]  ;;  %v4605_v61 = vpack.c.bf16 %v609_v55, %v601_v54  ;;  %v664_v52 = vld [vmem:[#allocation7 + $0x430] sm:$0xff]  ;;  %v679_v55 = vld [vmem:[#allocation7 + $0x4a8] sm:$0xff] }
 0x23c   : > { %v4351_v3 = vpack.c.bf16 %v606_v59, %v598_v58  ;;  %v672_v54 = vld [vmem:[#allocation7 + $0x470] sm:$0xff] }
 0x23d   : > { %4076 = vmatpush1.bf16.msra.mxu0 %v4075_v0  ;;  %v623_v0 = vld [vmem:[#allocation7 + $0x2e8] sm:$0xff]  ;;  %v4623_v59 = vpack.c.bf16 %v672_v54, %v664_v52  ;;  %v750_v54 = vld [vmem:[#allocation7 + $0x6e0] sm:$0xff] }
 0x23e   : > { %4332 = vmatpush1.bf16.msra.mxu1 %v4331_v1  ;;  %4334 = vmatprep.subr.bf16.mxu0 %v4333_v2  ;;  %v617_v1 = vld [vmem:[#allocation7 + $0x2b8] sm:$0xff]  ;;  %v4353_v5 = vpack.c.bf16 %v623_v0, %v615_v63  ;;  %v680_v63 = vld [vmem:[#allocation7 + $0x4b0] sm:$0xff] }
 0x23f   : > { %4590 = vmatprep.subr.bf16.mxu1 %v4589_v6  ;;  %v625_v2 = vld [vmem:[#allocation7 + $0x2f8] sm:$0xff]  ;;  %v614_v6 = vld [vmem:[#allocation7 + $0x2a0] sm:$0xff] }
 0x240   : > { %1874 = vmatmul.mubr.f32.vlgmr.msra.gmra.mrb[0].mxu0 %v6007_v10  ;;  %v4609_v9 = vpack.c.bf16 %v625_v2, %v617_v1  ;;  %v4355_v18 = vpack.c.bf16 %v622_v7, %v614_v6  ;;  %v688_v1 = vld [vmem:[#allocation7 + $0x4f0] sm:$0xff]  ;;  %v695_v2 = vld [vmem:[#allocation7 + $0x528] sm:$0xff] }
 0x241   : > { %2158 = vmatmul.mubr.f32.vlgmr.msra.gmra.mrb[0].mxu1 %v6007_v10  ;;  %4336 = vmatpush1.bf16.msra.mxu0 %v4335_v13  ;;  %v639_v13 = vld [vmem:[#allocation7 + $0x368] sm:$0xff]  ;;  %v4627_v7 = vpack.c.bf16 %v688_v1, %v680_v63  ;;  %v766_v1 = vld [vmem:[#allocation7 + $0x760] sm:$0xff] }
 0x242   : > { %4592 = vmatpush1.bf16.msra.mxu1 %v4591_v15  ;;  %4338 = vmatprep.subr.bf16.mxu0 %v4337_v17  ;;  %v633_v15 = vld [vmem:[#allocation7 + $0x338] sm:$0xff]  ;;  %v4357_v21 = vpack.c.bf16 %v639_v13, %v631_v12  ;;  %v696_v12 = vld [vmem:[#allocation7 + $0x530] sm:$0xff] }
 0x243   : > { %4594 = vmatprep.subr.bf16.mxu1 %v4593_v22  ;;  %2228 = vmatprep.mubr.f32.mxu0 %v5963_v19  ;;  %v641_v17 = vld [vmem:[#allocation7 + $0x378] sm:$0xff]  ;;  %v630_v22 = vld [vmem:[#allocation7 + $0x320] sm:$0xff] }
 0x244   : > { %2512 = vmatprep.mubr.f32.mxu1 %v5963_v19  ;;  %v4603_v19 = vpack.c.bf16 %v592_v50, %v584_v47  ;;  %v4613_v26 = vpack.c.bf16 %v641_v17, %v633_v15  ;;  %v4359_v33 = vpack.c.bf16 %v638_v24, %v630_v22  ;;  %v670_v50 = vld [vmem:[#allocation7 + $0x460] sm:$0xff]  ;;  %v704_v15 = vld [vmem:[#allocation7 + $0x570] sm:$0xff]  ;;  %v711_v17 = vld [vmem:[#allocation7 + $0x5a8] sm:$0xff] }
 0x245   : > { %4340 = vmatpush1.bf16.msra.mxu0 %v4339_v29  ;;  %v655_v29 = vld [vmem:[#allocation7 + $0x3e8] sm:$0xff]  ;;  %v4631_v24 = vpack.c.bf16 %v704_v15, %v696_v12  ;;  %v782_v15 = vld [vmem:[#allocation7 + $0x7e0] sm:$0xff] }
 0x246   : > { %4596 = vmatpush1.bf16.msra.mxu1 %v4595_v30  ;;  %4342 = vmatprep.subr.bf16.mxu0 %v4341_v31  ;;  %v649_v30 = vld [vmem:[#allocation7 + $0x3b8] sm:$0xff]  ;;  %v4361_v35 = vpack.c.bf16 %v655_v29, %v647_v27  ;;  %v712_v27 = vld [vmem:[#allocation7 + $0x5b0] sm:$0xff] }
 0x247   : > { %4598 = vmatprep.subr.bf16.mxu1 %v4597_v36  ;;  %v657_v31 = vld [vmem:[#allocation7 + $0x3f8] sm:$0xff]  ;;  %v646_v36 = vld [vmem:[#allocation7 + $0x3a0] sm:$0xff] }
 0x248   : > { %v4617_v39 = vpack.c.bf16 %v657_v31, %v649_v30  ;;  %v4363_v45 = vpack.c.bf16 %v654_v37, %v646_v36  ;;  %v720_v30 = vld [vmem:[#allocation7 + $0x5f0] sm:$0xff]  ;;  %v727_v31 = vld [vmem:[#allocation7 + $0x628] sm:$0xff] }
 0x249   : > { %4344 = vmatpush1.bf16.msra.mxu0 %v4343_v42  ;;  %v671_v42 = vld [vmem:[#allocation7 + $0x468] sm:$0xff]  ;;  %v4635_v37 = vpack.c.bf16 %v720_v30, %v712_v27  ;;  %v798_v30 = vld [vmem:[#allocation7 + $0x860] sm:$0xff] }
 0x24a   : > { %4600 = vmatpush1.bf16.msra.mxu1 %v4599_v43  ;;  %4346 = vmatprep.subr.bf16.mxu0 %v4345_v44  ;;  %v665_v43 = vld [vmem:[#allocation7 + $0x438] sm:$0xff]  ;;  %v4365_v47 = vpack.c.bf16 %v671_v42, %v663_v41  ;;  %v728_v41 = vld [vmem:[#allocation7 + $0x630] sm:$0xff] }
 0x24b   : > { %4602 = vmatprep.subr.bf16.mxu1 %v4601_v49  ;;  %v673_v44 = vld [vmem:[#allocation7 + $0x478] sm:$0xff]  ;;  %v662_v49 = vld [vmem:[#allocation7 + $0x420] sm:$0xff] }
 0x24c   : > { %v4621_v53 = vpack.c.bf16 %v673_v44, %v665_v43  ;;  %v4367_v58 = vpack.c.bf16 %v670_v50, %v662_v49  ;;  %v736_v43 = vld [vmem:[#allocation7 + $0x670] sm:$0xff]  ;;  %v743_v44 = vld [vmem:[#allocation7 + $0x6a8] sm:$0xff] }
 0x24d   : > { %4348 = vmatpush1.bf16.msra.mxu0 %v4347_v56  ;;  %v687_v56 = vld [vmem:[#allocation7 + $0x4e8] sm:$0xff]  ;;  %v4639_v50 = vpack.c.bf16 %v736_v43, %v728_v41  ;;  %v814_v43 = vld [vmem:[#allocation7 + $0x8e0] sm:$0xff] }
 0x24e   : > { %4604 = vmatpush1.bf16.msra.mxu1 %v4603_v19  ;;  %4350 = vmatprep.subr.bf16.mxu0 %v4349_v57  ;;  %v681_v19 = vld [vmem:[#allocation7 + $0x4b8] sm:$0xff]  ;;  %v4369_v60 = vpack.c.bf16 %v687_v56, %v679_v55  ;;  %v744_v55 = vld [vmem:[#allocation7 + $0x6b0] sm:$0xff] }
 0x24f   : > { %4606 = vmatprep.subr.bf16.mxu1 %v4605_v61  ;;  %v689_v57 = vld [vmem:[#allocation7 + $0x4f8] sm:$0xff]  ;;  %v678_v61 = vld [vmem:[#allocation7 + $0x4a0] sm:$0xff] }
 0x250   : > { %v4625_v0 = vpack.c.bf16 %v689_v57, %v681_v19  ;;  %v4371_v6 = vpack.c.bf16 %v686_v62, %v678_v61  ;;  %v752_v19 = vld [vmem:[#allocation7 + $0x6f0] sm:$0xff]  ;;  %v759_v57 = vld [vmem:[#allocation7 + $0x728] sm:$0xff] }
 0x251   : > { %4352 = vmatpush1.bf16.msra.mxu0 %v4351_v3  ;;  %v703_v3 = vld [vmem:[#allocation7 + $0x568] sm:$0xff]  ;;  %v4643_v62 = vpack.c.bf16 %v752_v19, %v744_v55  ;;  %v830_v19 = vld [vmem:[#allocation7 + $0x960] sm:$0xff] }
 0x252   : > { %4608 = vmatpush1.bf16.msra.mxu1 %v4607_v4  ;;  %4354 = vmatprep.subr.bf16.mxu0 %v4353_v5  ;;  %v697_v4 = vld [vmem:[#allocation7 + $0x538] sm:$0xff]  ;;  %v4373_v8 = vpack.c.bf16 %v703_v3, %v695_v2  ;;  %v760_v2 = vld [vmem:[#allocation7 + $0x730] sm:$0xff] }
 0x253   : > { %4610 = vmatprep.subr.bf16.mxu1 %v4609_v9  ;;  %v705_v5 = vld [vmem:[#allocation7 + $0x578] sm:$0xff]  ;;  %v694_v9 = vld [vmem:[#allocation7 + $0x520] sm:$0xff] }
 0x254   : > { %v4629_v13 = vpack.c.bf16 %v705_v5, %v697_v4  ;;  %v4375_v22 = vpack.c.bf16 %v702_v11, %v694_v9  ;;  %v768_v4 = vld [vmem:[#allocation7 + $0x770] sm:$0xff]  ;;  %v775_v5 = vld [vmem:[#allocation7 + $0x7a8] sm:$0xff] }
 0x255   : > { %4356 = vmatpush1.bf16.msra.mxu0 %v4355_v18  ;;  %v719_v18 = vld [vmem:[#allocation7 + $0x5e8] sm:$0xff]  ;;  %v4647_v11 = vpack.c.bf16 %v768_v4, %v760_v2  ;;  %v838_v2 = vld [vmem:[#allocation7 + $0x9a0] sm:$0xff]  ;;  %v840_v4 = vld [vmem:[#allocation7 + $0x9b0] sm:$0xff] }
 0x256   : > { %4612 = vmatpush1.bf16.msra.mxu1 %v4611_v20  ;;  %4358 = vmatprep.subr.bf16.mxu0 %v4357_v21  ;;  %v713_v20 = vld [vmem:[#allocation7 + $0x5b8] sm:$0xff]  ;;  %v4377_v25 = vpack.c.bf16 %v719_v18, %v711_v17  ;;  %v776_v17 = vld [vmem:[#allocation7 + $0x7b0] sm:$0xff] }
 0x257   : > { %4614 = vmatprep.subr.bf16.mxu1 %v4613_v26  ;;  %v721_v21 = vld [vmem:[#allocation7 + $0x5f8] sm:$0xff]  ;;  %v710_v26 = vld [vmem:[#allocation7 + $0x5a0] sm:$0xff] }
 0x258   : > { %v4633_v29 = vpack.c.bf16 %v721_v21, %v713_v20  ;;  %v4379_v36 = vpack.c.bf16 %v718_v51, %v710_v26  ;;  %v784_v20 = vld [vmem:[#allocation7 + $0x7f0] sm:$0xff]  ;;  %v791_v21 = vld [vmem:[#allocation7 + $0x828] sm:$0xff] }
 0x259   : > { %4360 = vmatpush1.bf16.msra.mxu0 %v4359_v33  ;;  %v735_v33 = vld [vmem:[#allocation7 + $0x668] sm:$0xff]  ;;  %v4651_v51 = vpack.c.bf16 %v784_v20, %v776_v17  ;;  %v862_v17 = vld [vmem:[#allocation7 + $0xa60] sm:$0xff] }
 0x25a   : > { %4616 = vmatpush1.bf16.msra.mxu1 %v4615_v34  ;;  %4362 = vmatprep.subr.bf16.mxu0 %v4361_v35  ;;  %v729_v34 = vld [vmem:[#allocation7 + $0x638] sm:$0xff]  ;;  %v4381_v38 = vpack.c.bf16 %v735_v33, %v727_v31  ;;  %v792_v31 = vld [vmem:[#allocation7 + $0x830] sm:$0xff] }
 0x25b   : > { %4618 = vmatprep.subr.bf16.mxu1 %v4617_v39  ;;  %v737_v35 = vld [vmem:[#allocation7 + $0x678] sm:$0xff]  ;;  %v726_v39 = vld [vmem:[#allocation7 + $0x620] sm:$0xff] }
 0x25c   : > { %v4637_v42 = vpack.c.bf16 %v737_v35, %v729_v34  ;;  %v4383_v49 = vpack.c.bf16 %v734_v40, %v726_v39  ;;  %v800_v34 = vld [vmem:[#allocation7 + $0x870] sm:$0xff]  ;;  %v807_v35 = vld [vmem:[#allocation7 + $0x8a8] sm:$0xff] }
 0x25d   : > { %4364 = vmatpush1.bf16.msra.mxu0 %v4363_v45  ;;  %v751_v45 = vld [vmem:[#allocation7 + $0x6e8] sm:$0xff]  ;;  %v4655_v40 = vpack.c.bf16 %v800_v34, %v792_v31  ;;  %v878_v31 = vld [vmem:[#allocation7 + $0xae0] sm:$0xff] }
 0x25e   : > { %4620 = vmatpush1.bf16.msra.mxu1 %v4619_v46  ;;  %4366 = vmatprep.subr.bf16.mxu0 %v4365_v47  ;;  %v745_v46 = vld [vmem:[#allocation7 + $0x6b8] sm:$0xff]  ;;  %v4385_v52 = vpack.c.bf16 %v751_v45, %v743_v44  ;;  %v808_v44 = vld [vmem:[#allocation7 + $0x8b0] sm:$0xff] }
 0x25f   : > { %4622 = vmatprep.subr.bf16.mxu1 %v4621_v53  ;;  %v753_v47 = vld [vmem:[#allocation7 + $0x6f8] sm:$0xff]  ;;  %v742_v53 = vld [vmem:[#allocation7 + $0x6a0] sm:$0xff] }
 0x260   : > { %v4641_v56 = vpack.c.bf16 %v753_v47, %v745_v46  ;;  %v4387_v61 = vpack.c.bf16 %v750_v54, %v742_v53  ;;  %v816_v46 = vld [vmem:[#allocation7 + $0x8f0] sm:$0xff]  ;;  %v823_v47 = vld [vmem:[#allocation7 + $0x928] sm:$0xff] }
 0x261   : > { %4368 = vmatpush1.bf16.msra.mxu0 %v4367_v58  ;;  %v767_v58 = vld [vmem:[#allocation7 + $0x768] sm:$0xff]  ;;  %v4659_v54 = vpack.c.bf16 %v816_v46, %v808_v44  ;;  %v894_v44 = vld [vmem:[#allocation7 + $0xb60] sm:$0xff] }
 0x262   : > { %4624 = vmatpush1.bf16.msra.mxu1 %v4623_v59  ;;  %4370 = vmatprep.subr.bf16.mxu0 %v4369_v60  ;;  %v761_v59 = vld [vmem:[#allocation7 + $0x738] sm:$0xff]  ;;  %v4389_v63 = vpack.c.bf16 %v767_v58, %v759_v57  ;;  %v824_v57 = vld [vmem:[#allocation7 + $0x930] sm:$0xff] }
 0x263   : > { %4626 = vmatprep.subr.bf16.mxu1 %v4625_v0  ;;  %v769_v60 = vld [vmem:[#allocation7 + $0x778] sm:$0xff]  ;;  %v758_v0 = vld [vmem:[#allocation7 + $0x720] sm:$0xff] }
 0x264   : > { %v4645_v3 = vpack.c.bf16 %v769_v60, %v761_v59  ;;  %v4391_v9 = vpack.c.bf16 %v766_v1, %v758_v0  ;;  %v832_v59 = vld [vmem:[#allocation7 + $0x970] sm:$0xff]  ;;  %v839_v60 = vld [vmem:[#allocation7 + $0x9a8] sm:$0xff] }
 0x265   : > { %4372 = vmatpush1.bf16.msra.mxu0 %v4371_v6  ;;  %v783_v6 = vld [vmem:[#allocation7 + $0x7e8] sm:$0xff]  ;;  %v4663_v0 = vpack.c.bf16 %v832_v59, %v824_v57  ;;  %v910_v57 = vld [vmem:[#allocation7 + $0xbe0] sm:$0xff] }
 0x266   : > { %4628 = vmatpush1.bf16.msra.mxu1 %v4627_v7  ;;  %4374 = vmatprep.subr.bf16.mxu0 %v4373_v8  ;;  %v777_v7 = vld [vmem:[#allocation7 + $0x7b8] sm:$0xff]  ;;  %v4393_v12 = vpack.c.bf16 %v783_v6, %v775_v5  ;;  %v848_v6 = vld [vmem:[#allocation7 + $0x9f0] sm:$0xff] }
 0x267   : > { %4630 = vmatprep.subr.bf16.mxu1 %v4629_v13  ;;  %v785_v8 = vld [vmem:[#allocation7 + $0x7f8] sm:$0xff]  ;;  %v774_v13 = vld [vmem:[#allocation7 + $0x7a0] sm:$0xff] }
 0x268   : > { %v4649_v18 = vpack.c.bf16 %v785_v8, %v777_v7  ;;  %v4395_v26 = vpack.c.bf16 %v782_v15, %v774_v13  ;;  %v855_v7 = vld [vmem:[#allocation7 + $0xa28] sm:$0xff]  ;;  %v854_v15 = vld [vmem:[#allocation7 + $0xa20] sm:$0xff] }
 0x269   : > { %4376 = vmatpush1.bf16.msra.mxu0 %v4375_v22  ;;  %v799_v22 = vld [vmem:[#allocation7 + $0x868] sm:$0xff] }
 0x26a   : > { %4632 = vmatpush1.bf16.msra.mxu1 %v4631_v24  ;;  %4378 = vmatprep.subr.bf16.mxu0 %v4377_v25  ;;  %v793_v24 = vld [vmem:[#allocation7 + $0x838] sm:$0xff]  ;;  %v4397_v27 = vpack.c.bf16 %v799_v22, %v791_v21  ;;  %v863_v8 = vld [vmem:[#allocation7 + $0xa68] sm:$0xff]  ;;  %v864_v21 = vld [vmem:[#allocation7 + $0xa70] sm:$0xff] }
 0x26b   : > { %4634 = vmatprep.subr.bf16.mxu1 %v4633_v29  ;;  %v801_v25 = vld [vmem:[#allocation7 + $0x878] sm:$0xff]  ;;  %v790_v29 = vld [vmem:[#allocation7 + $0x820] sm:$0xff]  ;;  %v4413_v13 = vpack.c.bf16 %v863_v8, %v855_v7  ;;  %v871_v22 = vld [vmem:[#allocation7 + $0xaa8] sm:$0xff] }
 0x26c   : > { %v4653_v33 = vpack.c.bf16 %v801_v25, %v793_v24  ;;  %v4399_v39 = vpack.c.bf16 %v798_v30, %v790_v29  ;;  %v879_v24 = vld [vmem:[#allocation7 + $0xae8] sm:$0xff]  ;;  %v873_v25 = vld [vmem:[#allocation7 + $0xab8] sm:$0xff]  ;;  %v870_v30 = vld [vmem:[#allocation7 + $0xaa0] sm:$0xff] }
 0x26d   : > { %4380 = vmatpush1.bf16.msra.mxu0 %v4379_v36  ;;  %v815_v36 = vld [vmem:[#allocation7 + $0x8e8] sm:$0xff]  ;;  %v4417_v29 = vpack.c.bf16 %v879_v24, %v871_v22  ;;  %v928_v7 = vld [vmem:[#allocation7 + $0xc70] sm:$0xff] }
 0x26e   : > { %4636 = vmatpush1.bf16.msra.mxu1 %v4635_v37  ;;  %4382 = vmatprep.subr.bf16.mxu0 %v4381_v38  ;;  %v809_v37 = vld [vmem:[#allocation7 + $0x8b8] sm:$0xff]  ;;  %v4401_v41 = vpack.c.bf16 %v815_v36, %v807_v35  ;;  %v880_v35 = vld [vmem:[#allocation7 + $0xaf0] sm:$0xff]  ;;  %v887_v36 = vld [vmem:[#allocation7 + $0xb28] sm:$0xff] }
 0x26f   : > { %4638 = vmatprep.subr.bf16.mxu1 %v4637_v42  ;;  %v817_v38 = vld [vmem:[#allocation7 + $0x8f8] sm:$0xff]  ;;  %v806_v42 = vld [vmem:[#allocation7 + $0x8a0] sm:$0xff]  ;;  %v935_v8 = vld [vmem:[#allocation7 + $0xca8] sm:$0xff] }
 0x270   : > { %v4657_v45 = vpack.c.bf16 %v817_v38, %v809_v37  ;;  %v4403_v53 = vpack.c.bf16 %v814_v43, %v806_v42  ;;  %v895_v37 = vld [vmem:[#allocation7 + $0xb68] sm:$0xff]  ;;  %v889_v38 = vld [vmem:[#allocation7 + $0xb38] sm:$0xff]  ;;  %v886_v43 = vld [vmem:[#allocation7 + $0xb20] sm:$0xff] }
 0x271   : > { %4384 = vmatpush1.bf16.msra.mxu0 %v4383_v49  ;;  %v831_v49 = vld [vmem:[#allocation7 + $0x968] sm:$0xff]  ;;  %v4421_v42 = vpack.c.bf16 %v895_v37, %v887_v36  ;;  %v944_v22 = vld [vmem:[#allocation7 + $0xcf0] sm:$0xff] }
 0x272   : > { %4640 = vmatpush1.bf16.msra.mxu1 %v4639_v50  ;;  %4386 = vmatprep.subr.bf16.mxu0 %v4385_v52  ;;  %v825_v50 = vld [vmem:[#allocation7 + $0x938] sm:$0xff]  ;;  %v4405_v55 = vpack.c.bf16 %v831_v49, %v823_v47  ;;  %v896_v47 = vld [vmem:[#allocation7 + $0xb70] sm:$0xff]  ;;  %v903_v49 = vld [vmem:[#allocation7 + $0xba8] sm:$0xff] }
 0x273   : > { %4642 = vmatprep.subr.bf16.mxu1 %v4641_v56  ;;  %v833_v52 = vld [vmem:[#allocation7 + $0x978] sm:$0xff]  ;;  %v822_v56 = vld [vmem:[#allocation7 + $0x920] sm:$0xff]  ;;  %v951_v24 = vld [vmem:[#allocation7 + $0xd28] sm:$0xff] }
 0x274   : > { %v4661_v58 = vpack.c.bf16 %v833_v52, %v825_v50  ;;  %v911_v50 = vld [vmem:[#allocation7 + $0xbe8] sm:$0xff]  ;;  %v905_v52 = vld [vmem:[#allocation7 + $0xbb8] sm:$0xff]  ;;  %v960_v36 = vld [vmem:[#allocation7 + $0xd70] sm:$0xff] }
 0x275   : > { %4388 = vmatpush1.bf16.msra.mxu0 %v4387_v61  ;;  %v847_v61 = vld [vmem:[#allocation7 + $0x9e8] sm:$0xff] }
 0x276   : > { %4644 = vmatpush1.bf16.msra.mxu1 %v4643_v62  ;;  %4390 = vmatprep.subr.bf16.mxu0 %v4389_v63  ;;  %v841_v62 = vld [vmem:[#allocation7 + $0x9b8] sm:$0xff]  ;;  %v4409_v1 = vpack.c.bf16 %v847_v61, %v839_v60  ;;  %v912_v60 = vld [vmem:[#allocation7 + $0xbf0] sm:$0xff]  ;;  %v919_v61 = vld [vmem:[#allocation7 + $0xc28] sm:$0xff] }
 0x277   : > { %4646 = vmatprep.subr.bf16.mxu1 %v4645_v3  ;;  %v849_v63 = vld [vmem:[#allocation7 + $0x9f8] sm:$0xff]  ;;  %v846_v3 = vld [vmem:[#allocation7 + $0x9e0] sm:$0xff]  ;;  %v967_v37 = vld [vmem:[#allocation7 + $0xda8] sm:$0xff] }
 0x278   : > { %v4665_v5 = vpack.c.bf16 %v849_v63, %v841_v62  ;;  %v927_v62 = vld [vmem:[#allocation7 + $0xc68] sm:$0xff]  ;;  %v921_v63 = vld [vmem:[#allocation7 + $0xc38] sm:$0xff] }
 0x279   : > { %4392 = vmatpush1.bf16.msra.mxu0 %v4391_v9  ;;  %v857_v9 = vld [vmem:[#allocation7 + $0xa38] sm:$0xff] }
 0x27a   : > { %4648 = vmatpush1.bf16.msra.mxu1 %v4647_v11  ;;  %4394 = vmatprep.subr.bf16.mxu0 %v4393_v12  ;;  %v865_v11 = vld [vmem:[#allocation7 + $0xa78] sm:$0xff]  ;;  %v4411_v12 = vpack.c.bf16 %v846_v3, %v838_v2  ;;  %v4429_v2 = vpack.c.bf16 %v927_v62, %v919_v61  ;;  %v918_v3 = vld [vmem:[#allocation7 + $0xc20] sm:$0xff]  ;;  %v992_v61 = vld [vmem:[#allocation7 + $0xe70] sm:$0xff] }
 0x27b   : > { %4650 = vmatprep.subr.bf16.mxu1 %v4649_v18  ;;  %v856_v18 = vld [vmem:[#allocation7 + $0xa30] sm:$0xff]  ;;  %v4669_v20 = vpack.c.bf16 %v865_v11, %v857_v9  ;;  %v943_v9 = vld [vmem:[#allocation7 + $0xce8] sm:$0xff]  ;;  %v937_v11 = vld [vmem:[#allocation7 + $0xcb8] sm:$0xff] }
 0x27c   : > { %v999_v62 = vld [vmem:[#allocation7 + $0xea8] sm:$0xff] }
 0x27d   : > { %4396 = vmatpush1.bf16.msra.mxu0 %v4395_v26  ;;  %v881_v26 = vld [vmem:[#allocation7 + $0xaf8] sm:$0xff] }
 0x27e   : > { %4652 = vmatpush1.bf16.msra.mxu1 %v4651_v51  ;;  %4398 = vmatprep.subr.bf16.mxu0 %v4397_v27  ;;  %v4415_v51 = vpack.c.bf16 %v862_v17, %v854_v15  ;;  %v4671_v27 = vpack.c.bf16 %v864_v21, %v856_v18  ;;  %v4673_v34 = vpack.c.bf16 %v881_v26, %v873_v25  ;;  %v934_v17 = vld [vmem:[#allocation7 + $0xca0] sm:$0xff]  ;;  %v959_v25 = vld [vmem:[#allocation7 + $0xd68] sm:$0xff]  ;;  %v953_v26 = vld [vmem:[#allocation7 + $0xd38] sm:$0xff] }
 0x27f   : > { %4654 = vmatprep.subr.bf16.mxu1 %v4653_v33  ;;  %v872_v33 = vld [vmem:[#allocation7 + $0xab0] sm:$0xff]  ;;  %v4433_v15 = vpack.c.bf16 %v943_v9, %v935_v8  ;;  %v942_v18 = vld [vmem:[#allocation7 + $0xce0] sm:$0xff]  ;;  %v1015_v9 = vld [vmem:[#allocation7 + $0xf28] sm:$0xff] }
 0x280   : > { %2229 = vmatmul.mubr.f32.vlgmr.msra.gmra.mrb[2].mxu0 %v5968_v14  ;;  %v1008_v8 = vld [vmem:[#allocation7 + $0xef0] sm:$0xff] }
 0x281   : > { %4400 = vmatpush1.bf16.msra.mxu0 %v4399_v39  ;;  %2513 = vmatmul.mubr.f32.vlgmr.msra.gmra.mrb[2].mxu1 %v5968_v14  ;;  %v4407_v14 = vpack.c.bf16 %v830_v19, %v822_v56  ;;  %v897_v39 = vld [vmem:[#allocation7 + $0xb78] sm:$0xff]  ;;  %v4425_v56 = vpack.c.bf16 %v911_v50, %v903_v49  ;;  %v902_v19 = vld [vmem:[#allocation7 + $0xba0] sm:$0xff]  ;;  %v976_v49 = vld [vmem:[#allocation7 + $0xdf0] sm:$0xff] }
 0x282   : > { %4656 = vmatpush1.bf16.msra.mxu1 %v4655_v40  ;;  %4402 = vmatprep.subr.bf16.mxu0 %v4401_v41  ;;  %v4419_v40 = vpack.c.bf16 %v878_v31, %v870_v30  ;;  %v4675_v41 = vpack.c.bf16 %v880_v35, %v872_v33  ;;  %v4677_v46 = vpack.c.bf16 %v897_v39, %v889_v38  ;;  %v950_v31 = vld [vmem:[#allocation7 + $0xd20] sm:$0xff]  ;;  %v975_v38 = vld [vmem:[#allocation7 + $0xde8] sm:$0xff]  ;;  %v969_v39 = vld [vmem:[#allocation7 + $0xdb8] sm:$0xff] }
 0x283   : > { %4658 = vmatprep.subr.bf16.mxu1 %v4657_v45  ;;  %2299 = vmatprep.mubr.f32.mxu0 %v5976_v28  ;;  %v888_v45 = vld [vmem:[#allocation7 + $0xb30] sm:$0xff]  ;;  %v4437_v30 = vpack.c.bf16 %v959_v25, %v951_v24  ;;  %v958_v33 = vld [vmem:[#allocation7 + $0xd60] sm:$0xff]  ;;  %v983_v50 = vld [vmem:[#allocation7 + $0xe28] sm:$0xff] }
 0x284   : > { %2583 = vmatprep.mubr.f32.mxu1 %v5976_v28  ;;  %v4667_v28 = vpack.c.bf16 %v848_v6, %v840_v4  ;;  %v926_v4 = vld [vmem:[#allocation7 + $0xc60] sm:$0xff]  ;;  %v1024_v24 = vld [vmem:[#allocation7 + $0xf70] sm:$0xff]  ;;  %v1031_v25 = vld [vmem:[#allocation7 + $0xfa8] sm:$0xff] }
 0x285   : > { %4404 = vmatpush1.bf16.msra.mxu0 %v4403_v53  ;;  %v913_v53 = vld [vmem:[#allocation7 + $0xbf8] sm:$0xff] }
 0x286   : > { %4660 = vmatpush1.bf16.msra.mxu1 %v4659_v54  ;;  %4406 = vmatprep.subr.bf16.mxu0 %v4405_v55  ;;  %v4423_v54 = vpack.c.bf16 %v894_v44, %v886_v43  ;;  %v4679_v55 = vpack.c.bf16 %v896_v47, %v888_v45  ;;  %v4681_v59 = vpack.c.bf16 %v913_v53, %v905_v52  ;;  %v966_v44 = vld [vmem:[#allocation7 + $0xda0] sm:$0xff]  ;;  %v991_v52 = vld [vmem:[#allocation7 + $0xe68] sm:$0xff]  ;;  %v985_v53 = vld [vmem:[#allocation7 + $0xe38] sm:$0xff] }
 0x287   : > { %4662 = vmatprep.subr.bf16.mxu1 %v4661_v58  ;;  %v904_v58 = vld [vmem:[#allocation7 + $0xbb0] sm:$0xff]  ;;  %v4441_v43 = vpack.c.bf16 %v975_v38, %v967_v37  ;;  %v974_v45 = vld [vmem:[#allocation7 + $0xde0] sm:$0xff]  ;;  %v1047_v38 = vld [vmem:[#allocation7 + $0x1028] sm:$0xff] }
 0x288   : > { %v1040_v37 = vld [vmem:[#allocation7 + $0xff0] sm:$0xff] }
 0x289   : > { %4408 = vmatpush1.bf16.msra.mxu0 %v4407_v14  ;;  %v929_v14 = vld [vmem:[#allocation7 + $0xc78] sm:$0xff] }
 0x28a   : > { %4664 = vmatpush1.bf16.msra.mxu1 %v4663_v0  ;;  %4410 = vmatprep.subr.bf16.mxu0 %v4409_v1  ;;  %v4427_v0 = vpack.c.bf16 %v910_v57, %v902_v19  ;;  %v4683_v1 = vpack.c.bf16 %v912_v60, %v904_v58  ;;  %v4685_v6 = vpack.c.bf16 %v929_v14, %v921_v63  ;;  %v982_v57 = vld [vmem:[#allocation7 + $0xe20] sm:$0xff]  ;;  %v1007_v63 = vld [vmem:[#allocation7 + $0xee8] sm:$0xff]  ;;  %v1001_v14 = vld [vmem:[#allocation7 + $0xeb8] sm:$0xff] }
 0x28b   : > { %4666 = vmatprep.subr.bf16.mxu1 %v4665_v5  ;;  %v920_v5 = vld [vmem:[#allocation7 + $0xc30] sm:$0xff]  ;;  %v4445_v19 = vpack.c.bf16 %v991_v52, %v983_v50  ;;  %v990_v58 = vld [vmem:[#allocation7 + $0xe60] sm:$0xff]  ;;  %v1063_v52 = vld [vmem:[#allocation7 + $0x10a8] sm:$0xff] }
 0x28c   : > { %v1056_v50 = vld [vmem:[#allocation7 + $0x1070] sm:$0xff] }
 0x28d   : > { %4412 = vmatpush1.bf16.msra.mxu0 %v4411_v12  ;;  %v945_v12 = vld [vmem:[#allocation7 + $0xcf8] sm:$0xff] }
 0x28e   : > { %4668 = vmatpush1.bf16.msra.mxu1 %v4667_v28  ;;  %4414 = vmatprep.subr.bf16.mxu0 %v4413_v13  ;;  %v4431_v28 = vpack.c.bf16 %v926_v4, %v918_v3  ;;  %v4687_v13 = vpack.c.bf16 %v928_v7, %v920_v5  ;;  %v4689_v21 = vpack.c.bf16 %v945_v12, %v937_v11  ;;  %v998_v4 = vld [vmem:[#allocation7 + $0xea0] sm:$0xff]  ;;  %v1023_v11 = vld [vmem:[#allocation7 + $0xf68] sm:$0xff]  ;;  %v1017_v12 = vld [vmem:[#allocation7 + $0xf38] sm:$0xff] }
 0x28f   : > { %4670 = vmatprep.subr.bf16.mxu1 %v4669_v20  ;;  %v936_v20 = vld [vmem:[#allocation7 + $0xcb0] sm:$0xff]  ;;  %v4449_v3 = vpack.c.bf16 %v1007_v63, %v999_v62  ;;  %v1006_v5 = vld [vmem:[#allocation7 + $0xee0] sm:$0xff]  ;;  %v1079_v63 = vld [vmem:[#allocation7 + $0x1128] sm:$0xff] }
 0x290   : > { %v1072_v62 = vld [vmem:[#allocation7 + $0x10f0] sm:$0xff] }
 0x291   : > { %4416 = vmatpush1.bf16.msra.mxu0 %v4415_v51  ;;  %v961_v51 = vld [vmem:[#allocation7 + $0xd78] sm:$0xff] }
 0x292   : > { %4672 = vmatpush1.bf16.msra.mxu1 %v4671_v27  ;;  %4418 = vmatprep.subr.bf16.mxu0 %v4417_v29  ;;  %v4435_v27 = vpack.c.bf16 %v942_v18, %v934_v17  ;;  %v4691_v29 = vpack.c.bf16 %v944_v22, %v936_v20  ;;  %v4693_v35 = vpack.c.bf16 %v961_v51, %v953_v26  ;;  %v1014_v18 = vld [vmem:[#allocation7 + $0xf20] sm:$0xff]  ;;  %v1039_v26 = vld [vmem:[#allocation7 + $0xfe8] sm:$0xff]  ;;  %v1033_v51 = vld [vmem:[#allocation7 + $0xfb8] sm:$0xff] }
 0x293   : > { %4674 = vmatprep.subr.bf16.mxu1 %v4673_v34  ;;  %v952_v34 = vld [vmem:[#allocation7 + $0xd30] sm:$0xff]  ;;  %v4453_v17 = vpack.c.bf16 %v1023_v11, %v1015_v9  ;;  %v1022_v20 = vld [vmem:[#allocation7 + $0xf60] sm:$0xff]  ;;  %v1095_v11 = vld [vmem:[#allocation7 + $0x11a8] sm:$0xff] }
 0x294   : > { %v1088_v9 = vld [vmem:[#allocation7 + $0x1170] sm:$0xff] }
 0x295   : > { %4420 = vmatpush1.bf16.msra.mxu0 %v4419_v40  ;;  %v977_v40 = vld [vmem:[#allocation7 + $0xdf8] sm:$0xff] }
 0x296   : > { %4676 = vmatpush1.bf16.msra.mxu1 %v4675_v41  ;;  %4422 = vmatprep.subr.bf16.mxu0 %v4421_v42  ;;  %v4439_v41 = vpack.c.bf16 %v958_v33, %v950_v31  ;;  %v4695_v42 = vpack.c.bf16 %v960_v36, %v952_v34  ;;  %v4697_v47 = vpack.c.bf16 %v977_v40, %v969_v39  ;;  %v1030_v33 = vld [vmem:[#allocation7 + $0xfa0] sm:$0xff]  ;;  %v1055_v39 = vld [vmem:[#allocation7 + $0x1068] sm:$0xff]  ;;  %v1049_v40 = vld [vmem:[#allocation7 + $0x1038] sm:$0xff] }
 0x297   : > { %4678 = vmatprep.subr.bf16.mxu1 %v4677_v46  ;;  %v968_v46 = vld [vmem:[#allocation7 + $0xdb0] sm:$0xff]  ;;  %v4457_v31 = vpack.c.bf16 %v1039_v26, %v1031_v25  ;;  %v1038_v34 = vld [vmem:[#allocation7 + $0xfe0] sm:$0xff]  ;;  %v1111_v25 = vld [vmem:[#allocation7 + $0x1228] sm:$0xff] }
 0x298   : > { %v1119_v26 = vld [vmem:[#allocation7 + $0x1268] sm:$0xff] }
 0x299   : > { %4424 = vmatpush1.bf16.msra.mxu0 %v4423_v54  ;;  %v993_v54 = vld [vmem:[#allocation7 + $0xe78] sm:$0xff] }
 0x29a   : > { %4680 = vmatpush1.bf16.msra.mxu1 %v4679_v55  ;;  %4426 = vmatprep.subr.bf16.mxu0 %v4425_v56  ;;  %v4443_v55 = vpack.c.bf16 %v974_v45, %v966_v44  ;;  %v4699_v56 = vpack.c.bf16 %v976_v49, %v968_v46  ;;  %v4701_v60 = vpack.c.bf16 %v993_v54, %v985_v53  ;;  %v1046_v45 = vld [vmem:[#allocation7 + $0x1020] sm:$0xff]  ;;  %v1071_v53 = vld [vmem:[#allocation7 + $0x10e8] sm:$0xff]  ;;  %v1065_v54 = vld [vmem:[#allocation7 + $0x10b8] sm:$0xff] }
 0x29b   : > { %4682 = vmatprep.subr.bf16.mxu1 %v4681_v59  ;;  %v984_v59 = vld [vmem:[#allocation7 + $0xe30] sm:$0xff]  ;;  %v4461_v44 = vpack.c.bf16 %v1055_v39, %v1047_v38  ;;  %v1054_v46 = vld [vmem:[#allocation7 + $0x1060] sm:$0xff]  ;;  %v1135_v38 = vld [vmem:[#allocation7 + $0x12e8] sm:$0xff] }
 0x29c   : > { %v1129_v39 = vld [vmem:[#allocation7 + $0x12b8] sm:$0xff] }
 0x29d   : > { %4428 = vmatpush1.bf16.msra.mxu0 %v4427_v0  ;;  %v1009_v0 = vld [vmem:[#allocation7 + $0xef8] sm:$0xff] }
 0x29e   : > { %4684 = vmatpush1.bf16.msra.mxu1 %v4683_v1  ;;  %4430 = vmatprep.subr.bf16.mxu0 %v4429_v2  ;;  %v4447_v1 = vpack.c.bf16 %v990_v58, %v982_v57  ;;  %v4703_v2 = vpack.c.bf16 %v992_v61, %v984_v59  ;;  %v4705_v7 = vpack.c.bf16 %v1009_v0, %v1001_v14  ;;  %v1062_v58 = vld [vmem:[#allocation7 + $0x10a0] sm:$0xff]  ;;  %v1087_v14 = vld [vmem:[#allocation7 + $0x1168] sm:$0xff]  ;;  %v1081_v0 = vld [vmem:[#allocation7 + $0x1138] sm:$0xff] }
 0x29f   : > { %4686 = vmatprep.subr.bf16.mxu1 %v4685_v6  ;;  %v1000_v6 = vld [vmem:[#allocation7 + $0xeb0] sm:$0xff]  ;;  %v4465_v57 = vpack.c.bf16 %v1071_v53, %v1063_v52  ;;  %v1070_v59 = vld [vmem:[#allocation7 + $0x10e0] sm:$0xff]  ;;  %v1151_v52 = vld [vmem:[#allocation7 + $0x1368] sm:$0xff] }
 0x2a0   : > { %v1145_v53 = vld [vmem:[#allocation7 + $0x1338] sm:$0xff] }
 0x2a1   : > { %4432 = vmatpush1.bf16.msra.mxu0 %v4431_v28  ;;  %v1025_v28 = vld [vmem:[#allocation7 + $0xf78] sm:$0xff] }
 0x2a2   : > { %4688 = vmatpush1.bf16.msra.mxu1 %v4687_v13  ;;  %4434 = vmatprep.subr.bf16.mxu0 %v4433_v15  ;;  %v4451_v13 = vpack.c.bf16 %v1006_v5, %v998_v4  ;;  %v4707_v15 = vpack.c.bf16 %v1008_v8, %v1000_v6  ;;  %v4709_v22 = vpack.c.bf16 %v1025_v28, %v1017_v12  ;;  %v1078_v5 = vld [vmem:[#allocation7 + $0x1120] sm:$0xff]  ;;  %v1103_v12 = vld [vmem:[#allocation7 + $0x11e8] sm:$0xff]  ;;  %v1097_v28 = vld [vmem:[#allocation7 + $0x11b8] sm:$0xff] }
 0x2a3   : > { %4690 = vmatprep.subr.bf16.mxu1 %v4689_v21  ;;  %v1016_v21 = vld [vmem:[#allocation7 + $0xf30] sm:$0xff]  ;;  %v4469_v4 = vpack.c.bf16 %v1087_v14, %v1079_v63  ;;  %v1086_v6 = vld [vmem:[#allocation7 + $0x1160] sm:$0xff]  ;;  %v1167_v63 = vld [vmem:[#allocation7 + $0x13e8] sm:$0xff] }
 0x2a4   : > { %v1161_v14 = vld [vmem:[#allocation7 + $0x13b8] sm:$0xff] }
 0x2a5   : > { %4436 = vmatpush1.bf16.msra.mxu0 %v4435_v27  ;;  %v1041_v27 = vld [vmem:[#allocation7 + $0xff8] sm:$0xff] }
 0x2a6   : > { %4692 = vmatpush1.bf16.msra.mxu1 %v4691_v29  ;;  %4438 = vmatprep.subr.bf16.mxu0 %v4437_v30  ;;  %v4455_v29 = vpack.c.bf16 %v1022_v20, %v1014_v18  ;;  %v4711_v30 = vpack.c.bf16 %v1024_v24, %v1016_v21  ;;  %v4713_v36 = vpack.c.bf16 %v1041_v27, %v1033_v51  ;;  %v1094_v18 = vld [vmem:[#allocation7 + $0x11a0] sm:$0xff]  ;;  %v1096_v21 = vld [vmem:[#allocation7 + $0x11b0] sm:$0xff]  ;;  %v1113_v51 = vld [vmem:[#allocation7 + $0x1238] sm:$0xff] }
 0x2a7   : > { %4694 = vmatprep.subr.bf16.mxu1 %v4693_v35  ;;  %v1032_v35 = vld [vmem:[#allocation7 + $0xfb0] sm:$0xff]  ;;  %v1102_v20 = vld [vmem:[#allocation7 + $0x11e0] sm:$0xff]  ;;  %v1121_v27 = vld [vmem:[#allocation7 + $0x1278] sm:$0xff] }
 0x2a8   : > { %v1104_v24 = vld [vmem:[#allocation7 + $0x11f0] sm:$0xff] }
 0x2a9   : > { %4440 = vmatpush1.bf16.msra.mxu0 %v4439_v41  ;;  %v1057_v41 = vld [vmem:[#allocation7 + $0x1078] sm:$0xff] }
 0x2aa   : > { %4696 = vmatpush1.bf16.msra.mxu1 %v4695_v42  ;;  %4442 = vmatprep.subr.bf16.mxu0 %v4441_v43  ;;  %v4459_v42 = vpack.c.bf16 %v1038_v34, %v1030_v33  ;;  %v4715_v43 = vpack.c.bf16 %v1040_v37, %v1032_v35  ;;  %v4717_v49 = vpack.c.bf16 %v1057_v41, %v1049_v40  ;;  %v1118_v33 = vld [vmem:[#allocation7 + $0x1260] sm:$0xff]  ;;  %v1112_v34 = vld [vmem:[#allocation7 + $0x1230] sm:$0xff]  ;;  %v1127_v37 = vld [vmem:[#allocation7 + $0x12a8] sm:$0xff] }
 0x2ab   : > { %4698 = vmatprep.subr.bf16.mxu1 %v4697_v47  ;;  %v1048_v47 = vld [vmem:[#allocation7 + $0x1030] sm:$0xff]  ;;  %v4733_v35 = vpack.c.bf16 %v1121_v27, %v1113_v51  ;;  %v1137_v40 = vld [vmem:[#allocation7 + $0x12f8] sm:$0xff] }
 0x2ac   : > { %v1201_v51 = vld [vmem:[#allocation7 + $0x14f8] sm:$0xff] }
 0x2ad   : > { %4444 = vmatpush1.bf16.msra.mxu0 %v4443_v55  ;;  %v1073_v55 = vld [vmem:[#allocation7 + $0x10f8] sm:$0xff] }
 0x2ae   : > { %4700 = vmatpush1.bf16.msra.mxu1 %v4699_v56  ;;  %4446 = vmatprep.subr.bf16.mxu0 %v4445_v19  ;;  %v4463_v56 = vpack.c.bf16 %v1054_v46, %v1046_v45  ;;  %v4719_v19 = vpack.c.bf16 %v1056_v50, %v1048_v47  ;;  %v4721_v61 = vpack.c.bf16 %v1073_v55, %v1065_v54  ;;  %v1134_v45 = vld [vmem:[#allocation7 + $0x12e0] sm:$0xff]  ;;  %v1128_v46 = vld [vmem:[#allocation7 + $0x12b0] sm:$0xff]  ;;  %v1143_v50 = vld [vmem:[#allocation7 + $0x1328] sm:$0xff] }
 0x2af   : > { %4702 = vmatprep.subr.bf16.mxu1 %v4701_v60  ;;  %v1064_v60 = vld [vmem:[#allocation7 + $0x10b0] sm:$0xff]  ;;  %v4737_v47 = vpack.c.bf16 %v1137_v40, %v1129_v39  ;;  %v1153_v54 = vld [vmem:[#allocation7 + $0x1378] sm:$0xff] }
 0x2b0   : > { %v1217_v39 = vld [vmem:[#allocation7 + $0x1578] sm:$0xff] }
 0x2b1   : > { %4448 = vmatpush1.bf16.msra.mxu0 %v4447_v1  ;;  %v1089_v1 = vld [vmem:[#allocation7 + $0x1178] sm:$0xff] }
 0x2b2   : > { %4704 = vmatpush1.bf16.msra.mxu1 %v4703_v2  ;;  %4450 = vmatprep.subr.bf16.mxu0 %v4449_v3  ;;  %v4467_v2 = vpack.c.bf16 %v1070_v59, %v1062_v58  ;;  %v4723_v3 = vpack.c.bf16 %v1072_v62, %v1064_v60  ;;  %v4725_v8 = vpack.c.bf16 %v1089_v1, %v1081_v0  ;;  %v1150_v58 = vld [vmem:[#allocation7 + $0x1360] sm:$0xff]  ;;  %v1144_v59 = vld [vmem:[#allocation7 + $0x1330] sm:$0xff]  ;;  %v1159_v62 = vld [vmem:[#allocation7 + $0x13a8] sm:$0xff] }
 0x2b3   : > { %4706 = vmatprep.subr.bf16.mxu1 %v4705_v7  ;;  %v1080_v7 = vld [vmem:[#allocation7 + $0x1130] sm:$0xff]  ;;  %v4741_v60 = vpack.c.bf16 %v1153_v54, %v1145_v53  ;;  %v1169_v0 = vld [vmem:[#allocation7 + $0x13f8] sm:$0xff] }
 0x2b4   : > { %v1233_v53 = vld [vmem:[#allocation7 + $0x15f8] sm:$0xff] }
 0x2b5   : > { %4452 = vmatpush1.bf16.msra.mxu0 %v4451_v13  ;;  %v1105_v13 = vld [vmem:[#allocation7 + $0x11f8] sm:$0xff] }
 0x2b6   : > { %4708 = vmatpush1.bf16.msra.mxu1 %v4707_v15  ;;  %4454 = vmatprep.subr.bf16.mxu0 %v4453_v17  ;;  %v4727_v15 = vpack.c.bf16 %v1088_v9, %v1080_v7  ;;  %v4473_v17 = vpack.c.bf16 %v1103_v12, %v1095_v11  ;;  %v4745_v7 = vpack.c.bf16 %v1169_v0, %v1161_v14  ;;  %v1175_v9 = vld [vmem:[#allocation7 + $0x1428] sm:$0xff]  ;;  %v1177_v12 = vld [vmem:[#allocation7 + $0x1438] sm:$0xff] }
 0x2b7   : > { %4710 = vmatprep.subr.bf16.mxu1 %v4709_v22  ;;  %v4729_v22 = vpack.c.bf16 %v1105_v13, %v1097_v28  ;;  %v1183_v11 = vld [vmem:[#allocation7 + $0x1468] sm:$0xff]  ;;  %v1185_v28 = vld [vmem:[#allocation7 + $0x1478] sm:$0xff] }
 0x2b8   : > { %v1249_v14 = vld [vmem:[#allocation7 + $0x1678] sm:$0xff] }
 0x2b9   : > { %4456 = vmatpush1.bf16.msra.mxu0 %v4455_v29  ;;  %v4475_v29 = vpack.c.bf16 %v1102_v20, %v1094_v18  ;;  %v1182_v18 = vld [vmem:[#allocation7 + $0x1460] sm:$0xff]  ;;  %v1176_v20 = vld [vmem:[#allocation7 + $0x1430] sm:$0xff] }
 0x2ba   : > { %4712 = vmatpush1.bf16.msra.mxu1 %v4711_v30  ;;  %4458 = vmatprep.subr.bf16.mxu0 %v4457_v31  ;;  %v4477_v30 = vpack.c.bf16 %v1119_v26, %v1111_v25  ;;  %v1110_v31 = vld [vmem:[#allocation7 + $0x1220] sm:$0xff]  ;;  %v1199_v25 = vld [vmem:[#allocation7 + $0x14e8] sm:$0xff]  ;;  %v1193_v26 = vld [vmem:[#allocation7 + $0x14b8] sm:$0xff] }
 0x2bb   : > { %4714 = vmatprep.subr.bf16.mxu1 %v4713_v36  ;;  %v1120_v36 = vld [vmem:[#allocation7 + $0x1270] sm:$0xff]  ;;  %v4479_v41 = vpack.c.bf16 %v1118_v33, %v1110_v31  ;;  %v1198_v31 = vld [vmem:[#allocation7 + $0x14e0] sm:$0xff] }
 0x2bc   : > { %v1192_v33 = vld [vmem:[#allocation7 + $0x14b0] sm:$0xff] }
 0x2bd   : > { %4460 = vmatpush1.bf16.msra.mxu0 %v4459_v42  ;;  %v4735_v42 = vpack.c.bf16 %v1120_v36, %v1112_v34  ;;  %v4753_v34 = vpack.c.bf16 %v1201_v51, %v1193_v26  ;;  %v1207_v36 = vld [vmem:[#allocation7 + $0x1528] sm:$0xff]  ;;  %v1281_v26 = vld [vmem:[#allocation7 + $0x1778] sm:$0xff] }
 0x2be   : > { %4716 = vmatpush1.bf16.msra.mxu1 %v4715_v43  ;;  %4462 = vmatprep.subr.bf16.mxu0 %v4461_v44  ;;  %v4481_v43 = vpack.c.bf16 %v1135_v38, %v1127_v37  ;;  %v1126_v44 = vld [vmem:[#allocation7 + $0x12a0] sm:$0xff]  ;;  %v1215_v37 = vld [vmem:[#allocation7 + $0x1568] sm:$0xff]  ;;  %v1209_v38 = vld [vmem:[#allocation7 + $0x1538] sm:$0xff] }
 0x2bf   : > { %4718 = vmatprep.subr.bf16.mxu1 %v4717_v49  ;;  %v1136_v49 = vld [vmem:[#allocation7 + $0x12f0] sm:$0xff]  ;;  %v4483_v55 = vpack.c.bf16 %v1134_v45, %v1126_v44  ;;  %v1214_v44 = vld [vmem:[#allocation7 + $0x1560] sm:$0xff] }
 0x2c0   : > { %2300 = vmatmul.mubr.f32.vlgmr.msra.gmra.mrb[2].mxu0 %v5981_v16  ;;  %v1208_v45 = vld [vmem:[#allocation7 + $0x1530] sm:$0xff] }
 0x2c1   : > { %4464 = vmatpush1.bf16.msra.mxu0 %v4463_v56  ;;  %2584 = vmatmul.mubr.f32.vlgmr.msra.gmra.mrb[2].mxu1 %v5981_v16  ;;  %v4471_v16 = vpack.c.bf16 %v1086_v6, %v1078_v5  ;;  %v4739_v56 = vpack.c.bf16 %v1136_v49, %v1128_v46  ;;  %v1166_v5 = vld [vmem:[#allocation7 + $0x13e0] sm:$0xff]  ;;  %v1160_v6 = vld [vmem:[#allocation7 + $0x13b0] sm:$0xff]  ;;  %v4757_v46 = vpack.c.bf16 %v1217_v39, %v1209_v38  ;;  %v1223_v49 = vld [vmem:[#allocation7 + $0x15a8] sm:$0xff] }
 0x2c2   : > { %4720 = vmatpush1.bf16.msra.mxu1 %v4719_v19  ;;  %4466 = vmatprep.subr.bf16.mxu0 %v4465_v57  ;;  %v4485_v19 = vpack.c.bf16 %v1151_v52, %v1143_v50  ;;  %v1142_v57 = vld [vmem:[#allocation7 + $0x1320] sm:$0xff]  ;;  %v1231_v50 = vld [vmem:[#allocation7 + $0x15e8] sm:$0xff]  ;;  %v1225_v52 = vld [vmem:[#allocation7 + $0x15b8] sm:$0xff] }
 0x2c3   : > { %4722 = vmatprep.subr.bf16.mxu1 %v4721_v61  ;;  %2370 = vmatprep.mubr.f32.mxu0 %v5987_v23  ;;  %v1152_v61 = vld [vmem:[#allocation7 + $0x1370] sm:$0xff]  ;;  %v4487_v1 = vpack.c.bf16 %v1150_v58, %v1142_v57  ;;  %v1230_v57 = vld [vmem:[#allocation7 + $0x15e0] sm:$0xff]  ;;  %v1297_v38 = vld [vmem:[#allocation7 + $0x17f8] sm:$0xff] }
 0x2c4   : > { %2654 = vmatprep.mubr.f32.mxu1 %v5987_v23  ;;  %v4731_v23 = vpack.c.bf16 %v1104_v24, %v1096_v21  ;;  %v4749_v21 = vpack.c.bf16 %v1185_v28, %v1177_v12  ;;  %v1191_v24 = vld [vmem:[#allocation7 + $0x14a8] sm:$0xff]  ;;  %v1224_v58 = vld [vmem:[#allocation7 + $0x15b0] sm:$0xff]  ;;  %v1265_v12 = vld [vmem:[#allocation7 + $0x16f8] sm:$0xff] }
 0x2c5   : > { %4468 = vmatpush1.bf16.msra.mxu0 %v4467_v2  ;;  %v4743_v2 = vpack.c.bf16 %v1152_v61, %v1144_v59  ;;  %v4761_v59 = vpack.c.bf16 %v1233_v53, %v1225_v52  ;;  %v1239_v61 = vld [vmem:[#allocation7 + $0x1628] sm:$0xff]  ;;  %v1313_v52 = vld [vmem:[#allocation7 + $0x1878] sm:$0xff] }
 0x2c6   : > { %4724 = vmatpush1.bf16.msra.mxu1 %v4723_v3  ;;  %4470 = vmatprep.subr.bf16.mxu0 %v4469_v4  ;;  %v4489_v3 = vpack.c.bf16 %v1167_v63, %v1159_v62  ;;  %v1158_v4 = vld [vmem:[#allocation7 + $0x13a0] sm:$0xff]  ;;  %v1247_v62 = vld [vmem:[#allocation7 + $0x1668] sm:$0xff]  ;;  %v1241_v63 = vld [vmem:[#allocation7 + $0x1638] sm:$0xff] }
 0x2c7   : > { %4726 = vmatprep.subr.bf16.mxu1 %v4725_v8  ;;  %v1168_v8 = vld [vmem:[#allocation7 + $0x13f0] sm:$0xff]  ;;  %v4491_v13 = vpack.c.bf16 %v1166_v5, %v1158_v4  ;;  %v1246_v4 = vld [vmem:[#allocation7 + $0x1660] sm:$0xff] }
 0x2c8   : > { %v1240_v5 = vld [vmem:[#allocation7 + $0x1630] sm:$0xff] }
 0x2c9   : > { %4472 = vmatpush1.bf16.msra.mxu0 %v4471_v16  ;;  %v4747_v16 = vpack.c.bf16 %v1168_v8, %v1160_v6  ;;  %v4765_v6 = vpack.c.bf16 %v1249_v14, %v1241_v63  ;;  %v1255_v8 = vld [vmem:[#allocation7 + $0x16a8] sm:$0xff]  ;;  %v1329_v63 = vld [vmem:[#allocation7 + $0x18f8] sm:$0xff] }
 0x2ca   : > { %4728 = vmatpush1.bf16.msra.mxu1 %v4727_v15  ;;  %4474 = vmatprep.subr.bf16.mxu0 %v4473_v17  ;;  %v4493_v15 = vpack.c.bf16 %v1183_v11, %v1175_v9  ;;  %v1174_v17 = vld [vmem:[#allocation7 + $0x1420] sm:$0xff]  ;;  %v1263_v9 = vld [vmem:[#allocation7 + $0x16e8] sm:$0xff]  ;;  %v1257_v11 = vld [vmem:[#allocation7 + $0x16b8] sm:$0xff] }
 0x2cb   : > { %4730 = vmatprep.subr.bf16.mxu1 %v4729_v22  ;;  %v1184_v22 = vld [vmem:[#allocation7 + $0x1470] sm:$0xff]  ;;  %v4495_v27 = vpack.c.bf16 %v1182_v18, %v1174_v17  ;;  %v1262_v17 = vld [vmem:[#allocation7 + $0x16e0] sm:$0xff] }
 0x2cc   : > { %v1256_v18 = vld [vmem:[#allocation7 + $0x16b0] sm:$0xff] }
 0x2cd   : > { %4476 = vmatpush1.bf16.msra.mxu0 %v4475_v29  ;;  %v4751_v29 = vpack.c.bf16 %v1184_v22, %v1176_v20  ;;  %v4769_v20 = vpack.c.bf16 %v1265_v12, %v1257_v11  ;;  %v1271_v22 = vld [vmem:[#allocation7 + $0x1728] sm:$0xff]  ;;  %v1345_v11 = vld [vmem:[#allocation7 + $0x1978] sm:$0xff] }
 0x2ce   : > { %4732 = vmatpush1.bf16.msra.mxu1 %v4731_v23  ;;  %4478 = vmatprep.subr.bf16.mxu0 %v4477_v30  ;;  %v4497_v23 = vpack.c.bf16 %v1199_v25, %v1191_v24  ;;  %v1190_v30 = vld [vmem:[#allocation7 + $0x14a0] sm:$0xff]  ;;  %v1279_v24 = vld [vmem:[#allocation7 + $0x1768] sm:$0xff]  ;;  %v1273_v25 = vld [vmem:[#allocation7 + $0x1738] sm:$0xff] }
 0x2cf   : > { %4734 = vmatprep.subr.bf16.mxu1 %v4733_v35  ;;  %v1200_v35 = vld [vmem:[#allocation7 + $0x14f0] sm:$0xff]  ;;  %v4499_v40 = vpack.c.bf16 %v1198_v31, %v1190_v30  ;;  %v1278_v30 = vld [vmem:[#allocation7 + $0x1760] sm:$0xff] }
 0x2d0   : > { %v1272_v31 = vld [vmem:[#allocation7 + $0x1730] sm:$0xff] }
 0x2d1   : > { %4480 = vmatpush1.bf16.msra.mxu0 %v4479_v41  ;;  %v4755_v41 = vpack.c.bf16 %v1200_v35, %v1192_v33  ;;  %v4773_v33 = vpack.c.bf16 %v1281_v26, %v1273_v25  ;;  %v1287_v35 = vld [vmem:[#allocation7 + $0x17a8] sm:$0xff]  ;;  %v1361_v25 = vld [vmem:[#allocation7 + $0x19f8] sm:$0xff] }
 0x2d2   : > { %4736 = vmatpush1.bf16.msra.mxu1 %v4735_v42  ;;  %4482 = vmatprep.subr.bf16.mxu0 %v4481_v43  ;;  %v4501_v42 = vpack.c.bf16 %v1215_v37, %v1207_v36  ;;  %v1206_v43 = vld [vmem:[#allocation7 + $0x1520] sm:$0xff]  ;;  %v1295_v36 = vld [vmem:[#allocation7 + $0x17e8] sm:$0xff]  ;;  %v1289_v37 = vld [vmem:[#allocation7 + $0x17b8] sm:$0xff] }
 0x2d3   : > { %4738 = vmatprep.subr.bf16.mxu1 %v4737_v47  ;;  %v1216_v47 = vld [vmem:[#allocation7 + $0x1570] sm:$0xff]  ;;  %v4503_v54 = vpack.c.bf16 %v1214_v44, %v1206_v43  ;;  %v1294_v43 = vld [vmem:[#allocation7 + $0x17e0] sm:$0xff] }
 0x2d4   : > { %v1288_v44 = vld [vmem:[#allocation7 + $0x17b0] sm:$0xff] }
 0x2d5   : > { %4484 = vmatpush1.bf16.msra.mxu0 %v4483_v55  ;;  %v4759_v55 = vpack.c.bf16 %v1216_v47, %v1208_v45  ;;  %v4777_v45 = vpack.c.bf16 %v1297_v38, %v1289_v37  ;;  %v1303_v47 = vld [vmem:[#allocation7 + $0x1828] sm:$0xff] }
 0x2d6   : > { %4740 = vmatpush1.bf16.msra.mxu1 %v4739_v56  ;;  %4486 = vmatprep.subr.bf16.mxu0 %v4485_v19  ;;  %v4505_v56 = vpack.c.bf16 %v1231_v50, %v1223_v49  ;;  %v1222_v19 = vld [vmem:[#allocation7 + $0x15a0] sm:$0xff]  ;;  %v1311_v49 = vld [vmem:[#allocation7 + $0x1868] sm:$0xff]  ;;  %v1305_v50 = vld [vmem:[#allocation7 + $0x1838] sm:$0xff] }
 0x2d7   : > { %4742 = vmatprep.subr.bf16.mxu1 %v4741_v60  ;;  %v1232_v60 = vld [vmem:[#allocation7 + $0x15f0] sm:$0xff]  ;;  %v4507_v0 = vpack.c.bf16 %v1230_v57, %v1222_v19  ;;  %v1310_v19 = vld [vmem:[#allocation7 + $0x1860] sm:$0xff] }
 0x2d8   : > { %v1304_v57 = vld [vmem:[#allocation7 + $0x1830] sm:$0xff] }
 0x2d9   : > { %4488 = vmatpush1.bf16.msra.mxu0 %v4487_v1  ;;  %v4763_v1 = vpack.c.bf16 %v1232_v60, %v1224_v58  ;;  %v4781_v58 = vpack.c.bf16 %v1313_v52, %v1305_v50  ;;  %v1319_v60 = vld [vmem:[#allocation7 + $0x18a8] sm:$0xff] }
 0x2da   : > { %4744 = vmatpush1.bf16.msra.mxu1 %v4743_v2  ;;  %4490 = vmatprep.subr.bf16.mxu0 %v4489_v3  ;;  %v4509_v2 = vpack.c.bf16 %v1247_v62, %v1239_v61  ;;  %v1238_v3 = vld [vmem:[#allocation7 + $0x1620] sm:$0xff]  ;;  %v1327_v61 = vld [vmem:[#allocation7 + $0x18e8] sm:$0xff]  ;;  %v1321_v62 = vld [vmem:[#allocation7 + $0x18b8] sm:$0xff] }
 0x2db   : > { %4746 = vmatprep.subr.bf16.mxu1 %v4745_v7  ;;  %v1248_v7 = vld [vmem:[#allocation7 + $0x1670] sm:$0xff]  ;;  %v4511_v28 = vpack.c.bf16 %v1246_v4, %v1238_v3  ;;  %v1326_v3 = vld [vmem:[#allocation7 + $0x18e0] sm:$0xff] }
 0x2dc   : > { %v1320_v4 = vld [vmem:[#allocation7 + $0x18b0] sm:$0xff] }
 0x2dd   : > { %4492 = vmatpush1.bf16.msra.mxu0 %v4491_v13  ;;  %v4767_v13 = vpack.c.bf16 %v1248_v7, %v1240_v5  ;;  %v4785_v5 = vpack.c.bf16 %v1329_v63, %v1321_v62  ;;  %v1335_v7 = vld [vmem:[#allocation7 + $0x1928] sm:$0xff] }
 0x2de   : > { %4748 = vmatpush1.bf16.msra.mxu1 %v4747_v16  ;;  %4494 = vmatprep.subr.bf16.mxu0 %v4493_v15  ;;  %v4513_v16 = vpack.c.bf16 %v1263_v9, %v1255_v8  ;;  %v1254_v15 = vld [vmem:[#allocation7 + $0x16a0] sm:$0xff]  ;;  %v1343_v8 = vld [vmem:[#allocation7 + $0x1968] sm:$0xff]  ;;  %v1337_v9 = vld [vmem:[#allocation7 + $0x1938] sm:$0xff] }
 0x2df   : > { %4750 = vmatprep.subr.bf16.mxu1 %v4749_v21  ;;  %v1264_v21 = vld [vmem:[#allocation7 + $0x16f0] sm:$0xff]  ;;  %v4515_v51 = vpack.c.bf16 %v1262_v17, %v1254_v15  ;;  %v1342_v15 = vld [vmem:[#allocation7 + $0x1960] sm:$0xff] }
 0x2e0   : > { %v1336_v17 = vld [vmem:[#allocation7 + $0x1930] sm:$0xff] }
 0x2e1   : > { %4496 = vmatpush1.bf16.msra.mxu0 %v4495_v27  ;;  %v4771_v27 = vpack.c.bf16 %v1264_v21, %v1256_v18  ;;  %v4789_v18 = vpack.c.bf16 %v1345_v11, %v1337_v9  ;;  %v1351_v21 = vld [vmem:[#allocation7 + $0x19a8] sm:$0xff]  ;;  %v1417_v9 = vld [vmem:[#allocation7 + $0x1bb8] sm:$0xff] }
 0x2e2   : > { %4752 = vmatpush1.bf16.msra.mxu1 %v4751_v29  ;;  %4498 = vmatprep.subr.bf16.mxu0 %v4497_v23  ;;  %v4517_v29 = vpack.c.bf16 %v1279_v24, %v1271_v22  ;;  %v1270_v23 = vld [vmem:[#allocation7 + $0x1720] sm:$0xff]  ;;  %v1359_v22 = vld [vmem:[#allocation7 + $0x19e8] sm:$0xff]  ;;  %v1353_v24 = vld [vmem:[#allocation7 + $0x19b8] sm:$0xff] }
 0x2e3   : > { %4754 = vmatprep.subr.bf16.mxu1 %v4753_v34  ;;  %v1280_v34 = vld [vmem:[#allocation7 + $0x1770] sm:$0xff]  ;;  %v4519_v39 = vpack.c.bf16 %v1278_v30, %v1270_v23  ;;  %v4793_v30 = vpack.c.bf16 %v1361_v25, %v1353_v24  ;;  %v1425_v11 = vld [vmem:[#allocation7 + $0x1bf8] sm:$0xff]  ;;  %v1439_v24 = vld [vmem:[#allocation7 + $0x1c68] sm:$0xff] }
 0x2e4   : > { %v1352_v23 = vld [vmem:[#allocation7 + $0x19b0] sm:$0xff]  ;;  %v1433_v25 = vld [vmem:[#allocation7 + $0x1c38] sm:$0xff] }
 0x2e5   : > { %4500 = vmatpush1.bf16.msra.mxu0 %v4499_v40  ;;  %v4775_v40 = vpack.c.bf16 %v1280_v34, %v1272_v31  ;;  %v1360_v31 = vld [vmem:[#allocation7 + $0x19f0] sm:$0xff]  ;;  %v1375_v34 = vld [vmem:[#allocation7 + $0x1a68] sm:$0xff] }
 0x2e6   : > { %4756 = vmatpush1.bf16.msra.mxu1 %v4755_v41  ;;  %4502 = vmatprep.subr.bf16.mxu0 %v4501_v42  ;;  %v4521_v41 = vpack.c.bf16 %v1295_v36, %v1287_v35  ;;  %v1286_v42 = vld [vmem:[#allocation7 + $0x17a0] sm:$0xff]  ;;  %v1369_v35 = vld [vmem:[#allocation7 + $0x1a38] sm:$0xff] }
 0x2e7   : > { %4758 = vmatprep.subr.bf16.mxu1 %v4757_v46  ;;  %v1296_v46 = vld [vmem:[#allocation7 + $0x17f0] sm:$0xff]  ;;  %v4523_v53 = vpack.c.bf16 %v1294_v43, %v1286_v42  ;;  %v1377_v36 = vld [vmem:[#allocation7 + $0x1a78] sm:$0xff] }
 0x2e8   : > { %v4797_v42 = vpack.c.bf16 %v1377_v36, %v1369_v35  ;;  %v1376_v43 = vld [vmem:[#allocation7 + $0x1a70] sm:$0xff]  ;;  %v1455_v35 = vld [vmem:[#allocation7 + $0x1ce8] sm:$0xff]  ;;  %v1449_v36 = vld [vmem:[#allocation7 + $0x1cb8] sm:$0xff] }
 0x2e9   : > { %4504 = vmatpush1.bf16.msra.mxu0 %v4503_v54  ;;  %v4779_v54 = vpack.c.bf16 %v1296_v46, %v1288_v44  ;;  %v1383_v44 = vld [vmem:[#allocation7 + $0x1aa8] sm:$0xff]  ;;  %v1385_v46 = vld [vmem:[#allocation7 + $0x1ab8] sm:$0xff] }
 0x2ea   : > { %4760 = vmatpush1.bf16.msra.mxu1 %v4759_v55  ;;  %4506 = vmatprep.subr.bf16.mxu0 %v4505_v56  ;;  %v4525_v55 = vpack.c.bf16 %v1311_v49, %v1303_v47  ;;  %v1302_v56 = vld [vmem:[#allocation7 + $0x1820] sm:$0xff]  ;;  %v1393_v47 = vld [vmem:[#allocation7 + $0x1af8] sm:$0xff] }
 0x2eb   : > { %4762 = vmatprep.subr.bf16.mxu1 %v4761_v59  ;;  %v1312_v59 = vld [vmem:[#allocation7 + $0x1870] sm:$0xff]  ;;  %v4527_v14 = vpack.c.bf16 %v1310_v19, %v1302_v56  ;;  %v4801_v56 = vpack.c.bf16 %v1393_v47, %v1385_v46  ;;  %v1471_v46 = vld [vmem:[#allocation7 + $0x1d68] sm:$0xff]  ;;  %v1465_v47 = vld [vmem:[#allocation7 + $0x1d38] sm:$0xff] }
 0x2ec   : > { %v1392_v19 = vld [vmem:[#allocation7 + $0x1af0] sm:$0xff] }
 0x2ed   : > { %4508 = vmatpush1.bf16.msra.mxu0 %v4507_v0  ;;  %v4783_v0 = vpack.c.bf16 %v1312_v59, %v1304_v57  ;;  %v1399_v57 = vld [vmem:[#allocation7 + $0x1b28] sm:$0xff]  ;;  %v1401_v59 = vld [vmem:[#allocation7 + $0x1b38] sm:$0xff] }
 0x2ee   : > { %4764 = vmatpush1.bf16.msra.mxu1 %v4763_v1  ;;  %4510 = vmatprep.subr.bf16.mxu0 %v4509_v2  ;;  %v4529_v1 = vpack.c.bf16 %v1327_v61, %v1319_v60  ;;  %v1318_v2 = vld [vmem:[#allocation7 + $0x18a0] sm:$0xff]  ;;  %v1409_v60 = vld [vmem:[#allocation7 + $0x1b78] sm:$0xff] }
 0x2ef   : > { %4766 = vmatprep.subr.bf16.mxu1 %v4765_v6  ;;  %v1328_v6 = vld [vmem:[#allocation7 + $0x18f0] sm:$0xff]  ;;  %v4531_v12 = vpack.c.bf16 %v1326_v3, %v1318_v2  ;;  %v4805_v3 = vpack.c.bf16 %v1409_v60, %v1401_v59  ;;  %v1487_v59 = vld [vmem:[#allocation7 + $0x1de8] sm:$0xff]  ;;  %v1481_v60 = vld [vmem:[#allocation7 + $0x1db8] sm:$0xff] }
 0x2f1   : > { %4512 = vmatpush1.bf16.msra.mxu0 %v4511_v28  ;;  %v4787_v28 = vpack.c.bf16 %v1328_v6, %v1320_v4  ;;  %v1408_v4 = vld [vmem:[#allocation7 + $0x1b70] sm:$0xff]  ;;  %v1423_v6 = vld [vmem:[#allocation7 + $0x1be8] sm:$0xff] }
 0x2f2   : > { %4768 = vmatpush1.bf16.msra.mxu1 %v4767_v13  ;;  %4514 = vmatprep.subr.bf16.mxu0 %v4513_v16  ;;  %v4533_v13 = vpack.c.bf16 %v1343_v8, %v1335_v7  ;;  %v1334_v16 = vld [vmem:[#allocation7 + $0x1920] sm:$0xff] }
 0x2f3   : > { %4770 = vmatprep.subr.bf16.mxu1 %v4769_v20  ;;  %v1344_v20 = vld [vmem:[#allocation7 + $0x1970] sm:$0xff] }
 0x2f4   : > { %v4791_v26 = vpack.c.bf16 %v1344_v20, %v1336_v17  ;;  %v1422_v17 = vld [vmem:[#allocation7 + $0x1be0] sm:$0xff]  ;;  %v4809_v20 = vpack.c.bf16 %v1425_v11, %v1417_v9  ;;  %v1503_v9 = vld [vmem:[#allocation7 + $0x1e68] sm:$0xff]  ;;  %v1497_v11 = vld [vmem:[#allocation7 + $0x1e38] sm:$0xff] }
 0x2f5   : > { %4516 = vmatpush1.bf16.msra.mxu0 %v4515_v51  ;;  %v4537_v51 = vpack.c.bf16 %v1359_v22, %v1351_v21  ;;  %v1424_v21 = vld [vmem:[#allocation7 + $0x1bf0] sm:$0xff]  ;;  %v1431_v22 = vld [vmem:[#allocation7 + $0x1c28] sm:$0xff] }
 0x2f6   : > { %4772 = vmatpush1.bf16.msra.mxu1 %v4771_v27  ;;  %4518 = vmatprep.subr.bf16.mxu0 %v4517_v29  ;;  %v1350_v27 = vld [vmem:[#allocation7 + $0x19a0] sm:$0xff] }
 0x2f7   : > { %4774 = vmatprep.subr.bf16.mxu1 %v4773_v33  ;;  %v1358_v29 = vld [vmem:[#allocation7 + $0x19e0] sm:$0xff]  ;;  %v1367_v33 = vld [vmem:[#allocation7 + $0x1a28] sm:$0xff] }
 0x2f8   : > { %v4539_v37 = vpack.c.bf16 %v1358_v29, %v1350_v27  ;;  %v4541_v38 = vpack.c.bf16 %v1375_v34, %v1367_v33  ;;  %v4557_v27 = vpack.c.bf16 %v1439_v24, %v1431_v22  ;;  %v1430_v29 = vld [vmem:[#allocation7 + $0x1c20] sm:$0xff]  ;;  %v1440_v33 = vld [vmem:[#allocation7 + $0x1c70] sm:$0xff]  ;;  %v1447_v34 = vld [vmem:[#allocation7 + $0x1ca8] sm:$0xff] }
 0x2f9   : > { %4520 = vmatpush1.bf16.msra.mxu0 %v4519_v39  ;;  %v1366_v39 = vld [vmem:[#allocation7 + $0x1a20] sm:$0xff]  ;;  %v1504_v22 = vld [vmem:[#allocation7 + $0x1e70] sm:$0xff]  ;;  %v1511_v24 = vld [vmem:[#allocation7 + $0x1ea8] sm:$0xff] }
 0x2fa   : > { %4776 = vmatpush1.bf16.msra.mxu1 %v4775_v40  ;;  %4522 = vmatprep.subr.bf16.mxu0 %v4521_v41  ;;  %v1374_v40 = vld [vmem:[#allocation7 + $0x1a60] sm:$0xff]  ;;  %v1368_v41 = vld [vmem:[#allocation7 + $0x1a30] sm:$0xff] }
 0x2fb   : > { %4778 = vmatprep.subr.bf16.mxu1 %v4777_v45  ;;  %v1391_v45 = vld [vmem:[#allocation7 + $0x1ae8] sm:$0xff]  ;;  %v4543_v49 = vpack.c.bf16 %v1374_v40, %v1366_v39  ;;  %v4799_v50 = vpack.c.bf16 %v1376_v43, %v1368_v41  ;;  %v4561_v39 = vpack.c.bf16 %v1455_v35, %v1447_v34  ;;  %v1446_v40 = vld [vmem:[#allocation7 + $0x1ca0] sm:$0xff]  ;;  %v1520_v34 = vld [vmem:[#allocation7 + $0x1ef0] sm:$0xff] }
 0x2fc   : > { %v4545_v52 = vpack.c.bf16 %v1391_v45, %v1383_v44  ;;  %v1454_v41 = vld [vmem:[#allocation7 + $0x1ce0] sm:$0xff]  ;;  %v1456_v44 = vld [vmem:[#allocation7 + $0x1cf0] sm:$0xff]  ;;  %v1463_v45 = vld [vmem:[#allocation7 + $0x1d28] sm:$0xff] }
 0x2fd   : > { %4524 = vmatpush1.bf16.msra.mxu0 %v4523_v53  ;;  %v1382_v53 = vld [vmem:[#allocation7 + $0x1aa0] sm:$0xff]  ;;  %v1527_v35 = vld [vmem:[#allocation7 + $0x1f28] sm:$0xff] }
 0x2fe   : > { %4780 = vmatpush1.bf16.msra.mxu1 %v4779_v54  ;;  %4526 = vmatprep.subr.bf16.mxu0 %v4525_v55  ;;  %v1390_v54 = vld [vmem:[#allocation7 + $0x1ae0] sm:$0xff]  ;;  %v1384_v55 = vld [vmem:[#allocation7 + $0x1ab0] sm:$0xff] }
 0x2ff   : > { %4782 = vmatprep.subr.bf16.mxu1 %v4781_v58  ;;  %v1407_v58 = vld [vmem:[#allocation7 + $0x1b68] sm:$0xff]  ;;  %v4547_v61 = vpack.c.bf16 %v1390_v54, %v1382_v53  ;;  %v4803_v62 = vpack.c.bf16 %v1392_v19, %v1384_v55  ;;  %v4565_v53 = vpack.c.bf16 %v1471_v46, %v1463_v45  ;;  %v1462_v54 = vld [vmem:[#allocation7 + $0x1d20] sm:$0xff]  ;;  %v1536_v45 = vld [vmem:[#allocation7 + $0x1f70] sm:$0xff] }
 0x300   : > { %2371 = vmatmul.mubr.f32.vlgmr.msra.gmra.mrb[2].mxu0 %v5994_v48  ;;  %v4549_v63 = vpack.c.bf16 %v1407_v58, %v1399_v57  ;;  %v1470_v55 = vld [vmem:[#allocation7 + $0x1d60] sm:$0xff]  ;;  %v1472_v57 = vld [vmem:[#allocation7 + $0x1d70] sm:$0xff]  ;;  %v1479_v58 = vld [vmem:[#allocation7 + $0x1da8] sm:$0xff] }
 0x301   : > { %4528 = vmatpush1.bf16.msra.mxu0 %v4527_v14  ;;  %2655 = vmatmul.mubr.f32.vlgmr.msra.gmra.mrb[2].mxu1 %v5994_v48  ;;  %v4535_v48 = vpack.c.bf16 %v1342_v15, %v1334_v16  ;;  %v1398_v14 = vld [vmem:[#allocation7 + $0x1b20] sm:$0xff]  ;;  %v1543_v46 = vld [vmem:[#allocation7 + $0x1fa8] sm:$0xff] }
 0x302   : > { %4784 = vmatpush1.bf16.msra.mxu1 %v4783_v0  ;;  %4530 = vmatprep.subr.bf16.mxu0 %v4529_v1  ;;  %v1406_v0 = vld [vmem:[#allocation7 + $0x1b60] sm:$0xff]  ;;  %v1400_v1 = vld [vmem:[#allocation7 + $0x1b30] sm:$0xff] }
 0x303   : > { %4786 = vmatprep.subr.bf16.mxu1 %v4785_v5  ;;  %2441 = vmatprep.mubr.f32.mxu0 %v6000_v32  ;;  %v1415_v5 = vld [vmem:[#allocation7 + $0x1ba8] sm:$0xff]  ;;  %v1414_v15 = vld [vmem:[#allocation7 + $0x1ba0] sm:$0xff] }
 0x304   : > { %2725 = vmatprep.mubr.f32.mxu1 %v6000_v32  ;;  %v4795_v32 = vpack.c.bf16 %v1360_v31, %v1352_v23  ;;  %v4553_v16 = vpack.c.bf16 %v1423_v6, %v1415_v5  ;;  %v1438_v23 = vld [vmem:[#allocation7 + $0x1c60] sm:$0xff]  ;;  %v1488_v5 = vld [vmem:[#allocation7 + $0x1df0] sm:$0xff]  ;;  %v1495_v6 = vld [vmem:[#allocation7 + $0x1e28] sm:$0xff] }
 0x305   : > { %4532 = vmatpush1.bf16.msra.mxu0 %v4531_v12 }
 0x306   : > { %4788 = vmatpush1.bf16.msra.mxu1 %v4787_v28  ;;  %4534 = vmatprep.subr.bf16.mxu0 %v4533_v13  ;;  %v4551_v28 = vpack.c.bf16 %v1406_v0, %v1398_v14  ;;  %v4807_v13 = vpack.c.bf16 %v1408_v4, %v1400_v1  ;;  %v4569_v14 = vpack.c.bf16 %v1487_v59, %v1479_v58  ;;  %v1478_v0 = vld [vmem:[#allocation7 + $0x1da0] sm:$0xff]  ;;  %v1552_v58 = vld [vmem:[#allocation7 + $0x1ff0] sm:$0xff] }
 0x307   : > { %4790 = vmatprep.subr.bf16.mxu1 %v4789_v18  ;;  %v1416_v18 = vld [vmem:[#allocation7 + $0x1bb0] sm:$0xff]  ;;  %v1486_v1 = vld [vmem:[#allocation7 + $0x1de0] sm:$0xff] }
 0x308   : > { %v2880_v59 = vld [vmem:[#allocation13 + $0x8] sm:$0xff] }
 0x309   : > { %4536 = vmatpush1.bf16.msra.mxu0 %v4535_v48  ;;  %v1441_v48 = vld [vmem:[#allocation7 + $0x1c78] sm:$0xff] }
 0x30a   : > { %4792 = vmatpush1.bf16.msra.mxu1 %v4791_v26  ;;  %4538 = vmatprep.subr.bf16.mxu0 %v4537_v51  ;;  %v4555_v26 = vpack.c.bf16 %v1422_v17, %v1414_v15  ;;  %v4811_v51 = vpack.c.bf16 %v1424_v21, %v1416_v18  ;;  %v4813_v31 = vpack.c.bf16 %v1441_v48, %v1433_v25  ;;  %v1494_v17 = vld [vmem:[#allocation7 + $0x1e20] sm:$0xff]  ;;  %v1519_v25 = vld [vmem:[#allocation7 + $0x1ee8] sm:$0xff]  ;;  %v1513_v48 = vld [vmem:[#allocation7 + $0x1eb8] sm:$0xff] }
 0x30b   : > { %4794 = vmatprep.subr.bf16.mxu1 %v4793_v30  ;;  %v1432_v30 = vld [vmem:[#allocation7 + $0x1c30] sm:$0xff]  ;;  %v4573_v15 = vpack.c.bf16 %v1503_v9, %v1495_v6  ;;  %v1502_v18 = vld [vmem:[#allocation7 + $0x1e60] sm:$0xff]  ;;  %v2881_v9 = vld [vmem:[#allocation13 + $0x10] sm:$0xff] }
 0x30c   : > { %v2904_v6 = vld [vmem:[#allocation13 + $0xc8] sm:$0xff] }
 0x30d   : > { %4540 = vmatpush1.bf16.msra.mxu0 %v4539_v37  ;;  %v1457_v37 = vld [vmem:[#allocation7 + $0x1cf8] sm:$0xff] }
 0x30e   : > { %4796 = vmatpush1.bf16.msra.mxu1 %v4795_v32  ;;  %4542 = vmatprep.subr.bf16.mxu0 %v4541_v38  ;;  %v4559_v32 = vpack.c.bf16 %v1438_v23, %v1430_v29  ;;  %v4815_v38 = vpack.c.bf16 %v1440_v33, %v1432_v30  ;;  %v4817_v43 = vpack.c.bf16 %v1457_v37, %v1449_v36  ;;  %v1510_v23 = vld [vmem:[#allocation7 + $0x1ea0] sm:$0xff]  ;;  %v1535_v36 = vld [vmem:[#allocation7 + $0x1f68] sm:$0xff]  ;;  %v1529_v37 = vld [vmem:[#allocation7 + $0x1f38] sm:$0xff] }
 0x30f   : > { %4798 = vmatprep.subr.bf16.mxu1 %v4797_v42  ;;  %v1448_v42 = vld [vmem:[#allocation7 + $0x1cb0] sm:$0xff]  ;;  %v4577_v29 = vpack.c.bf16 %v1519_v25, %v1511_v24  ;;  %v1518_v30 = vld [vmem:[#allocation7 + $0x1ee0] sm:$0xff]  ;;  %v2897_v25 = vld [vmem:[#allocation13 + $0x90] sm:$0xff] }
 0x310   : > { %v2920_v24 = vld [vmem:[#allocation13 + $0x148] sm:$0xff] }
 0x311   : > { %4544 = vmatpush1.bf16.msra.mxu0 %v4543_v49  ;;  %v1473_v49 = vld [vmem:[#allocation7 + $0x1d78] sm:$0xff] }
 0x312   : > { %4800 = vmatpush1.bf16.msra.mxu1 %v4799_v50  ;;  %4546 = vmatprep.subr.bf16.mxu0 %v4545_v52  ;;  %v4563_v50 = vpack.c.bf16 %v1454_v41, %v1446_v40  ;;  %v4819_v52 = vpack.c.bf16 %v1456_v44, %v1448_v42  ;;  %v4821_v19 = vpack.c.bf16 %v1473_v49, %v1465_v47  ;;  %v1526_v41 = vld [vmem:[#allocation7 + $0x1f20] sm:$0xff]  ;;  %v1551_v47 = vld [vmem:[#allocation7 + $0x1fe8] sm:$0xff]  ;;  %v1545_v49 = vld [vmem:[#allocation7 + $0x1fb8] sm:$0xff] }
 0x313   : > { %v6025_v2 = vpop.f32.mrb[0].mxu0  ;;  %4802 = vmatprep.subr.bf16.mxu1 %v4801_v56  ;;  %v1464_v56 = vld [vmem:[#allocation7 + $0x1d30] sm:$0xff]  ;;  %v4581_v40 = vpack.c.bf16 %v1535_v36, %v1527_v35  ;;  %v1534_v42 = vld [vmem:[#allocation7 + $0x1f60] sm:$0xff]  ;;  %v2913_v36 = vld [vmem:[#allocation13 + $0x110] sm:$0xff] }
 0x314   : > { %v6027_v7 = vpop.f32.mrb[0].mxu1  ;;  %v6029_v8 = vpop.f32.mrb[1].mxu0  ;;  %v2936_v35 = vld [vmem:[#allocation13 + $0x1c8] sm:$0xff] }
 0x315   : > { %v6031_v12 = vpop.f32.mrb[1].mxu1  ;;  %4548 = vmatpush1.bf16.msra.mxu0 %v4547_v61  ;;  %v1489_v61 = vld [vmem:[#allocation7 + $0x1df8] sm:$0xff] }
 0x316   : > { %4804 = vmatpush1.bf16.msra.mxu1 %v4803_v62  ;;  %4550 = vmatprep.subr.bf16.mxu0 %v4549_v63  ;;  %v4567_v62 = vpack.c.bf16 %v1470_v55, %v1462_v54  ;;  %v4823_v63 = vpack.c.bf16 %v1472_v57, %v1464_v56  ;;  %v4825_v4 = vpack.c.bf16 %v1489_v61, %v1481_v60  ;;  %v1542_v55 = vld [vmem:[#allocation7 + $0x1fa0] sm:$0xff]  ;;  %v2882_v61 = vld [vmem:[#allocation13 + $0x18] sm:$0xff] }
 0x317   : > { %4806 = vmatprep.subr.bf16.mxu1 %v4805_v3  ;;  %v1480_v3 = vld [vmem:[#allocation7 + $0x1db0] sm:$0xff]  ;;  %v4585_v54 = vpack.c.bf16 %v1551_v47, %v1543_v46  ;;  %v1550_v56 = vld [vmem:[#allocation7 + $0x1fe0] sm:$0xff]  ;;  %v2929_v47 = vld [vmem:[#allocation13 + $0x190] sm:$0xff] }
 0x318   : > { %v2888_v60 = vld [vmem:[#allocation13 + $0x48] sm:$0xff] }
 0x319   : > { %4552 = vmatpush1.bf16.msra.mxu0 %v4551_v28  ;;  %v1505_v28 = vld [vmem:[#allocation7 + $0x1e78] sm:$0xff]  ;;  %v2952_v46 = vld [vmem:[#allocation13 + $0x248] sm:$0xff] }
 0x31a   : > { %4808 = vmatpush1.bf16.msra.mxu1 %v4807_v13  ;;  %4554 = vmatprep.subr.bf16.mxu0 %v4553_v16  ;;  %v4571_v13 = vpack.c.bf16 %v1486_v1, %v1478_v0  ;;  %v4827_v16 = vpack.c.bf16 %v1488_v5, %v1480_v3  ;;  %v4829_v21 = vpack.c.bf16 %v1505_v28, %v1497_v11  ;;  %v2879_v1 = vld [vmem:[#allocation13] sm:$0xff]  ;;  %v2889_v11 = vld [vmem:[#allocation13 + $0x50] sm:$0xff]  ;;  %v2898_v28 = vld [vmem:[#allocation13 + $0x98] sm:$0xff] }
 0x31b   : > { %4810 = vmatprep.subr.bf16.mxu1 %v4809_v20  ;;  %v1496_v20 = vld [vmem:[#allocation7 + $0x1e30] sm:$0xff]  ;;  %v4845_v0 = vpack.c.bf16 %v2888_v60, %v2880_v59  ;;  %v2887_v3 = vld [vmem:[#allocation13 + $0x40] sm:$0xff]  ;;  %v2968_v59 = vld [vmem:[#allocation13 + $0x2c8] sm:$0xff] }
 0x31c   : > { %v2945_v60 = vld [vmem:[#allocation13 + $0x210] sm:$0xff] }
 0x31d   : > { %4556 = vmatpush1.bf16.msra.mxu0 %v4555_v26  ;;  %v1521_v26 = vld [vmem:[#allocation7 + $0x1ef8] sm:$0xff] }
 0x31e   : > { %4812 = vmatpush1.bf16.msra.mxu1 %v4811_v51  ;;  %4558 = vmatprep.subr.bf16.mxu0 %v4557_v27  ;;  %v4575_v51 = vpack.c.bf16 %v1502_v18, %v1494_v17  ;;  %v4831_v27 = vpack.c.bf16 %v1504_v22, %v1496_v20  ;;  %v4833_v33 = vpack.c.bf16 %v1521_v26, %v1513_v48  ;;  %v2895_v18 = vld [vmem:[#allocation13 + $0x80] sm:$0xff]  ;;  %v2905_v48 = vld [vmem:[#allocation13 + $0xd0] sm:$0xff]  ;;  %v2914_v26 = vld [vmem:[#allocation13 + $0x118] sm:$0xff] }
 0x31f   : > { %4814 = vmatprep.subr.bf16.mxu1 %v4813_v31  ;;  %v1512_v31 = vld [vmem:[#allocation7 + $0x1eb0] sm:$0xff]  ;;  %v4879_v17 = vpack.c.bf16 %v2889_v11, %v2881_v9  ;;  %v2903_v20 = vld [vmem:[#allocation13 + $0xc0] sm:$0xff]  ;;  %v2984_v9 = vld [vmem:[#allocation13 + $0x348] sm:$0xff] }
 0x320   : > { %v2961_v11 = vld [vmem:[#allocation13 + $0x290] sm:$0xff] }
 0x321   : > { %4560 = vmatpush1.bf16.msra.mxu0 %v4559_v32  ;;  %v1537_v32 = vld [vmem:[#allocation7 + $0x1f78] sm:$0xff] }
 0x322   : > { %4816 = vmatpush1.bf16.msra.mxu1 %v4815_v38  ;;  %4562 = vmatprep.subr.bf16.mxu0 %v4561_v39  ;;  %v4579_v38 = vpack.c.bf16 %v1518_v30, %v1510_v23  ;;  %v4835_v39 = vpack.c.bf16 %v1520_v34, %v1512_v31  ;;  %v4837_v44 = vpack.c.bf16 %v1537_v32, %v1529_v37  ;;  %v2911_v30 = vld [vmem:[#allocation13 + $0x100] sm:$0xff]  ;;  %v2921_v37 = vld [vmem:[#allocation13 + $0x150] sm:$0xff]  ;;  %v5533_v32 = vmov 0.0  }
 0x323   : > { %4818 = vmatprep.subr.bf16.mxu1 %v4817_v43  ;;  %v1528_v43 = vld [vmem:[#allocation7 + $0x1f30] sm:$0xff]  ;;  %v4883_v23 = vpack.c.bf16 %v2905_v48, %v2897_v25  ;;  %v2919_v31 = vld [vmem:[#allocation13 + $0x140] sm:$0xff]  ;;  %v3000_v25 = vld [vmem:[#allocation13 + $0x3c8] sm:$0xff] }
 0x324   : > { %v2977_v48 = vld [vmem:[#allocation13 + $0x310] sm:$0xff] }
 0x325   : > { %4564 = vmatpush1.bf16.msra.mxu0 %v4563_v50  ;;  %v1553_v50 = vld [vmem:[#allocation7 + $0x1ff8] sm:$0xff] }
 0x326   : > { %4820 = vmatpush1.bf16.msra.mxu1 %v4819_v52  ;;  %4566 = vmatprep.subr.bf16.mxu0 %v4565_v53  ;;  %v4583_v52 = vpack.c.bf16 %v1534_v42, %v1526_v41  ;;  %v4839_v53 = vpack.c.bf16 %v1536_v45, %v1528_v43  ;;  %v4841_v57 = vpack.c.bf16 %v1553_v50, %v1545_v49  ;;  %v2927_v42 = vld [vmem:[#allocation13 + $0x180] sm:$0xff]  ;;  %v2937_v49 = vld [vmem:[#allocation13 + $0x1d0] sm:$0xff]  ;;  %v2946_v50 = vld [vmem:[#allocation13 + $0x218] sm:$0xff] }
 0x327   : > { %4822 = vmatprep.subr.bf16.mxu1 %v4821_v19  ;;  %v1544_v19 = vld [vmem:[#allocation7 + $0x1fb0] sm:$0xff]  ;;  %v4887_v41 = vpack.c.bf16 %v2921_v37, %v2913_v36  ;;  %v2935_v43 = vld [vmem:[#allocation13 + $0x1c0] sm:$0xff]  ;;  %v3001_v36 = vld [vmem:[#allocation13 + $0x3d0] sm:$0xff] }
 0x328   : > { %v2884_v37 = vld [vmem:[#allocation13 + $0x28] sm:$0xff] }
 0x329   : > { %4568 = vmatpush1.bf16.msra.mxu0 %v4567_v62  ;;  %v2890_v62 = vld [vmem:[#allocation13 + $0x58] sm:$0xff] }
 0x32a   : > { %4824 = vmatpush1.bf16.msra.mxu1 %v4823_v63  ;;  %4570 = vmatprep.subr.bf16.mxu0 %v4569_v14  ;;  %v4587_v63 = vpack.c.bf16 %v1550_v56, %v1542_v55  ;;  %v4843_v14 = vpack.c.bf16 %v1552_v58, %v1544_v19  ;;  %v4877_v5 = vpack.c.bf16 %v2890_v62, %v2882_v61  ;;  %v2943_v56 = vld [vmem:[#allocation13 + $0x200] sm:$0xff]  ;;  %v2953_v61 = vld [vmem:[#allocation13 + $0x250] sm:$0xff]  ;;  %v2962_v62 = vld [vmem:[#allocation13 + $0x298] sm:$0xff] }
 0x32b   : > { %4826 = vmatprep.subr.bf16.mxu1 %v4825_v4  ;;  %v2896_v4 = vld [vmem:[#allocation13 + $0x88] sm:$0xff]  ;;  %v4891_v55 = vpack.c.bf16 %v2937_v49, %v2929_v47  ;;  %v2951_v19 = vld [vmem:[#allocation13 + $0x240] sm:$0xff]  ;;  %v2885_v49 = vld [vmem:[#allocation13 + $0x30] sm:$0xff] }
 0x32c   : > { %v2908_v47 = vld [vmem:[#allocation13 + $0xe8] sm:$0xff] }
 0x32d   : > { %4572 = vmatpush1.bf16.msra.mxu0 %v4571_v13  ;;  %v2906_v13 = vld [vmem:[#allocation13 + $0xd8] sm:$0xff] }
 0x32e   : > { %4828 = vmatpush1.bf16.msra.mxu1 %v4827_v16  ;;  %4574 = vmatprep.subr.bf16.mxu0 %v4573_v15  ;;  %v4847_v16 = vpack.c.bf16 %v2887_v3, %v2879_v1  ;;  %v4849_v15 = vpack.c.bf16 %v2904_v6, %v2896_v4  ;;  %v4881_v22 = vpack.c.bf16 %v2906_v13, %v2898_v28  ;;  %v2959_v3 = vld [vmem:[#allocation13 + $0x280] sm:$0xff]  ;;  %v2969_v28 = vld [vmem:[#allocation13 + $0x2d0] sm:$0xff]  ;;  %v2978_v13 = vld [vmem:[#allocation13 + $0x318] sm:$0xff] }
 0x32f   : > { %4830 = vmatprep.subr.bf16.mxu1 %v4829_v21  ;;  %v2912_v21 = vld [vmem:[#allocation13 + $0x108] sm:$0xff]  ;;  %v4895_v1 = vpack.c.bf16 %v2953_v61, %v2945_v60  ;;  %v2967_v4 = vld [vmem:[#allocation13 + $0x2c0] sm:$0xff] }
 0x330   : > { %v2924_v61 = vld [vmem:[#allocation13 + $0x168] sm:$0xff] }
 0x331   : > { %4576 = vmatpush1.bf16.msra.mxu0 %v4575_v51  ;;  %v2922_v51 = vld [vmem:[#allocation13 + $0x158] sm:$0xff] }
 0x332   : > { %4832 = vmatpush1.bf16.msra.mxu1 %v4831_v27  ;;  %4578 = vmatprep.subr.bf16.mxu0 %v4577_v29  ;;  %v4851_v27 = vpack.c.bf16 %v2903_v20, %v2895_v18  ;;  %v4853_v29 = vpack.c.bf16 %v2920_v24, %v2912_v21  ;;  %v4885_v34 = vpack.c.bf16 %v2922_v51, %v2914_v26  ;;  %v2975_v20 = vld [vmem:[#allocation13 + $0x300] sm:$0xff]  ;;  %v2985_v26 = vld [vmem:[#allocation13 + $0x350] sm:$0xff]  ;;  %v2994_v51 = vld [vmem:[#allocation13 + $0x398] sm:$0xff] }
 0x333   : > { %4834 = vmatprep.subr.bf16.mxu1 %v4833_v33  ;;  %v2928_v33 = vld [vmem:[#allocation13 + $0x188] sm:$0xff]  ;;  %v4899_v18 = vpack.c.bf16 %v2969_v28, %v2961_v11  ;;  %v2983_v21 = vld [vmem:[#allocation13 + $0x340] sm:$0xff] }
 0x334   : > { %v2940_v28 = vld [vmem:[#allocation13 + $0x1e8] sm:$0xff] }
 0x335   : > { %4580 = vmatpush1.bf16.msra.mxu0 %v4579_v38  ;;  %v2930_v38 = vld [vmem:[#allocation13 + $0x198] sm:$0xff] }
 0x336   : > { %4836 = vmatpush1.bf16.msra.mxu1 %v4835_v39  ;;  %4582 = vmatprep.subr.bf16.mxu0 %v4581_v40  ;;  %v2938_v39 = vld [vmem:[#allocation13 + $0x1d8] sm:$0xff]  ;;  %v4857_v40 = vpack.c.bf16 %v2936_v35, %v2928_v33  ;;  %v2999_v33 = vld [vmem:[#allocation13 + $0x3c0] sm:$0xff] }
 0x337   : > { %4838 = vmatprep.subr.bf16.mxu1 %v4837_v44  ;;  %v2944_v44 = vld [vmem:[#allocation13 + $0x208] sm:$0xff]  ;;  %v4889_v45 = vpack.c.bf16 %v2938_v39, %v2930_v38  ;;  %v2886_v39 = vld [vmem:[#allocation13 + $0x38] sm:$0xff] }
 0x338   : > { %v2892_v38 = vld [vmem:[#allocation13 + $0x68] sm:$0xff] }
 0x339   : > { %4584 = vmatpush1.bf16.msra.mxu0 %v4583_v52  ;;  %v2954_v52 = vld [vmem:[#allocation13 + $0x258] sm:$0xff] }
 0x33a   : > { %4840 = vmatpush1.bf16.msra.mxu1 %v4839_v53  ;;  %4586 = vmatprep.subr.bf16.mxu0 %v4585_v54  ;;  %v4859_v53 = vpack.c.bf16 %v2935_v43, %v2927_v42  ;;  %v4861_v54 = vpack.c.bf16 %v2952_v46, %v2944_v44  ;;  %v4893_v58 = vpack.c.bf16 %v2954_v52, %v2946_v50  ;;  %v2883_v43 = vld [vmem:[#allocation13 + $0x20] sm:$0xff]  ;;  %v2893_v50 = vld [vmem:[#allocation13 + $0x70] sm:$0xff]  ;;  %v2902_v52 = vld [vmem:[#allocation13 + $0xb8] sm:$0xff] }
 0x33b   : > { %4842 = vmatprep.subr.bf16.mxu1 %v4841_v57  ;;  %v2960_v57 = vld [vmem:[#allocation13 + $0x288] sm:$0xff]  ;;  %v4909_v42 = vpack.c.bf16 %v2892_v38, %v2884_v37  ;;  %v2891_v44 = vld [vmem:[#allocation13 + $0x60] sm:$0xff]  ;;  %v2949_v38 = vld [vmem:[#allocation13 + $0x230] sm:$0xff] }
 0x33c   : > { %v2972_v37 = vld [vmem:[#allocation13 + $0x2e8] sm:$0xff] }
 0x33d   : > { %4588 = vmatpush1.bf16.msra.mxu0 %v4587_v63  ;;  %v2970_v63 = vld [vmem:[#allocation13 + $0x2d8] sm:$0xff] }
 0x33e   : > { %4844 = vmatpush1.bf16.msra.mxu1 %v4843_v14  ;;  %4846 = vmatprep.subr.bf16.mxu0 %v4845_v0  ;;  %v4863_v14 = vpack.c.bf16 %v2951_v19, %v2943_v56  ;;  %v4865_v0 = vpack.c.bf16 %v2968_v59, %v2960_v57  ;;  %v4897_v6 = vpack.c.bf16 %v2970_v63, %v2962_v62  ;;  %v2899_v57 = vld [vmem:[#allocation13 + $0xa0] sm:$0xff]  ;;  %v2916_v59 = vld [vmem:[#allocation13 + $0x128] sm:$0xff]  ;;  %v2901_v62 = vld [vmem:[#allocation13 + $0xb0] sm:$0xff] }
 0x33f   : > { %4878 = vmatprep.subr.bf16.mxu1 %v4877_v5  ;;  %v2976_v5 = vld [vmem:[#allocation13 + $0x308] sm:$0xff]  ;;  %v4943_v19 = vpack.c.bf16 %v2893_v50, %v2885_v49  ;;  %v2909_v63 = vld [vmem:[#allocation13 + $0xf0] sm:$0xff] }
 0x340   : > { %2442 = vmatmul.mubr.f32.vlgmr.msra.gmra.mrb[2].mxu0 %v6007_v10  ;;  %v2988_v49 = vld [vmem:[#allocation13 + $0x368] sm:$0xff]  ;;  %v2965_v50 = vld [vmem:[#allocation13 + $0x2b0] sm:$0xff] }
 0x341   : > { %2726 = vmatmul.mubr.f32.vlgmr.msra.gmra.mrb[2].mxu1 %v6007_v10  ;;  %4848 = vmatpush1.bf16.msra.mxu0 %v4847_v16  ;;  %v4855_v10 = vpack.c.bf16 %v2919_v31, %v2911_v30  ;;  %v2986_v16 = vld [vmem:[#allocation13 + $0x358] sm:$0xff]  ;;  %v4903_v30 = vpack.c.bf16 %v2985_v26, %v2977_v48  ;;  %v2991_v31 = vld [vmem:[#allocation13 + $0x380] sm:$0xff]  ;;  %v2956_v26 = vld [vmem:[#allocation13 + $0x268] sm:$0xff] }
 0x342   : > { %4850 = vmatprep.subr.bf16.mxu0 %v4849_v15  ;;  %4880 = vmatpush1.bf16.msra.mxu1 %v4879_v17  ;;  %v4867_v15 = vpack.c.bf16 %v2967_v4, %v2959_v3  ;;  %v4869_v17 = vpack.c.bf16 %v2984_v9, %v2976_v5  ;;  %v4901_v24 = vpack.c.bf16 %v2986_v16, %v2978_v13  ;;  %v2915_v5 = vld [vmem:[#allocation13 + $0x120] sm:$0xff]  ;;  %v2932_v9 = vld [vmem:[#allocation13 + $0x1a8] sm:$0xff]  ;;  %v2917_v13 = vld [vmem:[#allocation13 + $0x130] sm:$0xff] }
 0x343   : > { %4882 = vmatprep.subr.bf16.mxu1 %v4881_v22  ;;  %3113 = vmatprep.mubr.f32.mxu0 %v5533_v32  ;;  %v2992_v22 = vld [vmem:[#allocation13 + $0x388] sm:$0xff]  ;;  %v4917_v3 = vpack.c.bf16 %v2924_v61, %v2916_v59  ;;  %v4947_v4 = vpack.c.bf16 %v2909_v63, %v2901_v62  ;;  %v2925_v16 = vld [vmem:[#allocation13 + $0x170] sm:$0xff]  ;;  %v2987_v59 = vld [vmem:[#allocation13 + $0x360] sm:$0xff] }
 0x344   : > { %3184 = vmatprep.mubr.f32.mxu1 %v5533_v32  ;;  %v3004_v62 = vld [vmem:[#allocation13 + $0x3e8] sm:$0xff]  ;;  %v2981_v63 = vld [vmem:[#allocation13 + $0x330] sm:$0xff] }
 0x345   : > { %4852 = vmatpush1.bf16.msra.mxu0 %v4851_v27  ;;  %v3002_v27 = vld [vmem:[#allocation13 + $0x3d8] sm:$0xff] }
 0x346   : > { %4854 = vmatprep.subr.bf16.mxu0 %v4853_v29  ;;  %4884 = vmatpush1.bf16.msra.mxu1 %v4883_v23  ;;  %v4871_v29 = vpack.c.bf16 %v2983_v21, %v2975_v20  ;;  %v4873_v23 = vpack.c.bf16 %v3000_v25, %v2992_v22  ;;  %v4905_v35 = vpack.c.bf16 %v3002_v27, %v2994_v51  ;;  %v2931_v22 = vld [vmem:[#allocation13 + $0x1a0] sm:$0xff]  ;;  %v2948_v25 = vld [vmem:[#allocation13 + $0x228] sm:$0xff]  ;;  %v2933_v51 = vld [vmem:[#allocation13 + $0x1b0] sm:$0xff] }
 0x347   : > { %4886 = vmatprep.subr.bf16.mxu1 %v4885_v34  ;;  %v2993_v34 = vld [vmem:[#allocation13 + $0x390] sm:$0xff]  ;;  %v4921_v20 = vpack.c.bf16 %v2940_v28, %v2932_v9  ;;  %v4951_v21 = vpack.c.bf16 %v2925_v16, %v2917_v13  ;;  %v3003_v9 = vld [vmem:[#allocation13 + $0x3e0] sm:$0xff] }
 0x348   : > { %v2941_v27 = vld [vmem:[#allocation13 + $0x1f0] sm:$0xff] }
 0x349   : > { %4856 = vmatpush1.bf16.msra.mxu0 %v4855_v10  ;;  %v2894_v10 = vld [vmem:[#allocation13 + $0x78] sm:$0xff]  ;;  %v2997_v28 = vld [vmem:[#allocation13 + $0x3b0] sm:$0xff] }
 0x34a   : > { %4858 = vmatprep.subr.bf16.mxu0 %v4857_v40  ;;  %4888 = vmatpush1.bf16.msra.mxu1 %v4887_v41  ;;  %v4875_v40 = vpack.c.bf16 %v2999_v33, %v2991_v31  ;;  %v4907_v41 = vpack.c.bf16 %v3001_v36, %v2993_v34  ;;  %v4941_v46 = vpack.c.bf16 %v2894_v10, %v2886_v39  ;;  %v2947_v33 = vld [vmem:[#allocation13 + $0x220] sm:$0xff]  ;;  %v2957_v39 = vld [vmem:[#allocation13 + $0x270] sm:$0xff]  ;;  %v2966_v10 = vld [vmem:[#allocation13 + $0x2b8] sm:$0xff] }
 0x34b   : > { %4890 = vmatprep.subr.bf16.mxu1 %v4889_v45  ;;  %v2900_v45 = vld [vmem:[#allocation13 + $0xa8] sm:$0xff]  ;;  %v4955_v31 = vpack.c.bf16 %v2941_v27, %v2933_v51  ;;  %v2955_v34 = vld [vmem:[#allocation13 + $0x260] sm:$0xff]  ;;  %v3005_v13 = vld [vmem:[#allocation13 + $0x3f0] sm:$0xff] }
 0x34c   : > { %v4913_v56 = vpack.c.bf16 %v2908_v47, %v2900_v45  ;;  %v2971_v45 = vld [vmem:[#allocation13 + $0x2e0] sm:$0xff] }
 0x34d   : > { %4860 = vmatpush1.bf16.msra.mxu0 %v4859_v53  ;;  %v2910_v53 = vld [vmem:[#allocation13 + $0xf8] sm:$0xff] }
 0x34e   : > { %4862 = vmatprep.subr.bf16.mxu0 %v4861_v54  ;;  %4892 = vmatpush1.bf16.msra.mxu1 %v4891_v55  ;;  %v6038_v54 = vld [vmem:[%s5933_s28] sm:$0xff]  ;;  %v4911_v55 = vpack.c.bf16 %v2891_v44, %v2883_v43  ;;  %v4945_v60 = vpack.c.bf16 %v2910_v53, %v2902_v52  ;;  %v4959_v43 = vpack.c.bf16 %v2957_v39, %v2949_v38  ;;  %v2973_v52 = vld [vmem:[#allocation13 + $0x2f0] sm:$0xff] }
 0x34f   : > { %4894 = vmatprep.subr.bf16.mxu1 %v4893_v58  ;;  %v2907_v58 = vld [vmem:[#allocation13 + $0xe0] sm:$0xff]  ;;  %v2982_v53 = vld [vmem:[#allocation13 + $0x338] sm:$0xff] }
 0x350   : > { %v2963_v44 = vld [vmem:[#allocation13 + $0x2a0] sm:$0xff] }
 0x351   : > { %4864 = vmatpush1.bf16.msra.mxu0 %v4863_v14  ;;  %v2918_v14 = vld [vmem:[#allocation13 + $0x138] sm:$0xff] }
 0x352   : > { %4866 = vmatprep.subr.bf16.mxu0 %v4865_v0  ;;  %4896 = vmatpush1.bf16.msra.mxu1 %v4895_v1  ;;  %v2926_v0 = vld [vmem:[#allocation13 + $0x178] sm:$0xff]  ;;  %v4915_v1 = vpack.c.bf16 %v2907_v58, %v2899_v57  ;;  %v4963_v57 = vpack.c.bf16 %v2973_v52, %v2965_v50  ;;  %v2979_v58 = vld [vmem:[#allocation13 + $0x320] sm:$0xff] }
 0x353   : > { %4898 = vmatprep.subr.bf16.mxu1 %v4897_v6  ;;  %v2923_v6 = vld [vmem:[#allocation13 + $0x160] sm:$0xff]  ;;  %v4949_v11 = vpack.c.bf16 %v2926_v0, %v2918_v14  ;;  %v2989_v14 = vld [vmem:[#allocation13 + $0x370] sm:$0xff]  ;;  %v2998_v0 = vld [vmem:[#allocation13 + $0x3b8] sm:$0xff] }
 0x355   : > { %4868 = vmatpush1.bf16.msra.mxu0 %v4867_v15  ;;  %v2934_v15 = vld [vmem:[#allocation13 + $0x1b8] sm:$0xff] }
 0x356   : > { %4870 = vmatprep.subr.bf16.mxu0 %v4869_v17  ;;  %4900 = vmatpush1.bf16.msra.mxu1 %v4899_v18  ;;  %v2942_v17 = vld [vmem:[#allocation13 + $0x1f8] sm:$0xff]  ;;  %v4919_v18 = vpack.c.bf16 %v2923_v6, %v2915_v5  ;;  %v4967_v5 = vpack.c.bf16 %v2989_v14, %v2981_v63  ;;  %v2995_v6 = vld [vmem:[#allocation13 + $0x3a0] sm:$0xff] }
 0x357   : > { %4902 = vmatprep.subr.bf16.mxu1 %v4901_v24  ;;  %v2939_v24 = vld [vmem:[#allocation13 + $0x1e0] sm:$0xff]  ;;  %v4953_v48 = vpack.c.bf16 %v2942_v17, %v2934_v15  ;;  %v4939_v16 = vpack.c.bf16 %v3003_v9, %v2995_v6  ;;  %v4971_v15 = vpack.c.bf16 %v3005_v13, %v2997_v28  ;;  %v1556_v17 = vlaneseq }
 0x359   : > { %4872 = vmatpush1.bf16.msra.mxu0 %v4871_v29  ;;  %v2950_v29 = vld [vmem:[#allocation13 + $0x238] sm:$0xff] }
 0x35a   : > { %4874 = vmatprep.subr.bf16.mxu0 %v4873_v23  ;;  %4904 = vmatpush1.bf16.msra.mxu1 %v4903_v30  ;;  %v2958_v23 = vld [vmem:[#allocation13 + $0x278] sm:$0xff]  ;;  %v4923_v30 = vpack.c.bf16 %v2939_v24, %v2931_v22  ;;  %v1554_v22 = vld [vmem:[#allocation8] sm:$0xff] }
 0x35b   : > { %4906 = vmatprep.subr.bf16.mxu1 %v4905_v35  ;;  %v2964_v35 = vld [vmem:[#allocation13 + $0x2a8] sm:$0xff]  ;;  %v4957_v36 = vpack.c.bf16 %v2958_v23, %v2950_v29 }
 0x35d   : > { %4876 = vmatpush1.bf16.msra.mxu0 %v4875_v40  ;;  %v2974_v40 = vld [vmem:[#allocation13 + $0x2f8] sm:$0xff] }
 0x35e   : > { %4908 = vmatpush1.bf16.msra.mxu1 %v4907_v41  ;;  %4910 = vmatprep.subr.bf16.mxu0 %v4909_v42  ;;  %v4927_v41 = vpack.c.bf16 %v2955_v34, %v2947_v33  ;;  %v4929_v42 = vpack.c.bf16 %v2972_v37, %v2964_v35  ;;  %v4961_v47 = vpack.c.bf16 %v2974_v40, %v2966_v10 }
 0x35f   : > { %4942 = vmatprep.subr.bf16.mxu1 %v4941_v46  ;;  %v2980_v46 = vld [vmem:[#allocation13 + $0x328] sm:$0xff] }
 0x360   : > { %3114 = vmatmul.mubr.f32.vlgmr.msra.gmra.mrb[4].mxu0 %v6038_v54 }
 0x361   : > { %4912 = vmatpush1.bf16.msra.mxu0 %v4911_v55  ;;  %3185 = vmatmul.mubr.f32.vlgmr.msra.gmra.mrb[4].mxu1 %v6038_v54  ;;  %v2990_v55 = vld [vmem:[#allocation13 + $0x378] sm:$0xff] }
 0x362   : > { %4914 = vmatprep.subr.bf16.mxu0 %v4913_v56  ;;  %4944 = vmatpush1.bf16.msra.mxu1 %v4943_v19  ;;  %v4931_v56 = vpack.c.bf16 %v2971_v45, %v2963_v44  ;;  %v4933_v19 = vpack.c.bf16 %v2988_v49, %v2980_v46  ;;  %v4965_v61 = vpack.c.bf16 %v2990_v55, %v2982_v53 }
 0x363   : > { %4946 = vmatprep.subr.bf16.mxu1 %v4945_v60  ;;  %3255 = vmatprep.mubr.f32.mxu0 %v5533_v32  ;;  %v2996_v60 = vld [vmem:[#allocation13 + $0x3a8] sm:$0xff] }
 0x364   : > { %3326 = vmatprep.mubr.f32.mxu1 %v5533_v32  ;;  %v4925_v32 = vpack.c.bf16 %v2956_v26, %v2948_v25 }
 0x365   : > { %4916 = vmatpush1.bf16.msra.mxu0 %v4915_v1  ;;  %v3006_v1 = vld [vmem:[#allocation13 + $0x3f8] sm:$0xff] }
 0x366   : > { %4918 = vmatprep.subr.bf16.mxu0 %v4917_v3  ;;  %4948 = vmatpush1.bf16.msra.mxu1 %v4947_v4  ;;  %v4935_v3 = vpack.c.bf16 %v2987_v59, %v2979_v58  ;;  %v4937_v4 = vpack.c.bf16 %v3004_v62, %v2996_v60 }
 0x367   : > { %4950 = vmatprep.subr.bf16.mxu1 %v4949_v11  ;;  %v4969_v11 = vpack.c.bf16 %v3006_v1, %v2998_v0 }
 0x369   : > { %4920 = vmatpush1.bf16.msra.mxu0 %v4919_v18  ;;  %v6046_v18 = vshrl.u32 %v1556_v17, 7 }
 0x36a   : > { %4922 = vmatprep.subr.bf16.mxu0 %v4921_v20  ;;  %4952 = vmatpush1.bf16.msra.mxu1 %v4951_v21 }
 0x36b   : > { %4954 = vmatprep.subr.bf16.mxu1 %v4953_v48  ;;  %v6049_v20 = vsub.s32 0, %v6046_v18  ;;  %v6052_v21 = vsub.s32 1, %v6046_v18  ;;  %v6057_v48 = vsub.s32 2, %v6046_v18  ;;  %v6067_v27 = vsub.s32 3, %v6046_v18 }
 0x36c   : > { %v6072_v23 = vsub.s32 4, %v6046_v18  ;;  %v6081_v33 = vsub.s32 6, %v6046_v18 }
 0x36d   : > { %4924 = vmatpush1.bf16.msra.mxu0 %v4923_v30  ;;  %v1559_v24 = vrot.slane %v1554_v22, %v6049_v20  ;;  %v1563_v25 = vrot.slane %v1554_v22, %v6052_v21  ;;  %v1567_v51 = vrot.slane %v1554_v22, %v6057_v48  ;;  %v6075_v30 = vsub.s32 5, %v6046_v18 }
 0x36e   : > { %4926 = vmatprep.subr.bf16.mxu0 %v4925_v32  ;;  %4956 = vmatpush1.bf16.msra.mxu1 %v4955_v31  ;;  %v1571_v32 = vrot.slane %v1554_v22, %v6067_v27  ;;  %v1575_v31 = vrot.slane %v1554_v22, %v6072_v23 }
 0x36f   : > { %4958 = vmatprep.subr.bf16.mxu1 %v4957_v36  ;;  %v6060_v26 = vadd.f32 %v6025_v2, %v1559_v24  ;;  %v4975_v2 = vadd.f32 %v6027_v7, %v1567_v51  ;;  %v1579_v34 = vrot.slane %v1554_v22, %v6075_v30  ;;  %v6086_v36 = vsub.s32 7, %v6046_v18 }
 0x370   : > { %v4976_v35 = vadd.f32 %v6031_v12, %v1571_v32  ;;  %v1583_v7 = vrot.slane %v1554_v22, %v6081_v33 }
 0x371   : > { %4928 = vmatpush1.bf16.msra.mxu0 %v4927_v41  ;;  %v1587_v44 = vrot.slane %v1554_v22, %v6086_v36 }
 0x372   : > { %4930 = vmatprep.subr.bf16.mxu0 %v4929_v42  ;;  %4960 = vmatpush1.bf16.msra.mxu1 %v4959_v43 }
 0x373   : > { %4962 = vmatprep.subr.bf16.mxu1 %v4961_v47 }
 0x375   : > { %4932 = vmatpush1.bf16.msra.mxu0 %v4931_v56  ;;  %v3007_v56 = vld [vmem:[#allocation14] sm:$0xff] }
 0x376   : > { %4934 = vmatprep.subr.bf16.mxu0 %v4933_v19  ;;  %4964 = vmatpush1.bf16.msra.mxu1 %v4963_v57  ;;  %v3012_v19 = vrot.slane %v3007_v56, %v6049_v20  ;;  %v3016_v57 = vrot.slane %v3007_v56, %v6052_v21  ;;  %v3020_v60 = vrot.slane %v3007_v56, %v6057_v48 }
 0x377   : > { %4966 = vmatprep.subr.bf16.mxu1 %v4965_v61  ;;  %v3024_v63 = vrot.slane %v3007_v56, %v6067_v27  ;;  %v3028_v1 = vrot.slane %v3007_v56, %v6072_v23  ;;  %v3040_v22 = vrot.slane %v3007_v56, %v6086_v36 }
 0x379   : > { %4936 = vmatpush1.bf16.msra.mxu0 %v4935_v3  ;;  %v3032_v3 = vrot.slane %v3007_v56, %v6075_v30 }
 0x37a   : > { %4938 = vmatprep.subr.bf16.mxu0 %v4937_v4  ;;  %4968 = vmatpush1.bf16.msra.mxu1 %v4967_v5  ;;  %v3036_v4 = vrot.slane %v3007_v56, %v6081_v33 }
 0x37b   : > { %4970 = vmatprep.subr.bf16.mxu1 %v4969_v11 }
 0x37d   : > { %4940 = vmatpush1.bf16.msra.mxu0 %v4939_v16 }
 0x37e   : > { %4972 = vmatpush1.bf16.msra.mxu1 %v4971_v15 }
 0x380   : > { %3256 = vmatmul.mubr.f32.vlgmr.msra.gmra.mrb[6].mxu0 %v6038_v54 }
 0x381   : > { %3327 = vmatmul.mubr.f32.vlgmr.msra.gmra.mrb[6].mxu1 %v6038_v54  ;;  %v6063_v54 = vadd.f32 %v6029_v8, %v1563_v25 }
 0x383   : > { %v2734_v29 = vadd.f32 %v6063_v54, %v6060_v26 }
 0x385   : > { %v2735_v8 = vadd.f32 %v4975_v2, %v2734_v29 }
 0x387   : > { %v2736_v38 = vadd.f32 %v4976_v35, %v2735_v8 }
 0x413   : > { %v2443_v37 = vpop.f32.mrb[2].mxu0 }
 0x414   : > { %v4977_v39 = vadd.f32 %v2443_v37, %v1575_v31  ;;  %v2727_v10 = vpop.f32.mrb[2].mxu1  ;;  %v2445_v40 = vpop.f32.mrb[3].mxu0 }
 0x415   : > { %v4978_v41 = vadd.f32 %v2445_v40, %v1579_v34  ;;  %v2729_v42 = vpop.f32.mrb[3].mxu1  ;;  %v4979_v45 = vadd.f32 %v2727_v10, %v1583_v7 }
 0x416   : > { %v2737_v43 = vadd.f32 %v4977_v39, %v2736_v38  ;;  %v4980_v47 = vadd.f32 %v2729_v42, %v1587_v44 }
 0x418   : > { %v2738_v46 = vadd.f32 %v4978_v41, %v2737_v43 }
 0x41a   : > { %v2739_v49 = vadd.f32 %v4979_v45, %v2738_v46 }
 0x41c   : > { %v2740_v12 = vadd.f32 %v4980_v47, %v2739_v49 }
 0x41e   : > { %2741 = vadd.xlane.f32.xlu0 %v2740_v12 }
 0x433   : > { %v3115_v50 = vpop.f32.mrb[4].mxu0 }
 0x434   : > { %v3117_v52 = vpop.f32.mrb[5].mxu0  ;;  %v3186_v53 = vpop.f32.mrb[4].mxu1  ;;  %v3116_v58 = vadd.f32 %v3115_v50, %v3012_v19 }
 0x435   : > { %v3188_v55 = vpop.f32.mrb[5].mxu1  ;;  %v3118_v59 = vadd.f32 %v3117_v52, %v3016_v57  ;;  %v3187_v62 = vadd.f32 %v3186_v53, %v3020_v60 }
 0x436   : > { %v3189_v0 = vadd.f32 %v3188_v55, %v3024_v63 }
 0x437   : > { %v3335_v61 = vadd.f32 %v3118_v59, %v3116_v58 }
 0x439   : > { %v3336_v14 = vadd.f32 %v3335_v61, %v3187_v62 }
 0x43b   : > { %v3337_v6 = vadd.f32 %v3336_v14, %v3189_v0 }
 0x453   : > { %v3257_v5 = vpop.f32.mrb[6].mxu0 }
 0x454   : > { %v3258_v9 = vadd.f32 %v3257_v5, %v3028_v1  ;;  %v3259_v11 = vpop.f32.mrb[7].mxu0  ;;  %v3328_v28 = vpop.f32.mrb[6].mxu1 }
 0x455   : > { %v3260_v13 = vadd.f32 %v3259_v11, %v3032_v3  ;;  %v3330_v16 = vpop.f32.mrb[7].mxu1  ;;  %v3329_v17 = vadd.f32 %v3328_v28, %v3036_v4 }
 0x456   : > { %v3338_v15 = vadd.f32 %v3337_v6, %v3258_v9  ;;  %v3331_v51 = vadd.f32 %v3330_v16, %v3040_v22 }
 0x458   : > { %v3339_v24 = vadd.f32 %v3338_v15, %v3260_v13 }
 0x45a   : > { %v3340_v25 = vadd.f32 %v3339_v24, %v3329_v17 }
 0x45c   : > { %v3341_v29 = vadd.f32 %v3340_v25, %v3331_v51 }
 0x45e   : > { %3342 = vadd.xlane.f32.xlu0 %v3341_v29  ;;  %v6164_v29 = vld [vmem:[#allocation11] sm:$0xff] }
 0x4ab   : > { %v2742_v32 = vpop.xlane.xlu0 %2741 }
 0x4ac   : > { %v2744_v8 = vmul.f32 0.0009765625, %v2742_v32 }
 0x4ae   : > { %v6099_v31 = vsub.f32 %v6060_v26, %v2744_v8  ;;  %v6102_v34 = vsub.f32 %v6063_v54, %v2744_v8  ;;  %v6104_v37 = vsub.f32 %v4975_v2, %v2744_v8  ;;  %v6106_v38 = vsub.f32 %v4976_v35, %v2744_v8 }
 0x4af   : > { %v6112_v40 = vsub.f32 %v4977_v39, %v2744_v8  ;;  %v6116_v43 = vsub.f32 %v4978_v41, %v2744_v8  ;;  %v6120_v35 = vsub.f32 %v4979_v45, %v2744_v8  ;;  %v6124_v49 = vsub.f32 %v4980_v47, %v2744_v8 }
 0x4b0   : > { %v2753_v7 = vmul.f32 %v6099_v31, %v6099_v31  ;;  %v2754_v10 = vmul.f32 %v6102_v34, %v6102_v34  ;;  %v2755_v42 = vmul.f32 %v6104_v37, %v6104_v37  ;;  %v2756_v54 = vmul.f32 %v6106_v38, %v6106_v38 }
 0x4b1   : > { %v2757_v44 = vmul.f32 %v6112_v40, %v6112_v40  ;;  %v2758_v39 = vmul.f32 %v6116_v43, %v6116_v43  ;;  %v2759_v41 = vmul.f32 %v6120_v35, %v6120_v35  ;;  %v2760_v52 = vmul.f32 %v6124_v49, %v6124_v49 }
 0x4b2   : > { %v2761_v26 = vadd.f32 %v2754_v10, %v2753_v7 }
 0x4b4   : > { %v2762_v2 = vadd.f32 %v2761_v26, %v2755_v42 }
 0x4b6   : > { %v2763_v46 = vadd.f32 %v2762_v2, %v2756_v54 }
 0x4b8   : > { %v2764_v12 = vadd.f32 %v2763_v46, %v2757_v44 }
 0x4ba   : > { %v2765_v50 = vadd.f32 %v2764_v12, %v2758_v39  ;;  %v2834_v39 = vrot.slane %v6164_v29, %v6049_v20  ;;  %v6176_v12 = vld [vmem:[#allocation16] sm:$0xff] }
 0x4bc   : > { %v2766_v53 = vadd.f32 %v2765_v50, %v2759_v41 }
 0x4be   : > { %v2767_v45 = vadd.f32 %v2766_v53, %v2760_v52  ;;  %v2838_v52 = vrot.slane %v6164_v29, %v6052_v21  ;;  %v2842_v53 = vrot.slane %v6164_v29, %v6057_v48 }
 0x4c0   : > { %2768 = vadd.xlane.f32.xlu1 %v2767_v45  ;;  %v2846_v45 = vrot.slane %v6164_v29, %v6067_v27 }
 0x4eb   : > { %v3343_v55 = vpop.xlane.xlu0 %3342 }
 0x4ec   : > { %v3344_v56 = vmul.f32 0.0009765625, %v3343_v55  ;;  %v2850_v55 = vrot.slane %v6164_v29, %v6072_v23 }
 0x4ee   : > { %v6132_v19 = vsub.f32 %v3116_v58, %v3344_v56  ;;  %v6134_v47 = vsub.f32 %v3118_v59, %v3344_v56  ;;  %v6136_v57 = vsub.f32 %v3187_v62, %v3344_v56  ;;  %v6138_v60 = vsub.f32 %v3189_v0, %v3344_v56 }
 0x4ef   : > { %v6144_v14 = vsub.f32 %v3258_v9, %v3344_v56  ;;  %v6148_v58 = vsub.f32 %v3260_v13, %v3344_v56  ;;  %v6152_v0 = vsub.f32 %v3329_v17, %v3344_v56  ;;  %v6156_v6 = vsub.f32 %v3331_v51, %v3344_v56  ;;  %v2732_v51 = vld [vmem:[#allocation10] sm:$0xff] }
 0x4f0   : > { %v3353_v61 = vmul.f32 %v6132_v19, %v6132_v19  ;;  %v3354_v63 = vmul.f32 %v6134_v47, %v6134_v47  ;;  %v3355_v1 = vmul.f32 %v6136_v57, %v6136_v57  ;;  %v3356_v59 = vmul.f32 %v6138_v60, %v6138_v60 }
 0x4f1   : > { %6344 = vst [vmem:[#allocation29_spill] sm:$0xff] %v6152_v0  ;;  %v3357_v4 = vmul.f32 %v6144_v14, %v6144_v14  ;;  %6345 = vst [vmem:[#allocation30_spill] sm:$0xff] %v6156_v6  ;;  %v3358_v9 = vmul.f32 %v6148_v58, %v6148_v58  ;;  %v3359_v28 = vmul.f32 %v6152_v0, %v6152_v0 }
 0x4f2   : > { %v3361_v3 = vadd.f32 %v3354_v63, %v3353_v61  ;;  %v3360_v16 = vmul.f32 %v6156_v6, %v6156_v6  ;;  %v2785_v8 = vrot.slane %v2732_v51, %v6049_v20  ;;  %v2789_v7 = vrot.slane %v2732_v51, %v6052_v21 }
 0x4f3   : > { %v2793_v10 = vrot.slane %v2732_v51, %v6057_v48  ;;  %v2797_v26 = vrot.slane %v2732_v51, %v6067_v27  ;;  %v2801_v54 = vrot.slane %v2732_v51, %v6072_v23  ;;  %v2805_v2 = vrot.slane %v2732_v51, %v6075_v30 }
 0x4f4   : > { %v3362_v62 = vadd.f32 %v3361_v3, %v3355_v1  ;;  %v2809_v44 = vrot.slane %v2732_v51, %v6081_v33  ;;  %v2813_v46 = vrot.slane %v2732_v51, %v6086_v36  ;;  %v2854_v56 = vrot.slane %v6164_v29, %v6075_v30 }
 0x4f5   : > { %v2858_v61 = vrot.slane %v6164_v29, %v6081_v33  ;;  %v2862_v63 = vrot.slane %v6164_v29, %v6086_v36  ;;  %v3385_v1 = vrot.slane %v6176_v12, %v6049_v20  ;;  %v3389_v3 = vrot.slane %v6176_v12, %v6052_v21 }
 0x4f6   : > { %v3363_v5 = vadd.f32 %v3362_v62, %v3356_v59  ;;  %v5534_v59 = vmov 1966171168  }
 0x4f7   : > { %v3556_v62 = vunpack.c.l.s4 %v5534_v59 }
 0x4f8   : > { %v3364_v11 = vadd.f32 %v3363_v5, %v3357_v4 }
 0x4fa   : > { %v3365_v13 = vadd.f32 %v3364_v11, %v3358_v9 }
 0x4fc   : > { %v3366_v15 = vadd.f32 %v3365_v13, %v3359_v28  ;;  %v3334_v28 = vld [vmem:[#allocation17] sm:$0xff] }
 0x4fd   : > { %v3442_v59 = vrot.slane %v3334_v28, %v6057_v48  ;;  %v3446_v6 = vrot.slane %v3334_v28, %v6067_v27  ;;  %v3450_v0 = vrot.slane %v3334_v28, %v6072_v23 }
 0x4fe   : > { %v3367_v17 = vadd.f32 %v3366_v15, %v3360_v16 }
 0x500   : > { %3368 = vadd.xlane.f32.xlu1 %v3367_v17 }
 0x54d   : > { %v2769_v22 = vpop.xlane.xlu1 %2768 }
 0x54e   : > { %v2770_v24 = vmul.f32 0.0009765625, %v2769_v22  ;;  %v3393_v22 = vrot.slane %v6176_v12, %v6057_v48 }
 0x550   : > { %v2771_v25 = vadd.f32 1e-12, %v2770_v24 }
 0x552   : > { %5141 = vrsqrt.f32 %v2771_v25 }
 0x55c   : > { %v5142_v41 = vpop.eup %5141 }
 0x55d   : > { %v2773_v4 = vmul.f32 %v5142_v41, %v6099_v31  ;;  %v2774_v5 = vmul.f32 %v5142_v41, %v6102_v34  ;;  %v2775_v9 = vmul.f32 %v5142_v41, %v6104_v37  ;;  %v2776_v11 = vmul.f32 %v5142_v41, %v6106_v38 }
 0x55e   : > { %v2777_v13 = vmul.f32 %v5142_v41, %v6112_v40  ;;  %v2778_v16 = vmul.f32 %v5142_v41, %v6116_v43  ;;  %v2779_v15 = vmul.f32 %v5142_v41, %v6120_v35  ;;  %v2780_v17 = vmul.f32 %v5142_v41, %v6124_v49 }
 0x55f   : > { %v3397_v31 = vrot.slane %v6176_v12, %v6067_v27  ;;  %v3401_v34 = vrot.slane %v6176_v12, %v6072_v23  ;;  %v3405_v37 = vrot.slane %v6176_v12, %v6075_v30  ;;  %v3409_v38 = vrot.slane %v6176_v12, %v6081_v33 }
 0x560   : > { %v3413_v40 = vrot.slane %v6176_v12, %v6086_v36  ;;  %v3434_v43 = vrot.slane %v3334_v28, %v6049_v20  ;;  %v3557_v35 = vunpack.c.0.s8 %v3556_v62  ;;  %v2822_v49 = vmul.f32 %v2785_v8, %v2773_v4 }
 0x561   : > { %v2823_v24 = vmul.f32 %v2789_v7, %v2774_v5  ;;  %v2824_v25 = vmul.f32 %v2793_v10, %v2775_v9  ;;  %v2825_v51 = vmul.f32 %v2797_v26, %v2776_v11  ;;  %v2826_v29 = vmul.f32 %v2801_v54, %v2777_v13 }
 0x562   : > { %v2829_v41 = vmul.f32 %v2813_v46, %v2780_v17  ;;  %v3454_v12 = vrot.slane %v3334_v28, %v6075_v30  ;;  %v3458_v20 = vrot.slane %v3334_v28, %v6081_v33  ;;  %v3462_v8 = vrot.slane %v3334_v28, %v6086_v36 }
 0x563   : > { %v6225_v7 = vsub.s32 %v3557_v35, %v6046_v18  ;;  %v2871_v10 = vadd.f32 %v2834_v39, %v2822_v49  ;;  %v2872_v26 = vadd.f32 %v2838_v52, %v2823_v24  ;;  %v2873_v54 = vadd.f32 %v2842_v53, %v2824_v25  ;;  %v6346_v52 = vld [vmem:[#allocation29_spill] sm:$0xff] }
 0x564   : > { %v2878_v27 = vadd.f32 %v2862_v63, %v2829_v41 }
 0x58d   : > { %v3369_v32 = vpop.xlane.xlu1 %3368 }
 0x58e   : > { %v3370_v42 = vmul.f32 0.0009765625, %v3369_v32  ;;  %v2827_v32 = vmul.f32 %v2805_v2, %v2778_v16  ;;  %v2874_v2 = vadd.f32 %v2846_v45, %v2825_v51  ;;  %v6347_v45 = vld [vmem:[#allocation30_spill] sm:$0xff] }
 0x590   : > { %v3371_v50 = vadd.f32 1e-12, %v3370_v42  ;;  %v2828_v42 = vmul.f32 %v2809_v44, %v2779_v15  ;;  %v2875_v44 = vadd.f32 %v2850_v55, %v2826_v29  ;;  %v2876_v48 = vadd.f32 %v2854_v56, %v2827_v32 }
 0x592   : > { %5143 = vrsqrt.f32 %v3371_v50  ;;  %v3438_v50 = vrot.slane %v3334_v28, %v6052_v21  ;;  %v2877_v46 = vadd.f32 %v2858_v61, %v2828_v42 }
 0x59c   : > { %v5144_v21 = vpop.eup %5143 }
 0x59d   : > { %v3373_v23 = vmul.f32 %v5144_v21, %v6132_v19  ;;  %v3374_v30 = vmul.f32 %v5144_v21, %v6134_v47  ;;  %v3375_v33 = vmul.f32 %v5144_v21, %v6136_v57  ;;  %v3376_v36 = vmul.f32 %v5144_v21, %v6138_v60 }
 0x59e   : > { %v3377_v18 = vmul.f32 %v5144_v21, %v6144_v14  ;;  %v3378_v39 = vmul.f32 %v5144_v21, %v6148_v58  ;;  %v3379_v53 = vmul.f32 %v5144_v21, %v6346_v52  ;;  %v3380_v62 = vmul.f32 %v5144_v21, %v6347_v45 }
 0x59f   : > { %v3422_v55 = vmul.f32 %v3385_v1, %v3373_v23  ;;  %v3423_v56 = vmul.f32 %v3389_v3, %v3374_v30  ;;  %v3424_v61 = vmul.f32 %v3393_v22, %v3375_v33  ;;  %v3425_v63 = vmul.f32 %v3397_v31, %v3376_v36 }
 0x5a0   : > { %v3426_v4 = vmul.f32 %v3401_v34, %v3377_v18  ;;  %v3427_v19 = vmul.f32 %v3405_v37, %v3378_v39  ;;  %v3428_v5 = vmul.f32 %v3409_v38, %v3379_v53  ;;  %v3429_v47 = vmul.f32 %v3413_v40, %v3380_v62 }
 0x5a1   : > { %v3471_v9 = vadd.f32 %v3434_v43, %v3422_v55  ;;  %v3472_v57 = vadd.f32 %v3438_v50, %v3423_v56  ;;  %v3473_v11 = vadd.f32 %v3442_v59, %v3424_v61  ;;  %v3474_v60 = vadd.f32 %v3446_v6, %v3425_v63 }
 0x5a2   : > { %v3475_v28 = vadd.f32 %v3450_v0, %v3426_v4  ;;  %v3476_v14 = vadd.f32 %v3454_v12, %v3427_v19  ;;  %v3477_v13 = vadd.f32 %v3458_v20, %v3428_v5  ;;  %v3478_v58 = vadd.f32 %v3462_v8, %v3429_v47 }
 0x5a3   : > { %v3479_v16 = vadd.f32 %v3471_v9, %v2871_v10  ;;  %v3480_v15 = vadd.f32 %v3472_v57, %v2872_v26  ;;  %v3481_v17 = vadd.f32 %v3473_v11, %v2873_v54  ;;  %v3482_v35 = vadd.f32 %v3474_v60, %v2874_v2 }
 0x5a4   : > { %v3483_v1 = vadd.f32 %v3475_v28, %v2875_v44  ;;  %v3484_v3 = vadd.f32 %v3476_v14, %v2876_v48  ;;  %v3485_v22 = vadd.f32 %v3477_v13, %v2877_v46  ;;  %v3486_v31 = vadd.f32 %v3478_v58, %v2878_v27 }
 0x5a5   : > { %v3487_v34 = vmul.f32 0.5, %v3479_v16  ;;  %v3488_v37 = vmul.f32 0.5, %v3480_v15  ;;  %v3489_v38 = vmul.f32 0.5, %v3481_v17  ;;  %v3490_v40 = vmul.f32 0.5, %v3482_v35 }
 0x5a6   : > { %v3491_v43 = vmul.f32 0.5, %v3483_v1  ;;  %v3492_v49 = vmul.f32 0.5, %v3484_v3  ;;  %v3493_v24 = vmul.f32 0.5, %v3485_v22  ;;  %v3494_v6 = vmul.f32 0.5, %v3486_v31 }
 0x5a7   : > { %v3495_v0 = vrot.slane %v3487_v34, 4  ;;  %v3501_v25 = vrot.slane %v3488_v37, 4  ;;  %v3507_v51 = vrot.slane %v3489_v38, 4  ;;  %v3513_v29 = vrot.slane %v3490_v40, 4 }
 0x5a8   : > { %v3519_v32 = vrot.slane %v3491_v43, 4  ;;  %v3525_v42 = vrot.slane %v3492_v49, 4  ;;  %v3531_v41 = vrot.slane %v3493_v24, 4  ;;  %v3537_v50 = vrot.slane %v3494_v6, 4 }
 0x5a9   : > { %v3496_v59 = vadd.f32 %v3495_v0, %v3487_v34  ;;  %v3502_v12 = vadd.f32 %v3501_v25, %v3488_v37  ;;  %v3508_v20 = vadd.f32 %v3507_v51, %v3489_v38  ;;  %v3514_v8 = vadd.f32 %v3513_v29, %v3490_v40 }
 0x5aa   : > { %v3520_v10 = vadd.f32 %v3519_v32, %v3491_v43  ;;  %v3526_v26 = vadd.f32 %v3525_v42, %v3492_v49  ;;  %v3532_v54 = vadd.f32 %v3531_v41, %v3493_v24  ;;  %v3538_v2 = vadd.f32 %v3537_v50, %v3494_v6 }
 0x5ab   : > { %v3497_v21 = vrot.slane %v3496_v59, 2  ;;  %v3503_v44 = vrot.slane %v3502_v12, 2  ;;  %v3509_v48 = vrot.slane %v3508_v20, 2  ;;  %v3515_v46 = vrot.slane %v3514_v8, 2 }
 0x5ac   : > { %v3521_v27 = vrot.slane %v3520_v10, 2  ;;  %v3527_v23 = vrot.slane %v3526_v26, 2  ;;  %v3533_v30 = vrot.slane %v3532_v54, 2  ;;  %v3539_v33 = vrot.slane %v3538_v2, 2 }
 0x5ad   : > { %v3498_v36 = vadd.f32 %v3497_v21, %v3496_v59  ;;  %v3504_v18 = vadd.f32 %v3503_v44, %v3502_v12  ;;  %v3510_v39 = vadd.f32 %v3509_v48, %v3508_v20  ;;  %v3516_v52 = vadd.f32 %v3515_v46, %v3514_v8 }
 0x5ae   : > { %v3522_v53 = vadd.f32 %v3521_v27, %v3520_v10  ;;  %v3528_v45 = vadd.f32 %v3527_v23, %v3526_v26  ;;  %v3534_v62 = vadd.f32 %v3533_v30, %v3532_v54  ;;  %v3540_v55 = vadd.f32 %v3539_v33, %v3538_v2 }
 0x5af   : > { %v3499_v56 = vrot.slane %v3498_v36, 1  ;;  %v3505_v61 = vrot.slane %v3504_v18, 1  ;;  %v3511_v63 = vrot.slane %v3510_v39, 1  ;;  %v3517_v4 = vrot.slane %v3516_v52, 1 }
 0x5b0   : > { %v3523_v19 = vrot.slane %v3522_v53, 1  ;;  %v3529_v5 = vrot.slane %v3528_v45, 1  ;;  %v3535_v47 = vrot.slane %v3534_v62, 1  ;;  %v3541_v9 = vrot.slane %v3540_v55, 1 }
 0x5b1   : > { %v3500_v57 = vadd.f32 %v3499_v56, %v3498_v36  ;;  %v3506_v11 = vadd.f32 %v3505_v61, %v3504_v18  ;;  %v3512_v60 = vadd.f32 %v3511_v63, %v3510_v39  ;;  %v3518_v28 = vadd.f32 %v3517_v4, %v3516_v52 }
 0x5b2   : > { %v3524_v14 = vadd.f32 %v3523_v19, %v3522_v53  ;;  %v3530_v13 = vadd.f32 %v3529_v5, %v3528_v45  ;;  %v3536_v58 = vadd.f32 %v3535_v47, %v3534_v62  ;;  %v3542_v16 = vadd.f32 %v3541_v9, %v3540_v55 }
 0x5b3   : > { %v3551_v15 = vcombine.low %v3500_v57, %v3506_v11  ;;  %v3552_v17 = vcombine.low %v3512_v60, %v3518_v28 }
 0x5b4   : > { %v3553_v35 = vcombine.low %v3524_v14, %v3530_v13  ;;  %v3554_v1 = vcombine.low %v3536_v58, %v3542_v16 }
 0x5b5   : > { %v3561_v3 = vrot.slane %v3551_v15, %v6225_v7  ;;  %v3568_v22 = vrot.slane %v3552_v17, %v6225_v7 }
 0x5b6   : > { %v3575_v31 = vrot.slane %v3553_v35, %v6225_v7  ;;  %v3582_v34 = vrot.slane %v3554_v1, %v6225_v7 }
 0x5b7   : > { %v3583_v37 = vcombine.low %v3561_v3, %v3568_v22 }
 0x5b8   : > { %v3584_v38 = vcombine.low %v3575_v31, %v3582_v34 }
 0x5b9   : > { %v3591_v40 = vrot.slane %v3583_v37, %v6225_v7 }
 0x5ba   : > { %v3598_v43 = vrot.slane %v3584_v38, %v6225_v7 }
 0x5bc   : > { %v3599_v49 = vcombine.low %v3591_v40, %v3598_v43 }
 0x5be   : > { %3601 = vst [vmem:[%s516_s30] sm:$0xff] %v3599_v49 }
 0x5bf   : > { %5442 = shalt.err (!%p5439_p12)
}
 0x5c0   : > { %s5443_s3 = scalar_lea.hbm %s6247_s20, 128  ;;  %s5447_s21 = scalar_lea.hbm %s6348_s29, 1024 }
 0x5c1   : > { %p5444_p13 = scmp.ne.s32.totalorder %s6247_s20, %s5443_s3  ;;  %p5448_p2 = scmp.lt.u32.totalorder %s6247_s20, %s6348_s29 }
 0x5c2   : > { %p5449_p9 = scmp.lt.u32.totalorder %s5447_s21, %s5443_s3  ;;  %p5451_p4 = scmp.lt.u32.totalorder %s5443_s3, %s6247_s20 }
 0x5c3   : > { %p5445_p1 = pnand %p5444_p13, %p6349_p6 }
 0x5c4   : > { %p5450_p10 = por %p5449_p9, %p5448_p2 }
 0x5c5   : > { %p5446_p3 = pneg %p5445_p1 }
 0x5c6   : > { %p5452_p0 = por %p5451_p4, %p5450_p10 }
 0x5c8   : > { %p5453_p5 = pnand %p5452_p0, %p5446_p3 }
 0x5ca   : > { %5456 = shalt.err (!%p5453_p5)
}
 0x5cb   : > { %5041 = dma.vmem_to_hbm [thread:$0]  (%p6349_p6), %s6249_s22, 128, %s6247_s20, %s3603_s4  }
 0x5cc PF: > { %p5096_p11 = scmp.ge.s32.totalorder %s5519_s16, 2  ;;  %s3629_s30 = sand.u32 1, %s5507_s13  }
 0x5cd   : > { %p6350_p7 = scmp.ne.s32.totalorder %s6327_s17, 0  ;;  %s3630_s2 = scalar_lea.sflag [#allocation4], %s3629_s30 }
 0x5cf   : > { %p5076_p8 = pnand %p5096_p11, %p6350_p7 }
 0x5d1   : > { %5502 = dma.done.wait (!%p5076_p8), %s3630_s2, 128  }
 0x5d2   : > { %5504 = vsyncadd (!%p5076_p8), %s3630_s2, 4294967168  ;;  %p30_p12 = scmp.ge.s32.totalorder %s5808_s23, 10   ;;  %s6351_s13 = smov %s5511_s14 }
 0x5d3   : > { %s6352_s14 = smov %s5515_s15  ;;  %s6353_s15 = smov %s5819_s25 }
 0x5d4   : > { %s6354_s16 = smov %s5808_s23  ;;  %32 = sbr.rel (!%p30_p12) target bundleno = 17 (0x11), region = 150 }
 0x5db   :  { %3635 = vsyncpa [#allocation3], 1 }
 0x5dc   :  { %3637 = vsyncpa [#allocation3 + $0x1], 1 }
 0x5dd   :  { %3638 = vsyncpa [#allocation6], 1 }
 0x5de   :  { %3640 = vsyncpa [#allocation6 + $0x1], 1 }
 0x5df   :  { %3641 = vsyncpa [#allocation9], 1 }
 0x5e0   :  { %3642 = vsyncpa [#allocation12], 1 }
 0x5e1   :  { %3643 = vsyncpa [#allocation15], 1 }
 0x5e2   :  { %3644 = vsyncpa [#allocation18], 1 }
 0x5e3   :  { %3645 = vsyncpa [#allocation4], 1 }
 0x5e4   :  { %3647 = vsyncpa [#allocation4 + $0x1], 1 }

</bundles_post_ra>
